<compile_context>
chip_gen: v7x
topology: tpu7x:2x2x1
jax: 0.10.0
libtpu: 0.0.40
codegen_flags: <defaults>
</compile_context>

<pallas_src>
import math
import functools

import jax
import jax.numpy as jnp
from jax import lax
from jax.experimental import pallas as pl
from jax.experimental.pallas import tpu as pltpu

NEG_INF = -1e9


# --------------------------- per-generation tiling config ---------------------

def _chip_config():
    try:
        kind = jax.devices()[0].device_kind.lower()
    except Exception:
        kind = ""
    if ("v7" in kind) or ("7x" in kind):
        # v7x: 64 MiB physical VMEM per TC, 2 TensorCores per chip.
        return {"row_cap": 256, "ffn_cap": 128,
                "vmem_limit": 48 * 1024 * 1024, "two_cores": True}
    # v5e / v6e: 128 MiB physical VMEM, 1 TC; raise the 16/32 MiB scoped default.
    return {"row_cap": 512, "ffn_cap": 256,
            "vmem_limit": 64 * 1024 * 1024, "two_cores": False}


_CFG = _chip_config()
_VMEM_LIMIT = _CFG["vmem_limit"]
_TWO_CORES = _CFG["two_cores"]
_ROW_CAP = _CFG["row_cap"]
_FFN_CAP = _CFG["ffn_cap"]


def _row_tile(M, cap):
    """Biggest row (sublane) tile up to `cap`; on 2-TC chips force >=2 tiles so
    the 'parallel' grid axis can feed both TensorCores."""
    if _TWO_CORES and M > 8:
        half = (((M + 1) // 2) + 7) // 8 * 8          # ~M/2, multiple of 8
        cap = max(8, min(cap, half))
    return M if M <= cap else cap


# ------------------------------ linear (bias optional) -----------------------

def _linear_kernel(x_ref, w_ref, b_ref, o_ref):
    acc = jnp.dot(x_ref[...].astype(jnp.bfloat16), w_ref[...],
                  preferred_element_type=jnp.float32)
    o_ref[...] = (acc + b_ref[...]).astype(o_ref.dtype)


def _linear_nobias_kernel(x_ref, w_ref, o_ref):
    o_ref[...] = jnp.dot(x_ref[...].astype(jnp.bfloat16), w_ref[...],
                         preferred_element_type=jnp.float32).astype(o_ref.dtype)


def pallas_linear(x2d, w, b=None, out_dtype=jnp.bfloat16):
    """x2d [M,K] @ w [K,N] bf16 (+ b [N] f32) -> [M,N] out_dtype, tiled over (M,N)."""
    M, K = x2d.shape
    N = w.shape[1]
    tm = _row_tile(M, _ROW_CAP)
    tn = N if N <= 2048 else 512
    gm, gn = pl.cdiv(M, tm), pl.cdiv(N, tn)
    # Weight-dominated linears (e.g. the vocab head) put the N-tile on the OUTER
    # grid axis so each weight tile is streamed from HBM exactly once; the small
    # activation tile is what gets re-read.
    weight_major = (w.size * w.dtype.itemsize) > (x2d.size * x2d.dtype.itemsize)
    if weight_major:
        grid = (gn, gm)
        x_spec = pl.BlockSpec((tm, K), lambda j, i: (i, 0))
        w_spec = pl.BlockSpec((K, tn), lambda j, i: (0, j))
        b_spec = pl.BlockSpec((1, tn), lambda j, i: (0, j))
        o_spec = pl.BlockSpec((tm, tn), lambda j, i: (i, j))
    else:
        grid = (gm, gn)
        x_spec = pl.BlockSpec((tm, K), lambda i, j: (i, 0))
        w_spec = pl.BlockSpec((K, tn), lambda i, j: (0, j))
        b_spec = pl.BlockSpec((1, tn), lambda i, j: (0, j))
        o_spec = pl.BlockSpec((tm, tn), lambda i, j: (i, j))
    cp = pltpu.CompilerParams(dimension_semantics=("parallel", "parallel"),
                              vmem_limit_bytes=_VMEM_LIMIT)
    if b is None:
        return pl.pallas_call(
            _linear_nobias_kernel,
            out_shape=jax.ShapeDtypeStruct((M, N), out_dtype),
            grid=grid, in_specs=[x_spec, w_spec], out_specs=o_spec,
            compiler_params=cp,
        )(x2d, w)
    return pl.pallas_call(
        _linear_kernel,
        out_shape=jax.ShapeDtypeStruct((M, N), out_dtype),
        grid=grid, in_specs=[x_spec, w_spec, b_spec], out_specs=o_spec,
        compiler_params=cp,
    )(x2d, w, b.reshape(1, N))


# --------------------------- fused residual + layernorm ----------------------

def _add_ln_kernel(x_ref, r_ref, g_ref, b_ref, o_ref):
    x = x_ref[...].astype(jnp.float32) + r_ref[...].astype(jnp.float32)
    mu = jnp.mean(x, axis=-1, keepdims=True)
    var = jnp.mean(jnp.square(x - mu), axis=-1, keepdims=True)
    y = (x - mu) * lax.rsqrt(var + 1e-5) * g_ref[...] + b_ref[...]
    o_ref[...] = y.astype(o_ref.dtype)


def pallas_add_layernorm(x2d, r2d, g, b):
    M, D = x2d.shape
    tm = _row_tile(M, _ROW_CAP)
    row = pl.BlockSpec((tm, D), lambda i: (i, 0))
    vec = pl.BlockSpec((1, D), lambda i: (0, 0))
    return pl.pallas_call(
        _add_ln_kernel,
        out_shape=jax.ShapeDtypeStruct((M, D), jnp.bfloat16),
        grid=(pl.cdiv(M, tm),),
        in_specs=[row, row, vec, vec], out_specs=row,
        compiler_params=pltpu.CompilerParams(dimension_semantics=("parallel",),
                                             vmem_limit_bytes=_VMEM_LIMIT),
    )(x2d, r2d, g.reshape(1, D), b.reshape(1, D))


# ----------------------------------- FFN -------------------------------------

def _ffn_kernel(x_ref, w1_ref, b1_ref, w2_ref, b2_ref, o_ref):
    h = jnp.dot(x_ref[...].astype(jnp.bfloat16), w1_ref[...],
                preferred_element_type=jnp.float32) + b1_ref[...]
    h = jnp.maximum(h, 0.0)
    o_ref[...] = (jnp.dot(h.astype(jnp.bfloat16), w2_ref[...],
                          preferred_element_type=jnp.float32)
                  + b2_ref[...]).astype(o_ref.dtype)


def pallas_ffn(x2d, w1, b1, w2, b2):
    M, D = x2d.shape
    F = w1.shape[1]
    tm = _row_tile(M, _FFN_CAP)   # (tm, F) f32 intermediate is the biggest live tensor
    return pl.pallas_call(
        _ffn_kernel,
        out_shape=jax.ShapeDtypeStruct((M, D), jnp.bfloat16),
        grid=(pl.cdiv(M, tm),),
        in_specs=[pl.BlockSpec((tm, D), lambda i: (i, 0)),
                  pl.BlockSpec((D, F), lambda i: (0, 0)),   # weights resident
                  pl.BlockSpec((1, F), lambda i: (0, 0)),
                  pl.BlockSpec((F, D), lambda i: (0, 0)),
                  pl.BlockSpec((1, D), lambda i: (0, 0))],
        out_specs=pl.BlockSpec((tm, D), lambda i: (i, 0)),
        compiler_params=pltpu.CompilerParams(dimension_semantics=("parallel",),
                                             vmem_limit_bytes=_VMEM_LIMIT),
    )(x2d, w1, b1.reshape(1, F), w2, b2.reshape(1, D))


# ------------- flash-style multi-head attention (all heads / step) -----------

def _mha_kernel(n_heads, dh, causal, seq_k,
                q_ref, kv_ref, kb_ref, wo_ref, bo_ref, o_ref,
                m_sc, l_sc, acc_sc):
    D = n_heads * dh
    ki = pl.program_id(2)
    tq = q_ref.shape[1]
    tk = kv_ref.shape[1]

    @pl.when(ki == 0)
    def _():
        m_sc[...] = jnp.full(m_sc.shape, -jnp.inf, m_sc.dtype)
        l_sc[...] = jnp.zeros(l_sc.shape, l_sc.dtype)
        acc_sc[...] = jnp.zeros(acc_sc.shape, acc_sc.dtype)

    # Masks built in-kernel from iota, shared across heads.  Padded / ragged kv
    # tails of a partial tile are covered by the kpos >= seq_k term.
    kpos = ki * tk + lax.broadcasted_iota(jnp.int32, (tq, tk), 1)
    invalid = kpos >= seq_k
    if causal:
        qpos = pl.program_id(1) * tq + lax.broadcasted_iota(jnp.int32, (tq, tk), 0)
        invalid = invalid | (kpos > qpos)
    bias = kb_ref[0]                         # [1, tk] additive key-padding bias

    for h in range(n_heads):                 # static unroll over heads
        hs, he = h * dh, (h + 1) * dh
        q = q_ref[0, :, hs:he]               # [tq, dh] bf16 (1/sqrt(dh) folded into W_q)
        k = kv_ref[0, :, hs:he]              # [tk, dh] bf16
        v = kv_ref[0, :, D + hs:D + he]      # [tk, dh] bf16
        s = lax.dot_general(q, k, (((1,), (1,)), ((), ())),
                            preferred_element_type=jnp.float32)   # [tq, tk] f32
        s = jnp.where(invalid, NEG_INF, s + bias)

        # online softmax (f32 statistics)
        m_prev = m_sc[h]
        m_new = jnp.maximum(m_prev, jnp.max(s, axis=-1, keepdims=True))
        alpha = jnp.exp(m_prev - m_new)
        p = jnp.exp(s - m_new)
        l_sc[h] = alpha * l_sc[h] + jnp.sum(p, axis=-1, keepdims=True)
        acc_sc[:, hs:he] = alpha * acc_sc[:, hs:he] + jnp.dot(
            p.astype(jnp.bfloat16), v, preferred_element_type=jnp.float32)
        m_sc[h] = m_new

    @pl.when(ki == pl.num_programs(2) - 1)
    def _():
        # normalize per head, then fused output projection (lane-dense [tq,D] store)
        for h in range(n_heads):
            hs, he = h * dh, (h + 1) * dh
            inv_l = pl.reciprocal(l_sc[h], approx=True)   # EUP slot, frees VALU
            acc_sc[:, hs:he] = acc_sc[:, hs:he] * inv_l
        out = jnp.dot(acc_sc[...].astype(jnp.bfloat16), wo_ref[...],
                      preferred_element_type=jnp.float32) + bo_ref[...]
        o_ref[0] = out.astype(o_ref.dtype)


def pallas_attention(q3d, kv3d, key_bias, wo, bo, *, n_heads, causal):
    """q3d [B,Sq,D] bf16, kv3d [B,Sk,2D] bf16 (K cols [0:D], V cols [D:2D]),
    key_bias [B,1,Sk] f32 additive; output = softmax(qk^T+bias) v @ W_o + b_o."""
    B, Sq, D = q3d.shape
    Sk = kv3d.shape[1]
    dh = D // n_heads
    tq = Sq if Sq <= 128 else 128
    tk = Sk if Sk <= 256 else 256            # never 512, never whole-Sk fallback
    grid = (B, pl.cdiv(Sq, tq), pl.cdiv(Sk, tk))
    kernel = functools.partial(_mha_kernel, n_heads, dh, causal, Sk)
    return pl.pallas_call(
        kernel,
        out_shape=jax.ShapeDtypeStruct((B, Sq, D), jnp.bfloat16),
        grid=grid,
        in_specs=[
            pl.BlockSpec((1, tq, D), lambda b, qi, ki: (b, qi, 0)),
            pl.BlockSpec((1, tk, 2 * D), lambda b, qi, ki: (b, ki, 0)),
            pl.BlockSpec((1, 1, tk), lambda b, qi, ki: (b, 0, ki)),
            pl.BlockSpec((D, D), lambda b, qi, ki: (0, 0)),      # W_o resident
            pl.BlockSpec((1, D), lambda b, qi, ki: (0, 0)),      # b_o resident
        ],
        out_specs=pl.BlockSpec((1, tq, D), lambda b, qi, ki: (b, qi, 0)),
        scratch_shapes=[pltpu.VMEM((n_heads, tq, 1), jnp.float32),   # m
                        pltpu.VMEM((n_heads, tq, 1), jnp.float32),   # l
                        pltpu.VMEM((tq, D), jnp.float32)],           # acc (all heads)
        compiler_params=pltpu.CompilerParams(
            dimension_semantics=("parallel", "parallel", "arbitrary"),
            vmem_limit_bytes=_VMEM_LIMIT),
    )(q3d, kv3d, key_bias, wo, bo.reshape(1, D))


def pallas_mha(x_q, x_kv, key_bias, params, prefix, n_heads, causal):
    """Self-attention: x_q is x_kv.  Cross-attention: x_kv = encoder output.
    Q projection and fused KV projection feed the attention kernel directly in
    [B, S, D] / [B, S, 2D] layout -- no head transposes."""
    B, Sq, D = x_q.shape
    Sk = x_kv.shape[1]
    q = pallas_linear(x_q.reshape(B * Sq, D), params[prefix + "q_w"],
                      params[prefix + "q_b"]).reshape(B, Sq, D)
    kv = pallas_linear(x_kv.reshape(B * Sk, D), params[prefix + "kv_w"],
                       params[prefix + "kv_b"]).reshape(B, Sk, 2 * D)
    return pallas_attention(q, kv, key_bias,
                            params[prefix + "o_w"], params[prefix + "o_b"],
                            n_heads=n_heads, causal=causal)


# ------------------------------ model pieces ---------------------------------

def sinusoidal_pe(max_len, D):
    pos = jnp.arange(max_len, dtype=jnp.float32)[:, None]
    div = jnp.exp(jnp.arange(0, D, 2, dtype=jnp.float32) * (-math.log(10000.0) / D))
    pe = jnp.zeros((max_len, D), jnp.float32)
    pe = pe.at[:, 0::2].set(jnp.sin(pos * div))
    pe = pe.at[:, 1::2].set(jnp.cos(pos * div))
    return pe


def transformer_forward(params, en_batch, de_batch, en_keep, de_keep, *,
                        d_model, n_heads, max_len, n_enc, n_dec):
    B, S_en = en_batch.shape
    S_de = de_batch.shape[1]
    D = d_model
    pe = sinusoidal_pe(max_len, D)

    # tiny [B,1,S] additive key-padding biases; the causal mask is built in-kernel
    en_bias = (1.0 - en_keep.astype(jnp.float32))[:, None, :] * NEG_INF
    de_bias = (1.0 - de_keep.astype(jnp.float32))[:, None, :] * NEG_INF

    # --- encode --- (embedding gather / PE add are XLA glue; activations bf16)
    x = (jnp.take(params["embed"], en_batch, axis=0) + pe[:S_en][None]
         ).astype(jnp.bfloat16)
    for i in range(n_enc):
        pre = f"enc{i}_"
        a = pallas_mha(x, x, en_bias, params, pre + "attn_", n_heads, causal=False)
        x2d = pallas_add_layernorm(x.reshape(B * S_en, D), a.reshape(B * S_en, D),
                                   params[pre + "ln1_g"], params[pre + "ln1_b"])
        f = pallas_ffn(x2d,
                       params[pre + "ff1_w"], params[pre + "ff1_b"],
                       params[pre + "ff2_w"], params[pre + "ff2_b"])
        x2d = pallas_add_layernorm(x2d, f,
                                   params[pre + "ln2_g"], params[pre + "ln2_b"])
        x = x2d.reshape(B, S_en, D)
    encoder_out = x

    # --- decode ---
    y = (jnp.take(params["embed"], de_batch, axis=0) + pe[:S_de][None]
         ).astype(jnp.bfloat16)
    for i in range(n_dec):
        pre = f"dec{i}_"
        a = pallas_mha(y, y, de_bias, params, pre + "sa_", n_heads, causal=True)
        y2d = pallas_add_layernorm(y.reshape(B * S_de, D), a.reshape(B * S_de, D),
                                   params[pre + "ln1_g"], params[pre + "ln1_b"])
        y = y2d.reshape(B, S_de, D)
        c = pallas_mha(y, encoder_out, en_bias, params, pre + "ca_", n_heads,
                       causal=False)
        y2d = pallas_add_layernorm(y2d, c.reshape(B * S_de, D),
                                   params[pre + "ln2_g"], params[pre + "ln2_b"])
        f = pallas_ffn(y2d,
                       params[pre + "ff1_w"], params[pre + "ff1_b"],
                       params[pre + "ff2_w"], params[pre + "ff2_b"])
        y2d = pallas_add_layernorm(y2d, f,
                                   params[pre + "ln3_g"], params[pre + "ln3_b"])
        y = y2d.reshape(B, S_de, D)

    # --- head (bias-free linear to vocab, weight streamed once) ---
    vocab = params["head_w"].shape[1]
    logits = pallas_linear(y.reshape(B * S_de, D), params["head_w"], None,
                           out_dtype=jnp.float32)
    return logits.reshape(B, S_de, vocab)


# ------------------------------ parameter init --------------------------------

def init_params(seed, vocab, D, H, F, n_enc, n_dec):
    key = jax.random.PRNGKey(seed)
    params = {}
    dh = D // H
    q_fold = 1.0 / math.sqrt(dh)   # 1/sqrt(d_head) folded into the Q projection

    def nxt():
        nonlocal key
        key, sub = jax.random.split(key)
        return sub

    def w_init(din, dout, scale=1.0):
        # matmul weights stored bf16 (MXU operands); biases / LN params stay f32
        w = jax.random.normal(nxt(), (din, dout), jnp.float32) * (scale / math.sqrt(din))
        return w.astype(jnp.bfloat16)

    def ln_p(name, dim):
        params[name + "_g"] = jnp.ones((dim,), jnp.float32)
        params[name + "_b"] = jnp.zeros((dim,), jnp.float32)

    def attn_p(pre):
        params[pre + "q_w"] = w_init(D, D, scale=q_fold)          # scale folded
        params[pre + "q_b"] = jnp.zeros((D,), jnp.float32)        # (zero, pre-scaled)
        params[pre + "kv_w"] = w_init(D, 2 * D)
        params[pre + "kv_b"] = jnp.zeros((2 * D,), jnp.float32)
        params[pre + "o_w"] = w_init(D, D)
        params[pre + "o_b"] = jnp.zeros((D,), jnp.float32)

    # token embedding scaled by sqrt(d_model) like `weight.data *= d_model ** 0.5`
    params["embed"] = jax.random.normal(nxt(), (vocab, D), jnp.float32) * math.sqrt(D)

    for i in range(n_enc):
        pre = f"enc{i}_"
        attn_p(pre + "attn_")
        ln_p(pre + "ln1", D)
        ln_p(pre + "ln2", D)
        params[pre + "ff1_w"] = w_init(D, F)
        params[pre + "ff1_b"] = jnp.zeros((F,), jnp.float32)
        params[pre + "ff2_w"] = w_init(F, D)
        params[pre + "ff2_b"] = jnp.zeros((D,), jnp.float32)

    for i in range(n_dec):
        pre = f"dec{i}_"
        attn_p(pre + "sa_")
        attn_p(pre + "ca_")
        ln_p(pre + "ln1", D)
        ln_p(pre + "ln2", D)
        ln_p(pre + "ln3", D)
        params[pre + "ff1_w"] = w_init(D, F)
        params[pre + "ff1_b"] = jnp.zeros((F,), jnp.float32)
        params[pre + "ff2_w"] = w_init(F, D)
        params[pre + "ff2_b"] = jnp.zeros((D,), jnp.float32)

    params["head_w"] = w_init(D, vocab)
    return params


# ----------------------------------- main --------------------------------------

if __name__ == "__main__":
    VOCAB, D_MODEL, N_HEADS, DIM_FF = 64, 32, 4, 64
    N_ENC, N_DEC = 2, 2
    MAX_LEN = 16
    B, S_EN, S_DE = 2, 8, 8

    key = jax.random.PRNGKey(0)
    k1, k2 = jax.random.split(key)
    en_batch = jax.random.randint(k1, (B, S_EN), 0, VOCAB, dtype=jnp.int32)
    de_batch = jax.random.randint(k2, (B, S_DE), 0, VOCAB, dtype=jnp.int32)
    # padding keep-masks: 1 = real token, 0 = pad
    en_keep = jnp.array([[1] * 8, [1] * 6 + [0] * 2], dtype=jnp.int32)
    de_keep = jnp.array([[1] * 7 + [0], [1] * 8], dtype=jnp.int32)

    params = init_params(0, VOCAB, D_MODEL, N_HEADS, DIM_FF, N_ENC, N_DEC)

    fwd = jax.jit(
        functools.partial(
            transformer_forward,
            d_model=D_MODEL,
            n_heads=N_HEADS,
            max_len=MAX_LEN,
            n_enc=N_ENC,
            n_dec=N_DEC,
        )
    )
    logits = fwd(params, en_batch, de_batch, en_keep, de_keep)
    logits = jax.block_until_ready(logits)

    assert logits.shape == (B, S_DE, VOCAB), logits.shape
    assert bool(jnp.all(jnp.isfinite(logits)))
    print("KERNEL_OK")
</pallas_src>

<mosaic_0001>
module attributes {stable_mosaic.version = 11 : i64} {
  func.func @_linear_kernel(%arg0: i32, %arg1: i32, %arg2: memref<16x32xbf16, #tpu.memory_space<vmem>>, %arg3: memref<32x64xbf16, #tpu.memory_space<vmem>>, %arg4: memref<1x64xf32, #tpu.memory_space<vmem>>, %arg5: memref<16x64xbf16, #tpu.memory_space<vmem>>) attributes {dimension_semantics = [#tpu.dimension_semantics<parallel>, #tpu.dimension_semantics<parallel>], iteration_bounds = array<i64: 1, 1>, scalar_prefetch = 0 : i64, scratch_operands = 0 : i64, tpu.core_type = #tpu.core_type<tc>, window_params = [{transform_indices = @transform_0, window_bounds = array<i64: 16, 32>}, {transform_indices = @transform_1, window_bounds = array<i64: 32, 64>}, {transform_indices = @transform_2, window_bounds = array<i64: 1, 64>}, {transform_indices = @transform_3, window_bounds = array<i64: 16, 64>}]} {
    %c0 = arith.constant 0 : index
    %c0_0 = arith.constant 0 : index
    %0 = vector.load %arg2[%c0, %c0_0] : memref<16x32xbf16, #tpu.memory_space<vmem>>, vector<16x32xbf16>
    %c0_1 = arith.constant 0 : index
    %c0_2 = arith.constant 0 : index
    %1 = vector.load %arg3[%c0_1, %c0_2] : memref<32x64xbf16, #tpu.memory_space<vmem>>, vector<32x64xbf16>
    %cst = arith.constant dense<0.000000e+00> : vector<16x64xf32>
    %2 = tpu.matmul %0, %1, %cst {dimension_numbers = #tpu.dot_dimension_numbers<[1], [0], [0], [1], [0, 0, 1, 1], [], []>} : vector<16x32xbf16>, vector<32x64xbf16>, vector<16x64xf32> -> vector<16x64xf32>
    %c0_3 = arith.constant 0 : index
    %c0_4 = arith.constant 0 : index
    %3 = vector.load %arg4[%c0_3, %c0_4] : memref<1x64xf32, #tpu.memory_space<vmem>>, vector<1x64xf32>
    %4 = vector.broadcast %3 : vector<1x64xf32> to vector<16x64xf32>
    %5 = arith.addf %2, %4 : vector<16x64xf32>
    %6 = arith.truncf %5 : vector<16x64xf32> to vector<16x64xbf16>
    %c0_5 = arith.constant 0 : index
    %c0_6 = arith.constant 0 : index
    %7 = vector.load %arg5[%c0_5, %c0_6] : memref<16x64xbf16, #tpu.memory_space<vmem>>, vector<16x64xbf16>
    tpu.vector_store %arg5[%c0_5, %c0_6], %6 {strides = array<i32>} : memref<16x64xbf16, #tpu.memory_space<vmem>>, vector<16x64xbf16>,
    return
  }
  func.func @transform_0(%arg0: i32, %arg1: i32) -> (i32, i32) {
    %c0_i32 = arith.constant 0 : i32
    %c0_i32_0 = arith.constant 0 : i32
    return %arg1, %c0_i32 : i32, i32
  }
  func.func @transform_1(%arg0: i32, %arg1: i32) -> (i32, i32) {
    %c0_i32 = arith.constant 0 : i32
    %c0_i32_0 = arith.constant 0 : i32
    return %c0_i32, %arg0 : i32, i32
  }
  func.func @transform_2(%arg0: i32, %arg1: i32) -> (i32, i32) {
    %c0_i32 = arith.constant 0 : i32
    %c0_i32_0 = arith.constant 0 : i32
    return %c0_i32, %arg0 : i32, i32
  }
  func.func @transform_3(%arg0: i32, %arg1: i32) -> (i32, i32) {
    %c0_i32 = arith.constant 0 : i32
    return %arg1, %arg0 : i32, i32
  }
}

module attributes {stable_mosaic.version = 11 : i64} {
  func.func @_linear_kernel(%arg0: i32, %arg1: i32, %arg2: memref<16x32xbf16, #tpu.memory_space<vmem>>, %arg3: memref<32x32xbf16, #tpu.memory_space<vmem>>, %arg4: memref<1x32xf32, #tpu.memory_space<vmem>>, %arg5: memref<16x32xbf16, #tpu.memory_space<vmem>>) attributes {dimension_semantics = [#tpu.dimension_semantics<parallel>, #tpu.dimension_semantics<parallel>], iteration_bounds = array<i64: 1, 1>, scalar_prefetch = 0 : i64, scratch_operands = 0 : i64, tpu.core_type = #tpu.core_type<tc>, window_params = [{transform_indices = @transform_0, window_bounds = array<i64: 16, 32>}, {transform_indices = @transform_1, window_bounds = array<i64: 32, 32>}, {transform_indices = @transform_2, window_bounds = array<i64: 1, 32>}, {transform_indices = @transform_3, window_bounds = array<i64: 16, 32>}]} {
    %c0 = arith.constant 0 : index
    %c0_0 = arith.constant 0 : index
    %0 = vector.load %arg2[%c0, %c0_0] : memref<16x32xbf16, #tpu.memory_space<vmem>>, vector<16x32xbf16>
    %c0_1 = arith.constant 0 : index
    %c0_2 = arith.constant 0 : index
    %1 = vector.load %arg3[%c0_1, %c0_2] : memref<32x32xbf16, #tpu.memory_space<vmem>>, vector<32x32xbf16>
    %cst = arith.constant dense<0.000000e+00> : vector<16x32xf32>
    %2 = tpu.matmul %0, %1, %cst {dimension_numbers = #tpu.dot_dimension_numbers<[1], [0], [0], [1], [0, 0, 1, 1], [], []>} : vector<16x32xbf16>, vector<32x32xbf16>, vector<16x32xf32> -> vector<16x32xf32>
    %c0_3 = arith.constant 0 : index
    %c0_4 = arith.constant 0 : index
    %3 = vector.load %arg4[%c0_3, %c0_4] : memref<1x32xf32, #tpu.memory_space<vmem>>, vector<1x32xf32>
    %4 = vector.broadcast %3 : vector<1x32xf32> to vector<16x32xf32>
    %5 = arith.addf %2, %4 : vector<16x32xf32>
    %6 = arith.truncf %5 : vector<16x32xf32> to vector<16x32xbf16>
    %c0_5 = arith.constant 0 : index
    %c0_6 = arith.constant 0 : index
    %7 = vector.load %arg5[%c0_5, %c0_6] : memref<16x32xbf16, #tpu.memory_space<vmem>>, vector<16x32xbf16>
    tpu.vector_store %arg5[%c0_5, %c0_6], %6 {strides = array<i32>} : memref<16x32xbf16, #tpu.memory_space<vmem>>, vector<16x32xbf16>,
    return
  }
  func.func @transform_0(%arg0: i32, %arg1: i32) -> (i32, i32) {
    %c0_i32 = arith.constant 0 : i32
    %c0_i32_0 = arith.constant 0 : i32
    return %arg1, %c0_i32 : i32, i32
  }
  func.func @transform_1(%arg0: i32, %arg1: i32) -> (i32, i32) {
    %c0_i32 = arith.constant 0 : i32
    %c0_i32_0 = arith.constant 0 : i32
    return %c0_i32, %arg0 : i32, i32
  }
  func.func @transform_2(%arg0: i32, %arg1: i32) -> (i32, i32) {
    %c0_i32 = arith.constant 0 : i32
    %c0_i32_0 = arith.constant 0 : i32
    return %c0_i32, %arg0 : i32, i32
  }
  func.func @transform_3(%arg0: i32, %arg1: i32) -> (i32, i32) {
    %c0_i32 = arith.constant 0 : i32
    return %arg1, %arg0 : i32, i32
  }
}

module attributes {stable_mosaic.version = 11 : i64} {
  func.func @_add_ln_kernel(%arg0: i32, %arg1: memref<16x32xbf16, #tpu.memory_space<vmem>>, %arg2: memref<16x32xbf16, #tpu.memory_space<vmem>>, %arg3: memref<1x32xf32, #tpu.memory_space<vmem>>, %arg4: memref<1x32xf32, #tpu.memory_space<vmem>>, %arg5: memref<16x32xbf16, #tpu.memory_space<vmem>>) attributes {dimension_semantics = [#tpu.dimension_semantics<parallel>], iteration_bounds = array<i64: 1>, scalar_prefetch = 0 : i64, scratch_operands = 0 : i64, tpu.core_type = #tpu.core_type<tc>, window_params = [{transform_indices = @transform_0, window_bounds = array<i64: 16, 32>}, {transform_indices = @transform_1, window_bounds = array<i64: 16, 32>}, {pipeline_mode = #tpu.pipeline_mode<synchronous>, transform_indices = @transform_2, window_bounds = array<i64: 1, 32>}, {pipeline_mode = #tpu.pipeline_mode<synchronous>, transform_indices = @transform_3, window_bounds = array<i64: 1, 32>}, {transform_indices = @transform_4, window_bounds = array<i64: 16, 32>}]} {
    %c0 = arith.constant 0 : index
    %c0_0 = arith.constant 0 : index
    %0 = vector.load %arg1[%c0, %c0_0] : memref<16x32xbf16, #tpu.memory_space<vmem>>, vector<16x32xbf16>
    %1 = arith.extf %0 : vector<16x32xbf16> to vector<16x32xf32>
    %c0_1 = arith.constant 0 : index
    %c0_2 = arith.constant 0 : index
    %2 = vector.load %arg2[%c0_1, %c0_2] : memref<16x32xbf16, #tpu.memory_space<vmem>>, vector<16x32xbf16>
    %3 = arith.extf %2 : vector<16x32xbf16> to vector<16x32xf32>
    %4 = arith.addf %1, %3 : vector<16x32xf32>
    %cst = arith.constant dense<0.000000e+00> : vector<16xf32>
    %5 = vector.multi_reduction <add>, %4, %cst [1] : vector<16x32xf32> to vector<16xf32>
    %6 = vector.shape_cast %5 : vector<16xf32> to vector<16x1xf32>
    %cst_3 = arith.constant 3.200000e+01 : f32
    %7 = vector.broadcast %cst_3 : f32 to vector<16x1xf32>
    %8 = arith.divf %6, %7 : vector<16x1xf32>
    %9 = vector.broadcast %8 : vector<16x1xf32> to vector<16x32xf32>
    %10 = arith.subf %4, %9 : vector<16x32xf32>
    %11 = arith.mulf %10, %10 : vector<16x32xf32>
    %cst_4 = arith.constant dense<0.000000e+00> : vector<16xf32>
    %12 = vector.multi_reduction <add>, %11, %cst_4 [1] : vector<16x32xf32> to vector<16xf32>
    %13 = vector.shape_cast %12 : vector<16xf32> to vector<16x1xf32>
    %cst_5 = arith.constant 3.200000e+01 : f32
    %14 = vector.broadcast %cst_5 : f32 to vector<16x1xf32>
    %15 = arith.divf %13, %14 : vector<16x1xf32>
    %16 = vector.broadcast %8 : vector<16x1xf32> to vector<16x32xf32>
    %17 = arith.subf %4, %16 : vector<16x32xf32>
    %cst_6 = arith.constant 9.99999974E-6 : f32
    %18 = vector.broadcast %cst_6 : f32 to vector<16x1xf32>
    %19 = arith.addf %15, %18 : vector<16x1xf32>
    %20 = math.rsqrt %19 : vector<16x1xf32>
    %21 = vector.broadcast %20 : vector<16x1xf32> to vector<16x32xf32>
    %22 = arith.mulf %17, %21 : vector<16x32xf32>
    %c0_7 = arith.constant 0 : index
    %c0_8 = arith.constant 0 : index
    %23 = vector.load %arg3[%c0_7, %c0_8] : memref<1x32xf32, #tpu.memory_space<vmem>>, vector<1x32xf32>
    %24 = vector.broadcast %23 : vector<1x32xf32> to vector<16x32xf32>
    %25 = arith.mulf %22, %24 : vector<16x32xf32>
    %c0_9 = arith.constant 0 : index
    %c0_10 = arith.constant 0 : index
    %26 = vector.load %arg4[%c0_9, %c0_10] : memref<1x32xf32, #tpu.memory_space<vmem>>, vector<1x32xf32>
    %27 = vector.broadcast %26 : vector<1x32xf32> to vector<16x32xf32>
    %28 = arith.addf %25, %27 : vector<16x32xf32>
    %29 = arith.truncf %28 : vector<16x32xf32> to vector<16x32xbf16>
    %c0_11 = arith.constant 0 : index
    %c0_12 = arith.constant 0 : index
    %30 = vector.load %arg5[%c0_11, %c0_12] : memref<16x32xbf16, #tpu.memory_space<vmem>>, vector<16x32xbf16>
    tpu.vector_store %arg5[%c0_11, %c0_12], %29 {strides = array<i32>} : memref<16x32xbf16, #tpu.memory_space<vmem>>, vector<16x32xbf16>,
    return
  }
  func.func @transform_0(%arg0: i32) -> (i32, i32) {
    %c0_i32 = arith.constant 0 : i32
    %c0_i32_0 = arith.constant 0 : i32
    return %arg0, %c0_i32 : i32, i32
  }
  func.func @transform_1(%arg0: i32) -> (i32, i32) {
    %c0_i32 = arith.constant 0 : i32
    %c0_i32_0 = arith.constant 0 : i32
    return %arg0, %c0_i32 : i32, i32
  }
  func.func @transform_2(%arg0: i32) -> (i32, i32) {
    %c0_i32 = arith.constant 0 : i32
    %c0_i32_0 = arith.constant 0 : i32
    %c0_i32_1 = arith.constant 0 : i32
    return %c0_i32, %c0_i32_0 : i32, i32
  }
  func.func @transform_3(%arg0: i32) -> (i32, i32) {
    %c0_i32 = arith.constant 0 : i32
    %c0_i32_0 = arith.constant 0 : i32
    %c0_i32_1 = arith.constant 0 : i32
    return %c0_i32, %c0_i32_0 : i32, i32
  }
  func.func @transform_4(%arg0: i32) -> (i32, i32) {
    %c0_i32 = arith.constant 0 : i32
    %c0_i32_0 = arith.constant 0 : i32
    return %arg0, %c0_i32 : i32, i32
  }
}

module attributes {stable_mosaic.version = 11 : i64} {
  func.func @_mha_kernel(%arg0: i32, %arg1: i32, %arg2: i32, %arg3: memref<1x8x32xbf16, #tpu.memory_space<vmem>>, %arg4: memref<1x8x64xbf16, #tpu.memory_space<vmem>>, %arg5: memref<1x1x8xf32, #tpu.memory_space<vmem>>, %arg6: memref<32x32xbf16, #tpu.memory_space<vmem>>, %arg7: memref<1x32xf32, #tpu.memory_space<vmem>>, %arg8: memref<1x8x32xbf16, #tpu.memory_space<vmem>>, %arg9: memref<4x8x1xf32, #tpu.memory_space<vmem>>, %arg10: memref<4x8x1xf32, #tpu.memory_space<vmem>>, %arg11: memref<8x32xf32, #tpu.memory_space<vmem>>) attributes {dimension_semantics = [#tpu.dimension_semantics<parallel>, #tpu.dimension_semantics<parallel>, #tpu.dimension_semantics<arbitrary>], iteration_bounds = array<i64: 2, 1, 1>, scalar_prefetch = 0 : i64, scratch_operands = 3 : i64, tpu.core_type = #tpu.core_type<tc>, window_params = [{transform_indices = @transform_0, window_bounds = array<i64: 1, 8, 32>}, {transform_indices = @transform_1, window_bounds = array<i64: 1, 8, 64>}, {transform_indices = @transform_2, window_bounds = array<i64: 1, 1, 8>}, {pipeline_mode = #tpu.pipeline_mode<synchronous>, transform_indices = @transform_3, window_bounds = array<i64: 32, 32>}, {pipeline_mode = #tpu.pipeline_mode<synchronous>, transform_indices = @transform_4, window_bounds = array<i64: 1, 32>}, {transform_indices = @transform_5, window_bounds = array<i64: 1, 8, 32>}]} {
    %c0_i32 = arith.constant 0 : i32
    %0 = arith.cmpi eq, %arg2, %c0_i32 : i32
    %1 = arith.extui %0 : i1 to i32
    %c0_i32_0 = arith.constant 0 : i32
    %2 = arith.cmpi ne, %1, %c0_i32_0 : i32
    scf.if %2 {
      %cst_115 = arith.constant 0xFF800000 : f32
      %174 = vector.broadcast %cst_115 : f32 to vector<4x8x1xf32>
      %c0_116 = arith.constant 0 : index
      %c0_117 = arith.constant 0 : index
      %c0_118 = arith.constant 0 : index
      %175 = vector.load %arg9[%c0_116, %c0_117, %c0_118] : memref<4x8x1xf32, #tpu.memory_space<vmem>>, vector<4x8x1xf32>
      tpu.vector_store %arg9[%c0_116, %c0_117, %c0_118], %174 {strides = array<i32>} : memref<4x8x1xf32, #tpu.memory_space<vmem>>, vector<4x8x1xf32>,
      %cst_119 = arith.constant 0.000000e+00 : f32
      %176 = vector.broadcast %cst_119 : f32 to vector<4x8x1xf32>
      %c0_120 = arith.constant 0 : index
      %c0_121 = arith.constant 0 : index
      %c0_122 = arith.constant 0 : index
      %177 = vector.load %arg10[%c0_120, %c0_121, %c0_122] : memref<4x8x1xf32, #tpu.memory_space<vmem>>, vector<4x8x1xf32>
      tpu.vector_store %arg10[%c0_120, %c0_121, %c0_122], %176 {strides = array<i32>} : memref<4x8x1xf32, #tpu.memory_space<vmem>>, vector<4x8x1xf32>,
      %cst_123 = arith.constant 0.000000e+00 : f32
      %178 = vector.broadcast %cst_123 : f32 to vector<8x32xf32>
      %c0_124 = arith.constant 0 : index
      %c0_125 = arith.constant 0 : index
      %179 = vector.load %arg11[%c0_124, %c0_125] : memref<8x32xf32, #tpu.memory_space<vmem>>, vector<8x32xf32>
      tpu.vector_store %arg11[%c0_124, %c0_125], %178 {strides = array<i32>} : memref<8x32xf32, #tpu.memory_space<vmem>>, vector<8x32xf32>,
    } else {
    }
    %c8_i32 = arith.constant 8 : i32
    %3 = arith.muli %arg2, %c8_i32 : i32
    %4 = tpu.iota {dimensions = array<i32: 1>} : vector<8x8xi32>
    %5 = vector.broadcast %3 : i32 to vector<8x8xi32>
    %6 = arith.addi %5, %4 : vector<8x8xi32>
    %c8_i32_1 = arith.constant 8 : i32
    %7 = vector.broadcast %c8_i32_1 : i32 to vector<8x8xi32>
    %8 = arith.cmpi sge, %6, %7 : vector<8x8xi32>
    %c0 = arith.constant 0 : index
    %c0_2 = arith.constant 0 : index
    %c0_3 = arith.constant 0 : index
    %9 = vector.load %arg5[%c0, %c0_2, %c0_3] : memref<1x1x8xf32, #tpu.memory_space<vmem>>, vector<1x1x8xf32>
    %10 = vector.shape_cast %9 : vector<1x1x8xf32> to vector<1x8xf32>
    %c0_4 = arith.constant 0 : index
    %c0_5 = arith.constant 0 : index
    %c0_6 = arith.constant 0 : index
    %11 = vector.load %arg3[%c0_4, %c0_5, %c0_6] : memref<1x8x32xbf16, #tpu.memory_space<vmem>>, vector<1x8x8xbf16>
    %12 = vector.shape_cast %11 : vector<1x8x8xbf16> to vector<8x8xbf16>
    %c0_7 = arith.constant 0 : index
    %c0_8 = arith.constant 0 : index
    %c0_9 = arith.constant 0 : index
    %13 = vector.load %arg4[%c0_7, %c0_8, %c0_9] : memref<1x8x64xbf16, #tpu.memory_space<vmem>>, vector<1x8x8xbf16>
    %14 = vector.shape_cast %13 : vector<1x8x8xbf16> to vector<8x8xbf16>
    %c0_10 = arith.constant 0 : index
    %c0_11 = arith.constant 0 : index
    %c32 = arith.constant 32 : index
    %15 = vector.load %arg4[%c0_10, %c0_11, %c32] : memref<1x8x64xbf16, #tpu.memory_space<vmem>>, vector<1x8x8xbf16>
    %16 = vector.shape_cast %15 : vector<1x8x8xbf16> to vector<8x8xbf16>
    %cst = arith.constant dense<0.000000e+00> : vector<8x8xf32>
    %17 = tpu.matmul %12, %14, %cst {dimension_numbers = #tpu.dot_dimension_numbers<[1], [1], [0], [0], [0, 0, 1, 0], [], []>} : vector<8x8xbf16>, vector<8x8xbf16>, vector<8x8xf32> -> vector<8x8xf32>
    %18 = vector.broadcast %10 : vector<1x8xf32> to vector<8x8xf32>
    %19 = arith.addf %17, %18 : vector<8x8xf32>
    %cst_12 = arith.constant -1.000000e+09 : f32
    %20 = vector.broadcast %cst_12 : f32 to vector<8x8xf32>
    %21 = arith.select %8, %20, %19 : vector<8x8xi1>, vector<8x8xf32>
    %c0_13 = arith.constant 0 : index
    %c0_14 = arith.constant 0 : index
    %c0_15 = arith.constant 0 : index
    %22 = vector.load %arg9[%c0_13, %c0_14, %c0_15] : memref<4x8x1xf32, #tpu.memory_space<vmem>>, vector<1x8x1xf32>
    %23 = vector.shape_cast %22 : vector<1x8x1xf32> to vector<8x1xf32>
    %cst_16 = arith.constant dense<0xFF800000> : vector<8xf32>
    %24 = vector.multi_reduction <maximumf>, %21, %cst_16 [1] : vector<8x8xf32> to vector<8xf32>
    %25 = vector.shape_cast %24 : vector<8xf32> to vector<8x1xf32>
    %26 = arith.maximumf %23, %25 : vector<8x1xf32>
    %27 = arith.subf %23, %26 : vector<8x1xf32>
    %28 = math.exp %27 : vector<8x1xf32>
    %29 = vector.broadcast %26 : vector<8x1xf32> to vector<8x8xf32>
    %30 = arith.subf %21, %29 : vector<8x8xf32>
    %31 = math.exp %30 : vector<8x8xf32>
    %c0_17 = arith.constant 0 : index
    %c0_18 = arith.constant 0 : index
    %c0_19 = arith.constant 0 : index
    %32 = vector.load %arg10[%c0_17, %c0_18, %c0_19] : memref<4x8x1xf32, #tpu.memory_space<vmem>>, vector<1x8x1xf32>
    %33 = vector.shape_cast %32 : vector<1x8x1xf32> to vector<8x1xf32>
    %34 = arith.mulf %28, %33 : vector<8x1xf32>
    %cst_20 = arith.constant dense<0.000000e+00> : vector<8xf32>
    %35 = vector.multi_reduction <add>, %31, %cst_20 [1] : vector<8x8xf32> to vector<8xf32>
    %36 = vector.shape_cast %35 : vector<8xf32> to vector<8x1xf32>
    %37 = arith.addf %34, %36 : vector<8x1xf32>
    %c0_21 = arith.constant 0 : index
    %c0_22 = arith.constant 0 : index
    %c0_23 = arith.constant 0 : index
    %38 = vector.load %arg10[%c0_21, %c0_22, %c0_23] : memref<4x8x1xf32, #tpu.memory_space<vmem>>, vector<1x8x1xf32>
    %39 = vector.shape_cast %38 : vector<1x8x1xf32> to vector<8x1xf32>
    %40 = vector.shape_cast %37 : vector<8x1xf32> to vector<1x8x1xf32>
    tpu.vector_store %arg10[%c0_21, %c0_22, %c0_23], %40 {strides = array<i32>} : memref<4x8x1xf32, #tpu.memory_space<vmem>>, vector<1x8x1xf32>,
    %c0_24 = arith.constant 0 : index
    %c0_25 = arith.constant 0 : index
    %41 = vector.load %arg11[%c0_24, %c0_25] : memref<8x32xf32, #tpu.memory_space<vmem>>, vector<8x8xf32>
    %42 = vector.broadcast %28 : vector<8x1xf32> to vector<8x8xf32>
    %43 = arith.mulf %42, %41 : vector<8x8xf32>
    %44 = arith.truncf %31 : vector<8x8xf32> to vector<8x8xbf16>
    %cst_26 = arith.constant dense<0.000000e+00> : vector<8x8xf32>
    %45 = tpu.matmul %44, %16, %cst_26 {dimension_numbers = #tpu.dot_dimension_numbers<[1], [0], [0], [1], [0, 0, 1, 1], [], []>} : vector<8x8xbf16>, vector<8x8xbf16>, vector<8x8xf32> -> vector<8x8xf32>
    %46 = arith.addf %43, %45 : vector<8x8xf32>
    %c0_27 = arith.constant 0 : index
    %c0_28 = arith.constant 0 : index
    %47 = vector.load %arg11[%c0_27, %c0_28] : memref<8x32xf32, #tpu.memory_space<vmem>>, vector<8x8xf32>
    tpu.vector_store %arg11[%c0_27, %c0_28], %46 {strides = array<i32>} : memref<8x32xf32, #tpu.memory_space<vmem>>, vector<8x8xf32>,
    %c0_29 = arith.constant 0 : index
    %c0_30 = arith.constant 0 : index
    %c0_31 = arith.constant 0 : index
    %48 = vector.load %arg9[%c0_29, %c0_30, %c0_31] : memref<4x8x1xf32, #tpu.memory_space<vmem>>, vector<1x8x1xf32>
    %49 = vector.shape_cast %48 : vector<1x8x1xf32> to vector<8x1xf32>
    %50 = vector.shape_cast %26 : vector<8x1xf32> to vector<1x8x1xf32>
    tpu.vector_store %arg9[%c0_29, %c0_30, %c0_31], %50 {strides = array<i32>} : memref<4x8x1xf32, #tpu.memory_space<vmem>>, vector<1x8x1xf32>,
    %c0_32 = arith.constant 0 : index
    %c0_33 = arith.constant 0 : index
    %c8 = arith.constant 8 : index
    %51 = vector.load %arg3[%c0_32, %c0_33, %c8] : memref<1x8x32xbf16, #tpu.memory_space<vmem>>, vector<1x8x8xbf16>
    %52 = vector.shape_cast %51 : vector<1x8x8xbf16> to vector<8x8xbf16>
    %c0_34 = arith.constant 0 : index
    %c0_35 = arith.constant 0 : index
    %c8_36 = arith.constant 8 : index
    %53 = vector.load %arg4[%c0_34, %c0_35, %c8_36] : memref<1x8x64xbf16, #tpu.memory_space<vmem>>, vector<1x8x8xbf16>
    %54 = vector.shape_cast %53 : vector<1x8x8xbf16> to vector<8x8xbf16>
    %c0_37 = arith.constant 0 : index
    %c0_38 = arith.constant 0 : index
    %c40 = arith.constant 40 : index
    %55 = vector.load %arg4[%c0_37, %c0_38, %c40] : memref<1x8x64xbf16, #tpu.memory_space<vmem>>, vector<1x8x8xbf16>
    %56 = vector.shape_cast %55 : vector<1x8x8xbf16> to vector<8x8xbf16>
    %cst_39 = arith.constant dense<0.000000e+00> : vector<8x8xf32>
    %57 = tpu.matmul %52, %54, %cst_39 {dimension_numbers = #tpu.dot_dimension_numbers<[1], [1], [0], [0], [0, 0, 1, 0], [], []>} : vector<8x8xbf16>, vector<8x8xbf16>, vector<8x8xf32> -> vector<8x8xf32>
    %58 = vector.broadcast %10 : vector<1x8xf32> to vector<8x8xf32>
    %59 = arith.addf %57, %58 : vector<8x8xf32>
    %cst_40 = arith.constant -1.000000e+09 : f32
    %60 = vector.broadcast %cst_40 : f32 to vector<8x8xf32>
    %61 = arith.select %8, %60, %59 : vector<8x8xi1>, vector<8x8xf32>
    %c1 = arith.constant 1 : index
    %c0_41 = arith.constant 0 : index
    %c0_42 = arith.constant 0 : index
    %62 = vector.load %arg9[%c1, %c0_41, %c0_42] : memref<4x8x1xf32, #tpu.memory_space<vmem>>, vector<1x8x1xf32>
    %63 = vector.shape_cast %62 : vector<1x8x1xf32> to vector<8x1xf32>
    %cst_43 = arith.constant dense<0xFF800000> : vector<8xf32>
    %64 = vector.multi_reduction <maximumf>, %61, %cst_43 [1] : vector<8x8xf32> to vector<8xf32>
    %65 = vector.shape_cast %64 : vector<8xf32> to vector<8x1xf32>
    %66 = arith.maximumf %63, %65 : vector<8x1xf32>
    %67 = arith.subf %63, %66 : vector<8x1xf32>
    %68 = math.exp %67 : vector<8x1xf32>
    %69 = vector.broadcast %66 : vector<8x1xf32> to vector<8x8xf32>
    %70 = arith.subf %61, %69 : vector<8x8xf32>
    %71 = math.exp %70 : vector<8x8xf32>
    %c1_44 = arith.constant 1 : index
    %c0_45 = arith.constant 0 : index
    %c0_46 = arith.constant 0 : index
    %72 = vector.load %arg10[%c1_44, %c0_45, %c0_46] : memref<4x8x1xf32, #tpu.memory_space<vmem>>, vector<1x8x1xf32>
    %73 = vector.shape_cast %72 : vector<1x8x1xf32> to vector<8x1xf32>
    %74 = arith.mulf %68, %73 : vector<8x1xf32>
    %cst_47 = arith.constant dense<0.000000e+00> : vector<8xf32>
    %75 = vector.multi_reduction <add>, %71, %cst_47 [1] : vector<8x8xf32> to vector<8xf32>
    %76 = vector.shape_cast %75 : vector<8xf32> to vector<8x1xf32>
    %77 = arith.addf %74, %76 : vector<8x1xf32>
    %c1_48 = arith.constant 1 : index
    %c0_49 = arith.constant 0 : index
    %c0_50 = arith.constant 0 : index
    %78 = vector.load %arg10[%c1_48, %c0_49, %c0_50] : memref<4x8x1xf32, #tpu.memory_space<vmem>>, vector<1x8x1xf32>
    %79 = vector.shape_cast %78 : vector<1x8x1xf32> to vector<8x1xf32>
    %80 = vector.shape_cast %77 : vector<8x1xf32> to vector<1x8x1xf32>
    tpu.vector_store %arg10[%c1_48, %c0_49, %c0_50], %80 {strides = array<i32>} : memref<4x8x1xf32, #tpu.memory_space<vmem>>, vector<1x8x1xf32>,
    %c0_51 = arith.constant 0 : index
    %c8_52 = arith.constant 8 : index
    %81 = vector.load %arg11[%c0_51, %c8_52] : memref<8x32xf32, #tpu.memory_space<vmem>>, vector<8x8xf32>
    %82 = vector.broadcast %68 : vector<8x1xf32> to vector<8x8xf32>
    %83 = arith.mulf %82, %81 : vector<8x8xf32>
    %84 = arith.truncf %71 : vector<8x8xf32> to vector<8x8xbf16>
    %cst_53 = arith.constant dense<0.000000e+00> : vector<8x8xf32>
    %85 = tpu.matmul %84, %56, %cst_53 {dimension_numbers = #tpu.dot_dimension_numbers<[1], [0], [0], [1], [0, 0, 1, 1], [], []>} : vector<8x8xbf16>, vector<8x8xbf16>, vector<8x8xf32> -> vector<8x8xf32>
    %86 = arith.addf %83, %85 : vector<8x8xf32>
    %c0_54 = arith.constant 0 : index
    %c8_55 = arith.constant 8 : index
    %87 = vector.load %arg11[%c0_54, %c8_55] : memref<8x32xf32, #tpu.memory_space<vmem>>, vector<8x8xf32>
    tpu.vector_store %arg11[%c0_54, %c8_55], %86 {strides = array<i32>} : memref<8x32xf32, #tpu.memory_space<vmem>>, vector<8x8xf32>,
    %c1_56 = arith.constant 1 : index
    %c0_57 = arith.constant 0 : index
    %c0_58 = arith.constant 0 : index
    %88 = vector.load %arg9[%c1_56, %c0_57, %c0_58] : memref<4x8x1xf32, #tpu.memory_space<vmem>>, vector<1x8x1xf32>
    %89 = vector.shape_cast %88 : vector<1x8x1xf32> to vector<8x1xf32>
    %90 = vector.shape_cast %66 : vector<8x1xf32> to vector<1x8x1xf32>
    tpu.vector_store %arg9[%c1_56, %c0_57, %c0_58], %90 {strides = array<i32>} : memref<4x8x1xf32, #tpu.memory_space<vmem>>, vector<1x8x1xf32>,
    %c0_59 = arith.constant 0 : index
    %c0_60 = arith.constant 0 : index
    %c16 = arith.constant 16 : index
    %91 = vector.load %arg3[%c0_59, %c0_60, %c16] : memref<1x8x32xbf16, #tpu.memory_space<vmem>>, vector<1x8x8xbf16>
    %92 = vector.shape_cast %91 : vector<1x8x8xbf16> to vector<8x8xbf16>
    %c0_61 = arith.constant 0 : index
    %c0_62 = arith.constant 0 : index
    %c16_63 = arith.constant 16 : index
    %93 = vector.load %arg4[%c0_61, %c0_62, %c16_63] : memref<1x8x64xbf16, #tpu.memory_space<vmem>>, vector<1x8x8xbf16>
    %94 = vector.shape_cast %93 : vector<1x8x8xbf16> to vector<8x8xbf16>
    %c0_64 = arith.constant 0 : index
    %c0_65 = arith.constant 0 : index
    %c48 = arith.constant 48 : index
    %95 = vector.load %arg4[%c0_64, %c0_65, %c48] : memref<1x8x64xbf16, #tpu.memory_space<vmem>>, vector<1x8x8xbf16>
    %96 = vector.shape_cast %95 : vector<1x8x8xbf16> to vector<8x8xbf16>
    %cst_66 = arith.constant dense<0.000000e+00> : vector<8x8xf32>
    %97 = tpu.matmul %92, %94, %cst_66 {dimension_numbers = #tpu.dot_dimension_numbers<[1], [1], [0], [0], [0, 0, 1, 0], [], []>} : vector<8x8xbf16>, vector<8x8xbf16>, vector<8x8xf32> -> vector<8x8xf32>
    %98 = vector.broadcast %10 : vector<1x8xf32> to vector<8x8xf32>
    %99 = arith.addf %97, %98 : vector<8x8xf32>
    %cst_67 = arith.constant -1.000000e+09 : f32
    %100 = vector.broadcast %cst_67 : f32 to vector<8x8xf32>
    %101 = arith.select %8, %100, %99 : vector<8x8xi1>, vector<8x8xf32>
    %c2 = arith.constant 2 : index
    %c0_68 = arith.constant 0 : index
    %c0_69 = arith.constant 0 : index
    %102 = vector.load %arg9[%c2, %c0_68, %c0_69] : memref<4x8x1xf32, #tpu.memory_space<vmem>>, vector<1x8x1xf32>
    %103 = vector.shape_cast %102 : vector<1x8x1xf32> to vector<8x1xf32>
    %cst_70 = arith.constant dense<0xFF800000> : vector<8xf32>
    %104 = vector.multi_reduction <maximumf>, %101, %cst_70 [1] : vector<8x8xf32> to vector<8xf32>
    %105 = vector.shape_cast %104 : vector<8xf32> to vector<8x1xf32>
    %106 = arith.maximumf %103, %105 : vector<8x1xf32>
    %107 = arith.subf %103, %106 : vector<8x1xf32>
    %108 = math.exp %107 : vector<8x1xf32>
    %109 = vector.broadcast %106 : vector<8x1xf32> to vector<8x8xf32>
    %110 = arith.subf %101, %109 : vector<8x8xf32>
    %111 = math.exp %110 : vector<8x8xf32>
    %c2_71 = arith.constant 2 : index
    %c0_72 = arith.constant 0 : index
    %c0_73 = arith.constant 0 : index
    %112 = vector.load %arg10[%c2_71, %c0_72, %c0_73] : memref<4x8x1xf32, #tpu.memory_space<vmem>>, vector<1x8x1xf32>
    %113 = vector.shape_cast %112 : vector<1x8x1xf32> to vector<8x1xf32>
    %114 = arith.mulf %108, %113 : vector<8x1xf32>
    %cst_74 = arith.constant dense<0.000000e+00> : vector<8xf32>
    %115 = vector.multi_reduction <add>, %111, %cst_74 [1] : vector<8x8xf32> to vector<8xf32>
    %116 = vector.shape_cast %115 : vector<8xf32> to vector<8x1xf32>
    %117 = arith.addf %114, %116 : vector<8x1xf32>
    %c2_75 = arith.constant 2 : index
    %c0_76 = arith.constant 0 : index
    %c0_77 = arith.constant 0 : index
    %118 = vector.load %arg10[%c2_75, %c0_76, %c0_77] : memref<4x8x1xf32, #tpu.memory_space<vmem>>, vector<1x8x1xf32>
    %119 = vector.shape_cast %118 : vector<1x8x1xf32> to vector<8x1xf32>
    %120 = vector.shape_cast %117 : vector<8x1xf32> to vector<1x8x1xf32>
    tpu.vector_store %arg10[%c2_75, %c0_76, %c0_77], %120 {strides = array<i32>} : memref<4x8x1xf32, #tpu.memory_space<vmem>>, vector<1x8x1xf32>,
    %c0_78 = arith.constant 0 : index
    %c16_79 = arith.constant 16 : index
    %121 = vector.load %arg11[%c0_78, %c16_79] : memref<8x32xf32, #tpu.memory_space<vmem>>, vector<8x8xf32>
    %122 = vector.broadcast %108 : vector<8x1xf32> to vector<8x8xf32>
    %123 = arith.mulf %122, %121 : vector<8x8xf32>
    %124 = arith.truncf %111 : vector<8x8xf32> to vector<8x8xbf16>
    %cst_80 = arith.constant dense<0.000000e+00> : vector<8x8xf32>
    %125 = tpu.matmul %124, %96, %cst_80 {dimension_numbers = #tpu.dot_dimension_numbers<[1], [0], [0], [1], [0, 0, 1, 1], [], []>} : vector<8x8xbf16>, vector<8x8xbf16>, vector<8x8xf32> -> vector<8x8xf32>
    %126 = arith.addf %123, %125 : vector<8x8xf32>
    %c0_81 = arith.constant 0 : index
    %c16_82 = arith.constant 16 : index
    %127 = vector.load %arg11[%c0_81, %c16_82] : memref<8x32xf32, #tpu.memory_space<vmem>>, vector<8x8xf32>
    tpu.vector_store %arg11[%c0_81, %c16_82], %126 {strides = array<i32>} : memref<8x32xf32, #tpu.memory_space<vmem>>, vector<8x8xf32>,
    %c2_83 = arith.constant 2 : index
    %c0_84 = arith.constant 0 : index
    %c0_85 = arith.constant 0 : index
    %128 = vector.load %arg9[%c2_83, %c0_84, %c0_85] : memref<4x8x1xf32, #tpu.memory_space<vmem>>, vector<1x8x1xf32>
    %129 = vector.shape_cast %128 : vector<1x8x1xf32> to vector<8x1xf32>
    %130 = vector.shape_cast %106 : vector<8x1xf32> to vector<1x8x1xf32>
    tpu.vector_store %arg9[%c2_83, %c0_84, %c0_85], %130 {strides = array<i32>} : memref<4x8x1xf32, #tpu.memory_space<vmem>>, vector<1x8x1xf32>,
    %c0_86 = arith.constant 0 : index
    %c0_87 = arith.constant 0 : index
    %c24 = arith.constant 24 : index
    %131 = vector.load %arg3[%c0_86, %c0_87, %c24] : memref<1x8x32xbf16, #tpu.memory_space<vmem>>, vector<1x8x8xbf16>
    %132 = vector.shape_cast %131 : vector<1x8x8xbf16> to vector<8x8xbf16>
    %c0_88 = arith.constant 0 : index
    %c0_89 = arith.constant 0 : index
    %c24_90 = arith.constant 24 : index
    %133 = vector.load %arg4[%c0_88, %c0_89, %c24_90] : memref<1x8x64xbf16, #tpu.memory_space<vmem>>, vector<1x8x8xbf16>
    %134 = vector.shape_cast %133 : vector<1x8x8xbf16> to vector<8x8xbf16>
    %c0_91 = arith.constant 0 : index
    %c0_92 = arith.constant 0 : index
    %c56 = arith.constant 56 : index
    %135 = vector.load %arg4[%c0_91, %c0_92, %c56] : memref<1x8x64xbf16, #tpu.memory_space<vmem>>, vector<1x8x8xbf16>
    %136 = vector.shape_cast %135 : vector<1x8x8xbf16> to vector<8x8xbf16>
    %cst_93 = arith.constant dense<0.000000e+00> : vector<8x8xf32>
    %137 = tpu.matmul %132, %134, %cst_93 {dimension_numbers = #tpu.dot_dimension_numbers<[1], [1], [0], [0], [0, 0, 1, 0], [], []>} : vector<8x8xbf16>, vector<8x8xbf16>, vector<8x8xf32> -> vector<8x8xf32>
    %138 = vector.broadcast %10 : vector<1x8xf32> to vector<8x8xf32>
    %139 = arith.addf %137, %138 : vector<8x8xf32>
    %cst_94 = arith.constant -1.000000e+09 : f32
    %140 = vector.broadcast %cst_94 : f32 to vector<8x8xf32>
    %141 = arith.select %8, %140, %139 : vector<8x8xi1>, vector<8x8xf32>
    %c3 = arith.constant 3 : index
    %c0_95 = arith.constant 0 : index
    %c0_96 = arith.constant 0 : index
    %142 = vector.load %arg9[%c3, %c0_95, %c0_96] : memref<4x8x1xf32, #tpu.memory_space<vmem>>, vector<1x8x1xf32>
    %143 = vector.shape_cast %142 : vector<1x8x1xf32> to vector<8x1xf32>
    %cst_97 = arith.constant dense<0xFF800000> : vector<8xf32>
    %144 = vector.multi_reduction <maximumf>, %141, %cst_97 [1] : vector<8x8xf32> to vector<8xf32>
    %145 = vector.shape_cast %144 : vector<8xf32> to vector<8x1xf32>
    %146 = arith.maximumf %143, %145 : vector<8x1xf32>
    %147 = arith.subf %143, %146 : vector<8x1xf32>
    %148 = math.exp %147 : vector<8x1xf32>
    %149 = vector.broadcast %146 : vector<8x1xf32> to vector<8x8xf32>
    %150 = arith.subf %141, %149 : vector<8x8xf32>
    %151 = math.exp %150 : vector<8x8xf32>
    %c3_98 = arith.constant 3 : index
    %c0_99 = arith.constant 0 : index
    %c0_100 = arith.constant 0 : index
    %152 = vector.load %arg10[%c3_98, %c0_99, %c0_100] : memref<4x8x1xf32, #tpu.memory_space<vmem>>, vector<1x8x1xf32>
    %153 = vector.shape_cast %152 : vector<1x8x1xf32> to vector<8x1xf32>
    %154 = arith.mulf %148, %153 : vector<8x1xf32>
    %cst_101 = arith.constant dense<0.000000e+00> : vector<8xf32>
    %155 = vector.multi_reduction <add>, %151, %cst_101 [1] : vector<8x8xf32> to vector<8xf32>
    %156 = vector.shape_cast %155 : vector<8xf32> to vector<8x1xf32>
    %157 = arith.addf %154, %156 : vector<8x1xf32>
    %c3_102 = arith.constant 3 : index
    %c0_103 = arith.constant 0 : index
    %c0_104 = arith.constant 0 : index
    %158 = vector.load %arg10[%c3_102, %c0_103, %c0_104] : memref<4x8x1xf32, #tpu.memory_space<vmem>>, vector<1x8x1xf32>
    %159 = vector.shape_cast %158 : vector<1x8x1xf32> to vector<8x1xf32>
    %160 = vector.shape_cast %157 : vector<8x1xf32> to vector<1x8x1xf32>
    tpu.vector_store %arg10[%c3_102, %c0_103, %c0_104], %160 {strides = array<i32>} : memref<4x8x1xf32, #tpu.memory_space<vmem>>, vector<1x8x1xf32>,
    %c0_105 = arith.constant 0 : index
    %c24_106 = arith.constant 24 : index
    %161 = vector.load %arg11[%c0_105, %c24_106] : memref<8x32xf32, #tpu.memory_space<vmem>>, vector<8x8xf32>
    %162 = vector.broadcast %148 : vector<8x1xf32> to vector<8x8xf32>
    %163 = arith.mulf %162, %161 : vector<8x8xf32>
    %164 = arith.truncf %151 : vector<8x8xf32> to vector<8x8xbf16>
    %cst_107 = arith.constant dense<0.000000e+00> : vector<8x8xf32>
    %165 = tpu.matmul %164, %136, %cst_107 {dimension_numbers = #tpu.dot_dimension_numbers<[1], [0], [0], [1], [0, 0, 1, 1], [], []>} : vector<8x8xbf16>, vector<8x8xbf16>, vector<8x8xf32> -> vector<8x8xf32>
    %166 = arith.addf %163, %165 : vector<8x8xf32>
    %c0_108 = arith.constant 0 : index
    %c24_109 = arith.constant 24 : index
    %167 = vector.load %arg11[%c0_108, %c24_109] : memref<8x32xf32, #tpu.memory_space<vmem>>, vector<8x8xf32>
    tpu.vector_store %arg11[%c0_108, %c24_109], %166 {strides = array<i32>} : memref<8x32xf32, #tpu.memory_space<vmem>>, vector<8x8xf32>,
    %c3_110 = arith.constant 3 : index
    %c0_111 = arith.constant 0 : index
    %c0_112 = arith.constant 0 : index
    %168 = vector.load %arg9[%c3_110, %c0_111, %c0_112] : memref<4x8x1xf32, #tpu.memory_space<vmem>>, vector<1x8x1xf32>
    %169 = vector.shape_cast %168 : vector<1x8x1xf32> to vector<8x1xf32>
    %170 = vector.shape_cast %146 : vector<8x1xf32> to vector<1x8x1xf32>
    tpu.vector_store %arg9[%c3_110, %c0_111, %c0_112], %170 {strides = array<i32>} : memref<4x8x1xf32, #tpu.memory_space<vmem>>, vector<1x8x1xf32>,
    %c0_i32_113 = arith.constant 0 : i32
    %171 = arith.cmpi eq, %arg2, %c0_i32_113 : i32
    %172 = arith.extui %171 : i1 to i32
    %c0_i32_114 = arith.constant 0 : i32
    %173 = arith.cmpi ne, %172, %c0_i32_114 : i32
    scf.if %173 {
      %c0_115 = arith.constant 0 : index
      %c0_116 = arith.constant 0 : index
      %c0_117 = arith.constant 0 : index
      %174 = vector.load %arg10[%c0_115, %c0_116, %c0_117] : memref<4x8x1xf32, #tpu.memory_space<vmem>>, vector<1x8x1xf32>
      %175 = vector.shape_cast %174 : vector<1x8x1xf32> to vector<8x1xf32>
      %176 = tpu.reciprocal %175 {approx = true} : vector<8x1xf32> -> vector<8x1xf32>
      %c0_118 = arith.constant 0 : index
      %c0_119 = arith.constant 0 : index
      %177 = vector.load %arg11[%c0_118, %c0_119] : memref<8x32xf32, #tpu.memory_space<vmem>>, vector<8x8xf32>
      %178 = vector.broadcast %176 : vector<8x1xf32> to vector<8x8xf32>
      %179 = arith.mulf %177, %178 : vector<8x8xf32>
      %c0_120 = arith.constant 0 : index
      %c0_121 = arith.constant 0 : index
      %180 = vector.load %arg11[%c0_120, %c0_121] : memref<8x32xf32, #tpu.memory_space<vmem>>, vector<8x8xf32>
      tpu.vector_store %arg11[%c0_120, %c0_121], %179 {strides = array<i32>} : memref<8x32xf32, #tpu.memory_space<vmem>>, vector<8x8xf32>,
      %c1_122 = arith.constant 1 : index
      %c0_123 = arith.constant 0 : index
      %c0_124 = arith.constant 0 : index
      %181 = vector.load %arg10[%c1_122, %c0_123, %c0_124] : memref<4x8x1xf32, #tpu.memory_space<vmem>>, vector<1x8x1xf32>
      %182 = vector.shape_cast %181 : vector<1x8x1xf32> to vector<8x1xf32>
      %183 = tpu.reciprocal %182 {approx = true} : vector<8x1xf32> -> vector<8x1xf32>
      %c0_125 = arith.constant 0 : index
      %c8_126 = arith.constant 8 : index
      %184 = vector.load %arg11[%c0_125, %c8_126] : memref<8x32xf32, #tpu.memory_space<vmem>>, vector<8x8xf32>
      %185 = vector.broadcast %183 : vector<8x1xf32> to vector<8x8xf32>
      %186 = arith.mulf %184, %185 : vector<8x8xf32>
      %c0_127 = arith.constant 0 : index
      %c8_128 = arith.constant 8 : index
      %187 = vector.load %arg11[%c0_127, %c8_128] : memref<8x32xf32, #tpu.memory_space<vmem>>, vector<8x8xf32>
      tpu.vector_store %arg11[%c0_127, %c8_128], %186 {strides = array<i32>} : memref<8x32xf32, #tpu.memory_space<vmem>>, vector<8x8xf32>,
      %c2_129 = arith.constant 2 : index
      %c0_130 = arith.constant 0 : index
      %c0_131 = arith.constant 0 : index
      %188 = vector.load %arg10[%c2_129, %c0_130, %c0_131] : memref<4x8x1xf32, #tpu.memory_space<vmem>>, vector<1x8x1xf32>
      %189 = vector.shape_cast %188 : vector<1x8x1xf32> to vector<8x1xf32>
      %190 = tpu.reciprocal %189 {approx = true} : vector<8x1xf32> -> vector<8x1xf32>
      %c0_132 = arith.constant 0 : index
      %c16_133 = arith.constant 16 : index
      %191 = vector.load %arg11[%c0_132, %c16_133] : memref<8x32xf32, #tpu.memory_space<vmem>>, vector<8x8xf32>
      %192 = vector.broadcast %190 : vector<8x1xf32> to vector<8x8xf32>
      %193 = arith.mulf %191, %192 : vector<8x8xf32>
      %c0_134 = arith.constant 0 : index
      %c16_135 = arith.constant 16 : index
      %194 = vector.load %arg11[%c0_134, %c16_135] : memref<8x32xf32, #tpu.memory_space<vmem>>, vector<8x8xf32>
      tpu.vector_store %arg11[%c0_134, %c16_135], %193 {strides = array<i32>} : memref<8x32xf32, #tpu.memory_space<vmem>>, vector<8x8xf32>,
      %c3_136 = arith.constant 3 : index
      %c0_137 = arith.constant 0 : index
      %c0_138 = arith.constant 0 : index
      %195 = vector.load %arg10[%c3_136, %c0_137, %c0_138] : memref<4x8x1xf32, #tpu.memory_space<vmem>>, vector<1x8x1xf32>
      %196 = vector.shape_cast %195 : vector<1x8x1xf32> to vector<8x1xf32>
      %197 = tpu.reciprocal %196 {approx = true} : vector<8x1xf32> -> vector<8x1xf32>
      %c0_139 = arith.constant 0 : index
      %c24_140 = arith.constant 24 : index
      %198 = vector.load %arg11[%c0_139, %c24_140] : memref<8x32xf32, #tpu.memory_space<vmem>>, vector<8x8xf32>
      %199 = vector.broadcast %197 : vector<8x1xf32> to vector<8x8xf32>
      %200 = arith.mulf %198, %199 : vector<8x8xf32>
      %c0_141 = arith.constant 0 : index
      %c24_142 = arith.constant 24 : index
      %201 = vector.load %arg11[%c0_141, %c24_142] : memref<8x32xf32, #tpu.memory_space<vmem>>, vector<8x8xf32>
      tpu.vector_store %arg11[%c0_141, %c24_142], %200 {strides = array<i32>} : memref<8x32xf32, #tpu.memory_space<vmem>>, vector<8x8xf32>,
      %c0_143 = arith.constant 0 : index
      %c0_144 = arith.constant 0 : index
      %202 = vector.load %arg11[%c0_143, %c0_144] : memref<8x32xf32, #tpu.memory_space<vmem>>, vector<8x32xf32>
      %203 = arith.truncf %202 : vector<8x32xf32> to vector<8x32xbf16>
      %c0_145 = arith.constant 0 : index
      %c0_146 = arith.constant 0 : index
      %204 = vector.load %arg6[%c0_145, %c0_146] : memref<32x32xbf16, #tpu.memory_space<vmem>>, vector<32x32xbf16>
      %cst_147 = arith.constant dense<0.000000e+00> : vector<8x32xf32>
      %205 = tpu.matmul %203, %204, %cst_147 {dimension_numbers = #tpu.dot_dimension_numbers<[1], [0], [0], [1], [0, 0, 1, 1], [], []>} : vector<8x32xbf16>, vector<32x32xbf16>, vector<8x32xf32> -> vector<8x32xf32>
      %c0_148 = arith.constant 0 : index
      %c0_149 = arith.constant 0 : index
      %206 = vector.load %arg7[%c0_148, %c0_149] : memref<1x32xf32, #tpu.memory_space<vmem>>, vector<1x32xf32>
      %207 = vector.broadcast %206 : vector<1x32xf32> to vector<8x32xf32>
      %208 = arith.addf %205, %207 : vector<8x32xf32>
      %209 = arith.truncf %208 : vector<8x32xf32> to vector<8x32xbf16>
      %c0_150 = arith.constant 0 : index
      %c0_151 = arith.constant 0 : index
      %c0_152 = arith.constant 0 : index
      %210 = vector.load %arg8[%c0_150, %c0_151, %c0_152] : memref<1x8x32xbf16, #tpu.memory_space<vmem>>, vector<1x8x32xbf16>
      %211 = vector.shape_cast %210 : vector<1x8x32xbf16> to vector<8x32xbf16>
      %212 = vector.shape_cast %209 : vector<8x32xbf16> to vector<1x8x32xbf16>
      tpu.vector_store %arg8[%c0_150, %c0_151, %c0_152], %212 {strides = array<i32>} : memref<1x8x32xbf16, #tpu.memory_space<vmem>>, vector<1x8x32xbf16>,
    } else {
    }
    return
  }
  func.func @transform_0(%arg0: i32, %arg1: i32, %arg2: i32) -> (i32, i32, i32) {
    %c0_i32 = arith.constant 0 : i32
    %c0_i32_0 = arith.constant 0 : i32
    return %arg0, %arg1, %c0_i32 : i32, i32, i32
  }
  func.func @transform_1(%arg0: i32, %arg1: i32, %arg2: i32) -> (i32, i32, i32) {
    %c0_i32 = arith.constant 0 : i32
    %c0_i32_0 = arith.constant 0 : i32
    return %arg0, %arg2, %c0_i32 : i32, i32, i32
  }
  func.func @transform_2(%arg0: i32, %arg1: i32, %arg2: i32) -> (i32, i32, i32) {
    %c0_i32 = arith.constant 0 : i32
    %c0_i32_0 = arith.constant 0 : i32
    return %arg0, %c0_i32, %arg2 : i32, i32, i32
  }
  func.func @transform_3(%arg0: i32, %arg1: i32, %arg2: i32) -> (i32, i32) {
    %c0_i32 = arith.constant 0 : i32
    %c0_i32_0 = arith.constant 0 : i32
    %c0_i32_1 = arith.constant 0 : i32
    return %c0_i32, %c0_i32_0 : i32, i32
  }
  func.func @transform_4(%arg0: i32, %arg1: i32, %arg2: i32) -> (i32, i32) {
    %c0_i32 = arith.constant 0 : i32
    %c0_i32_0 = arith.constant 0 : i32
    %c0_i32_1 = arith.constant 0 : i32
    return %c0_i32, %c0_i32_0 : i32, i32
  }
  func.func @transform_5(%arg0: i32, %arg1: i32, %arg2: i32) -> (i32, i32, i32) {
    %c0_i32 = arith.constant 0 : i32
    %c0_i32_0 = arith.constant 0 : i32
    return %arg0, %arg1, %c0_i32 : i32, i32, i32
  }
}

module attributes {stable_mosaic.version = 11 : i64} {
  func.func @_ffn_kernel(%arg0: i32, %arg1: memref<16x32xbf16, #tpu.memory_space<vmem>>, %arg2: memref<32x64xbf16, #tpu.memory_space<vmem>>, %arg3: memref<1x64xf32, #tpu.memory_space<vmem>>, %arg4: memref<64x32xbf16, #tpu.memory_space<vmem>>, %arg5: memref<1x32xf32, #tpu.memory_space<vmem>>, %arg6: memref<16x32xbf16, #tpu.memory_space<vmem>>) attributes {dimension_semantics = [#tpu.dimension_semantics<parallel>], iteration_bounds = array<i64: 1>, scalar_prefetch = 0 : i64, scratch_operands = 0 : i64, tpu.core_type = #tpu.core_type<tc>, window_params = [{transform_indices = @transform_0, window_bounds = array<i64: 16, 32>}, {pipeline_mode = #tpu.pipeline_mode<synchronous>, transform_indices = @transform_1, window_bounds = array<i64: 32, 64>}, {pipeline_mode = #tpu.pipeline_mode<synchronous>, transform_indices = @transform_2, window_bounds = array<i64: 1, 64>}, {pipeline_mode = #tpu.pipeline_mode<synchronous>, transform_indices = @transform_3, window_bounds = array<i64: 64, 32>}, {pipeline_mode = #tpu.pipeline_mode<synchronous>, transform_indices = @transform_4, window_bounds = array<i64: 1, 32>}, {transform_indices = @transform_5, window_bounds = array<i64: 16, 32>}]} {
    %c0 = arith.constant 0 : index
    %c0_0 = arith.constant 0 : index
    %0 = vector.load %arg1[%c0, %c0_0] : memref<16x32xbf16, #tpu.memory_space<vmem>>, vector<16x32xbf16>
    %c0_1 = arith.constant 0 : index
    %c0_2 = arith.constant 0 : index
    %1 = vector.load %arg2[%c0_1, %c0_2] : memref<32x64xbf16, #tpu.memory_space<vmem>>, vector<32x64xbf16>
    %cst = arith.constant dense<0.000000e+00> : vector<16x64xf32>
    %2 = tpu.matmul %0, %1, %cst {dimension_numbers = #tpu.dot_dimension_numbers<[1], [0], [0], [1], [0, 0, 1, 1], [], []>} : vector<16x32xbf16>, vector<32x64xbf16>, vector<16x64xf32> -> vector<16x64xf32>
    %c0_3 = arith.constant 0 : index
    %c0_4 = arith.constant 0 : index
    %3 = vector.load %arg3[%c0_3, %c0_4] : memref<1x64xf32, #tpu.memory_space<vmem>>, vector<1x64xf32>
    %4 = vector.broadcast %3 : vector<1x64xf32> to vector<16x64xf32>
    %5 = arith.addf %2, %4 : vector<16x64xf32>
    %cst_5 = arith.constant 0.000000e+00 : f32
    %6 = vector.broadcast %cst_5 : f32 to vector<16x64xf32>
    %7 = arith.maximumf %5, %6 : vector<16x64xf32>
    %8 = arith.truncf %7 : vector<16x64xf32> to vector<16x64xbf16>
    %c0_6 = arith.constant 0 : index
    %c0_7 = arith.constant 0 : index
    %9 = vector.load %arg4[%c0_6, %c0_7] : memref<64x32xbf16, #tpu.memory_space<vmem>>, vector<64x32xbf16>
    %cst_8 = arith.constant dense<0.000000e+00> : vector<16x32xf32>
    %10 = tpu.matmul %8, %9, %cst_8 {dimension_numbers = #tpu.dot_dimension_numbers<[1], [0], [0], [1], [0, 0, 1, 1], [], []>} : vector<16x64xbf16>, vector<64x32xbf16>, vector<16x32xf32> -> vector<16x32xf32>
    %c0_9 = arith.constant 0 : index
    %c0_10 = arith.constant 0 : index
    %11 = vector.load %arg5[%c0_9, %c0_10] : memref<1x32xf32, #tpu.memory_space<vmem>>, vector<1x32xf32>
    %12 = vector.broadcast %11 : vector<1x32xf32> to vector<16x32xf32>
    %13 = arith.addf %10, %12 : vector<16x32xf32>
    %14 = arith.truncf %13 : vector<16x32xf32> to vector<16x32xbf16>
    %c0_11 = arith.constant 0 : index
    %c0_12 = arith.constant 0 : index
    %15 = vector.load %arg6[%c0_11, %c0_12] : memref<16x32xbf16, #tpu.memory_space<vmem>>, vector<16x32xbf16>
    tpu.vector_store %arg6[%c0_11, %c0_12], %14 {strides = array<i32>} : memref<16x32xbf16, #tpu.memory_space<vmem>>, vector<16x32xbf16>,
    return
  }
  func.func @transform_0(%arg0: i32) -> (i32, i32) {
    %c0_i32 = arith.constant 0 : i32
    %c0_i32_0 = arith.constant 0 : i32
    return %arg0, %c0_i32 : i32, i32
  }
  func.func @transform_1(%arg0: i32) -> (i32, i32) {
    %c0_i32 = arith.constant 0 : i32
    %c0_i32_0 = arith.constant 0 : i32
    %c0_i32_1 = arith.constant 0 : i32
    return %c0_i32, %c0_i32_0 : i32, i32
  }
  func.func @transform_2(%arg0: i32) -> (i32, i32) {
    %c0_i32 = arith.constant 0 : i32
    %c0_i32_0 = arith.constant 0 : i32
    %c0_i32_1 = arith.constant 0 : i32
    return %c0_i32, %c0_i32_0 : i32, i32
  }
  func.func @transform_3(%arg0: i32) -> (i32, i32) {
    %c0_i32 = arith.constant 0 : i32
    %c0_i32_0 = arith.constant 0 : i32
    %c0_i32_1 = arith.constant 0 : i32
    return %c0_i32, %c0_i32_0 : i32, i32
  }
  func.func @transform_4(%arg0: i32) -> (i32, i32) {
    %c0_i32 = arith.constant 0 : i32
    %c0_i32_0 = arith.constant 0 : i32
    %c0_i32_1 = arith.constant 0 : i32
    return %c0_i32, %c0_i32_0 : i32, i32
  }
  func.func @transform_5(%arg0: i32) -> (i32, i32) {
    %c0_i32 = arith.constant 0 : i32
    %c0_i32_0 = arith.constant 0 : i32
    return %arg0, %c0_i32 : i32, i32
  }
}

module attributes {stable_mosaic.version = 11 : i64} {
  func.func @_mha_kernel(%arg0: i32, %arg1: i32, %arg2: i32, %arg3: memref<1x8x32xbf16, #tpu.memory_space<vmem>>, %arg4: memref<1x8x64xbf16, #tpu.memory_space<vmem>>, %arg5: memref<1x1x8xf32, #tpu.memory_space<vmem>>, %arg6: memref<32x32xbf16, #tpu.memory_space<vmem>>, %arg7: memref<1x32xf32, #tpu.memory_space<vmem>>, %arg8: memref<1x8x32xbf16, #tpu.memory_space<vmem>>, %arg9: memref<4x8x1xf32, #tpu.memory_space<vmem>>, %arg10: memref<4x8x1xf32, #tpu.memory_space<vmem>>, %arg11: memref<8x32xf32, #tpu.memory_space<vmem>>) attributes {dimension_semantics = [#tpu.dimension_semantics<parallel>, #tpu.dimension_semantics<parallel>, #tpu.dimension_semantics<arbitrary>], iteration_bounds = array<i64: 2, 1, 1>, scalar_prefetch = 0 : i64, scratch_operands = 3 : i64, tpu.core_type = #tpu.core_type<tc>, window_params = [{transform_indices = @transform_0, window_bounds = array<i64: 1, 8, 32>}, {transform_indices = @transform_1, window_bounds = array<i64: 1, 8, 64>}, {transform_indices = @transform_2, window_bounds = array<i64: 1, 1, 8>}, {pipeline_mode = #tpu.pipeline_mode<synchronous>, transform_indices = @transform_3, window_bounds = array<i64: 32, 32>}, {pipeline_mode = #tpu.pipeline_mode<synchronous>, transform_indices = @transform_4, window_bounds = array<i64: 1, 32>}, {transform_indices = @transform_5, window_bounds = array<i64: 1, 8, 32>}]} {
    %c0_i32 = arith.constant 0 : i32
    %0 = arith.cmpi eq, %arg2, %c0_i32 : i32
    %1 = arith.extui %0 : i1 to i32
    %c0_i32_0 = arith.constant 0 : i32
    %2 = arith.cmpi ne, %1, %c0_i32_0 : i32
    scf.if %2 {
      %cst_116 = arith.constant 0xFF800000 : f32
      %180 = vector.broadcast %cst_116 : f32 to vector<4x8x1xf32>
      %c0_117 = arith.constant 0 : index
      %c0_118 = arith.constant 0 : index
      %c0_119 = arith.constant 0 : index
      %181 = vector.load %arg9[%c0_117, %c0_118, %c0_119] : memref<4x8x1xf32, #tpu.memory_space<vmem>>, vector<4x8x1xf32>
      tpu.vector_store %arg9[%c0_117, %c0_118, %c0_119], %180 {strides = array<i32>} : memref<4x8x1xf32, #tpu.memory_space<vmem>>, vector<4x8x1xf32>,
      %cst_120 = arith.constant 0.000000e+00 : f32
      %182 = vector.broadcast %cst_120 : f32 to vector<4x8x1xf32>
      %c0_121 = arith.constant 0 : index
      %c0_122 = arith.constant 0 : index
      %c0_123 = arith.constant 0 : index
      %183 = vector.load %arg10[%c0_121, %c0_122, %c0_123] : memref<4x8x1xf32, #tpu.memory_space<vmem>>, vector<4x8x1xf32>
      tpu.vector_store %arg10[%c0_121, %c0_122, %c0_123], %182 {strides = array<i32>} : memref<4x8x1xf32, #tpu.memory_space<vmem>>, vector<4x8x1xf32>,
      %cst_124 = arith.constant 0.000000e+00 : f32
      %184 = vector.broadcast %cst_124 : f32 to vector<8x32xf32>
      %c0_125 = arith.constant 0 : index
      %c0_126 = arith.constant 0 : index
      %185 = vector.load %arg11[%c0_125, %c0_126] : memref<8x32xf32, #tpu.memory_space<vmem>>, vector<8x32xf32>
      tpu.vector_store %arg11[%c0_125, %c0_126], %184 {strides = array<i32>} : memref<8x32xf32, #tpu.memory_space<vmem>>, vector<8x32xf32>,
    } else {
    }
    %c8_i32 = arith.constant 8 : i32
    %3 = arith.muli %arg2, %c8_i32 : i32
    %4 = tpu.iota {dimensions = array<i32: 1>} : vector<8x8xi32>
    %5 = vector.broadcast %3 : i32 to vector<8x8xi32>
    %6 = arith.addi %5, %4 : vector<8x8xi32>
    %c8_i32_1 = arith.constant 8 : i32
    %7 = vector.broadcast %c8_i32_1 : i32 to vector<8x8xi32>
    %8 = arith.cmpi sge, %6, %7 : vector<8x8xi32>
    %c8_i32_2 = arith.constant 8 : i32
    %9 = arith.muli %arg1, %c8_i32_2 : i32
    %10 = tpu.iota {dimensions = array<i32: 0>} : vector<8x8xi32>
    %11 = vector.broadcast %9 : i32 to vector<8x8xi32>
    %12 = arith.addi %11, %10 : vector<8x8xi32>
    %13 = arith.cmpi sgt, %6, %12 : vector<8x8xi32>
    %14 = arith.ori %8, %13 : vector<8x8xi1>
    %c0 = arith.constant 0 : index
    %c0_3 = arith.constant 0 : index
    %c0_4 = arith.constant 0 : index
    %15 = vector.load %arg5[%c0, %c0_3, %c0_4] : memref<1x1x8xf32, #tpu.memory_space<vmem>>, vector<1x1x8xf32>
    %16 = vector.shape_cast %15 : vector<1x1x8xf32> to vector<1x8xf32>
    %c0_5 = arith.constant 0 : index
    %c0_6 = arith.constant 0 : index
    %c0_7 = arith.constant 0 : index
    %17 = vector.load %arg3[%c0_5, %c0_6, %c0_7] : memref<1x8x32xbf16, #tpu.memory_space<vmem>>, vector<1x8x8xbf16>
    %18 = vector.shape_cast %17 : vector<1x8x8xbf16> to vector<8x8xbf16>
    %c0_8 = arith.constant 0 : index
    %c0_9 = arith.constant 0 : index
    %c0_10 = arith.constant 0 : index
    %19 = vector.load %arg4[%c0_8, %c0_9, %c0_10] : memref<1x8x64xbf16, #tpu.memory_space<vmem>>, vector<1x8x8xbf16>
    %20 = vector.shape_cast %19 : vector<1x8x8xbf16> to vector<8x8xbf16>
    %c0_11 = arith.constant 0 : index
    %c0_12 = arith.constant 0 : index
    %c32 = arith.constant 32 : index
    %21 = vector.load %arg4[%c0_11, %c0_12, %c32] : memref<1x8x64xbf16, #tpu.memory_space<vmem>>, vector<1x8x8xbf16>
    %22 = vector.shape_cast %21 : vector<1x8x8xbf16> to vector<8x8xbf16>
    %cst = arith.constant dense<0.000000e+00> : vector<8x8xf32>
    %23 = tpu.matmul %18, %20, %cst {dimension_numbers = #tpu.dot_dimension_numbers<[1], [1], [0], [0], [0, 0, 1, 0], [], []>} : vector<8x8xbf16>, vector<8x8xbf16>, vector<8x8xf32> -> vector<8x8xf32>
    %24 = vector.broadcast %16 : vector<1x8xf32> to vector<8x8xf32>
    %25 = arith.addf %23, %24 : vector<8x8xf32>
    %cst_13 = arith.constant -1.000000e+09 : f32
    %26 = vector.broadcast %cst_13 : f32 to vector<8x8xf32>
    %27 = arith.select %14, %26, %25 : vector<8x8xi1>, vector<8x8xf32>
    %c0_14 = arith.constant 0 : index
    %c0_15 = arith.constant 0 : index
    %c0_16 = arith.constant 0 : index
    %28 = vector.load %arg9[%c0_14, %c0_15, %c0_16] : memref<4x8x1xf32, #tpu.memory_space<vmem>>, vector<1x8x1xf32>
    %29 = vector.shape_cast %28 : vector<1x8x1xf32> to vector<8x1xf32>
    %cst_17 = arith.constant dense<0xFF800000> : vector<8xf32>
    %30 = vector.multi_reduction <maximumf>, %27, %cst_17 [1] : vector<8x8xf32> to vector<8xf32>
    %31 = vector.shape_cast %30 : vector<8xf32> to vector<8x1xf32>
    %32 = arith.maximumf %29, %31 : vector<8x1xf32>
    %33 = arith.subf %29, %32 : vector<8x1xf32>
    %34 = math.exp %33 : vector<8x1xf32>
    %35 = vector.broadcast %32 : vector<8x1xf32> to vector<8x8xf32>
    %36 = arith.subf %27, %35 : vector<8x8xf32>
    %37 = math.exp %36 : vector<8x8xf32>
    %c0_18 = arith.constant 0 : index
    %c0_19 = arith.constant 0 : index
    %c0_20 = arith.constant 0 : index
    %38 = vector.load %arg10[%c0_18, %c0_19, %c0_20] : memref<4x8x1xf32, #tpu.memory_space<vmem>>, vector<1x8x1xf32>
    %39 = vector.shape_cast %38 : vector<1x8x1xf32> to vector<8x1xf32>
    %40 = arith.mulf %34, %39 : vector<8x1xf32>
    %cst_21 = arith.constant dense<0.000000e+00> : vector<8xf32>
    %41 = vector.multi_reduction <add>, %37, %cst_21 [1] : vector<8x8xf32> to vector<8xf32>
    %42 = vector.shape_cast %41 : vector<8xf32> to vector<8x1xf32>
    %43 = arith.addf %40, %42 : vector<8x1xf32>
    %c0_22 = arith.constant 0 : index
    %c0_23 = arith.constant 0 : index
    %c0_24 = arith.constant 0 : index
    %44 = vector.load %arg10[%c0_22, %c0_23, %c0_24] : memref<4x8x1xf32, #tpu.memory_space<vmem>>, vector<1x8x1xf32>
    %45 = vector.shape_cast %44 : vector<1x8x1xf32> to vector<8x1xf32>
    %46 = vector.shape_cast %43 : vector<8x1xf32> to vector<1x8x1xf32>
    tpu.vector_store %arg10[%c0_22, %c0_23, %c0_24], %46 {strides = array<i32>} : memref<4x8x1xf32, #tpu.memory_space<vmem>>, vector<1x8x1xf32>,
    %c0_25 = arith.constant 0 : index
    %c0_26 = arith.constant 0 : index
    %47 = vector.load %arg11[%c0_25, %c0_26] : memref<8x32xf32, #tpu.memory_space<vmem>>, vector<8x8xf32>
    %48 = vector.broadcast %34 : vector<8x1xf32> to vector<8x8xf32>
    %49 = arith.mulf %48, %47 : vector<8x8xf32>
    %50 = arith.truncf %37 : vector<8x8xf32> to vector<8x8xbf16>
    %cst_27 = arith.constant dense<0.000000e+00> : vector<8x8xf32>
    %51 = tpu.matmul %50, %22, %cst_27 {dimension_numbers = #tpu.dot_dimension_numbers<[1], [0], [0], [1], [0, 0, 1, 1], [], []>} : vector<8x8xbf16>, vector<8x8xbf16>, vector<8x8xf32> -> vector<8x8xf32>
    %52 = arith.addf %49, %51 : vector<8x8xf32>
    %c0_28 = arith.constant 0 : index
    %c0_29 = arith.constant 0 : index
    %53 = vector.load %arg11[%c0_28, %c0_29] : memref<8x32xf32, #tpu.memory_space<vmem>>, vector<8x8xf32>
    tpu.vector_store %arg11[%c0_28, %c0_29], %52 {strides = array<i32>} : memref<8x32xf32, #tpu.memory_space<vmem>>, vector<8x8xf32>,
    %c0_30 = arith.constant 0 : index
    %c0_31 = arith.constant 0 : index
    %c0_32 = arith.constant 0 : index
    %54 = vector.load %arg9[%c0_30, %c0_31, %c0_32] : memref<4x8x1xf32, #tpu.memory_space<vmem>>, vector<1x8x1xf32>
    %55 = vector.shape_cast %54 : vector<1x8x1xf32> to vector<8x1xf32>
    %56 = vector.shape_cast %32 : vector<8x1xf32> to vector<1x8x1xf32>
    tpu.vector_store %arg9[%c0_30, %c0_31, %c0_32], %56 {strides = array<i32>} : memref<4x8x1xf32, #tpu.memory_space<vmem>>, vector<1x8x1xf32>,
    %c0_33 = arith.constant 0 : index
    %c0_34 = arith.constant 0 : index
    %c8 = arith.constant 8 : index
    %57 = vector.load %arg3[%c0_33, %c0_34, %c8] : memref<1x8x32xbf16, #tpu.memory_space<vmem>>, vector<1x8x8xbf16>
    %58 = vector.shape_cast %57 : vector<1x8x8xbf16> to vector<8x8xbf16>
    %c0_35 = arith.constant 0 : index
    %c0_36 = arith.constant 0 : index
    %c8_37 = arith.constant 8 : index
    %59 = vector.load %arg4[%c0_35, %c0_36, %c8_37] : memref<1x8x64xbf16, #tpu.memory_space<vmem>>, vector<1x8x8xbf16>
    %60 = vector.shape_cast %59 : vector<1x8x8xbf16> to vector<8x8xbf16>
    %c0_38 = arith.constant 0 : index
    %c0_39 = arith.constant 0 : index
    %c40 = arith.constant 40 : index
    %61 = vector.load %arg4[%c0_38, %c0_39, %c40] : memref<1x8x64xbf16, #tpu.memory_space<vmem>>, vector<1x8x8xbf16>
    %62 = vector.shape_cast %61 : vector<1x8x8xbf16> to vector<8x8xbf16>
    %cst_40 = arith.constant dense<0.000000e+00> : vector<8x8xf32>
    %63 = tpu.matmul %58, %60, %cst_40 {dimension_numbers = #tpu.dot_dimension_numbers<[1], [1], [0], [0], [0, 0, 1, 0], [], []>} : vector<8x8xbf16>, vector<8x8xbf16>, vector<8x8xf32> -> vector<8x8xf32>
    %64 = vector.broadcast %16 : vector<1x8xf32> to vector<8x8xf32>
    %65 = arith.addf %63, %64 : vector<8x8xf32>
    %cst_41 = arith.constant -1.000000e+09 : f32
    %66 = vector.broadcast %cst_41 : f32 to vector<8x8xf32>
    %67 = arith.select %14, %66, %65 : vector<8x8xi1>, vector<8x8xf32>
    %c1 = arith.constant 1 : index
    %c0_42 = arith.constant 0 : index
    %c0_43 = arith.constant 0 : index
    %68 = vector.load %arg9[%c1, %c0_42, %c0_43] : memref<4x8x1xf32, #tpu.memory_space<vmem>>, vector<1x8x1xf32>
    %69 = vector.shape_cast %68 : vector<1x8x1xf32> to vector<8x1xf32>
    %cst_44 = arith.constant dense<0xFF800000> : vector<8xf32>
    %70 = vector.multi_reduction <maximumf>, %67, %cst_44 [1] : vector<8x8xf32> to vector<8xf32>
    %71 = vector.shape_cast %70 : vector<8xf32> to vector<8x1xf32>
    %72 = arith.maximumf %69, %71 : vector<8x1xf32>
    %73 = arith.subf %69, %72 : vector<8x1xf32>
    %74 = math.exp %73 : vector<8x1xf32>
    %75 = vector.broadcast %72 : vector<8x1xf32> to vector<8x8xf32>
    %76 = arith.subf %67, %75 : vector<8x8xf32>
    %77 = math.exp %76 : vector<8x8xf32>
    %c1_45 = arith.constant 1 : index
    %c0_46 = arith.constant 0 : index
    %c0_47 = arith.constant 0 : index
    %78 = vector.load %arg10[%c1_45, %c0_46, %c0_47] : memref<4x8x1xf32, #tpu.memory_space<vmem>>, vector<1x8x1xf32>
    %79 = vector.shape_cast %78 : vector<1x8x1xf32> to vector<8x1xf32>
    %80 = arith.mulf %74, %79 : vector<8x1xf32>
    %cst_48 = arith.constant dense<0.000000e+00> : vector<8xf32>
    %81 = vector.multi_reduction <add>, %77, %cst_48 [1] : vector<8x8xf32> to vector<8xf32>
    %82 = vector.shape_cast %81 : vector<8xf32> to vector<8x1xf32>
    %83 = arith.addf %80, %82 : vector<8x1xf32>
    %c1_49 = arith.constant 1 : index
    %c0_50 = arith.constant 0 : index
    %c0_51 = arith.constant 0 : index
    %84 = vector.load %arg10[%c1_49, %c0_50, %c0_51] : memref<4x8x1xf32, #tpu.memory_space<vmem>>, vector<1x8x1xf32>
    %85 = vector.shape_cast %84 : vector<1x8x1xf32> to vector<8x1xf32>
    %86 = vector.shape_cast %83 : vector<8x1xf32> to vector<1x8x1xf32>
    tpu.vector_store %arg10[%c1_49, %c0_50, %c0_51], %86 {strides = array<i32>} : memref<4x8x1xf32, #tpu.memory_space<vmem>>, vector<1x8x1xf32>,
    %c0_52 = arith.constant 0 : index
    %c8_53 = arith.constant 8 : index
    %87 = vector.load %arg11[%c0_52, %c8_53] : memref<8x32xf32, #tpu.memory_space<vmem>>, vector<8x8xf32>
    %88 = vector.broadcast %74 : vector<8x1xf32> to vector<8x8xf32>
    %89 = arith.mulf %88, %87 : vector<8x8xf32>
    %90 = arith.truncf %77 : vector<8x8xf32> to vector<8x8xbf16>
    %cst_54 = arith.constant dense<0.000000e+00> : vector<8x8xf32>
    %91 = tpu.matmul %90, %62, %cst_54 {dimension_numbers = #tpu.dot_dimension_numbers<[1], [0], [0], [1], [0, 0, 1, 1], [], []>} : vector<8x8xbf16>, vector<8x8xbf16>, vector<8x8xf32> -> vector<8x8xf32>
    %92 = arith.addf %89, %91 : vector<8x8xf32>
    %c0_55 = arith.constant 0 : index
    %c8_56 = arith.constant 8 : index
    %93 = vector.load %arg11[%c0_55, %c8_56] : memref<8x32xf32, #tpu.memory_space<vmem>>, vector<8x8xf32>
    tpu.vector_store %arg11[%c0_55, %c8_56], %92 {strides = array<i32>} : memref<8x32xf32, #tpu.memory_space<vmem>>, vector<8x8xf32>,
    %c1_57 = arith.constant 1 : index
    %c0_58 = arith.constant 0 : index
    %c0_59 = arith.constant 0 : index
    %94 = vector.load %arg9[%c1_57, %c0_58, %c0_59] : memref<4x8x1xf32, #tpu.memory_space<vmem>>, vector<1x8x1xf32>
    %95 = vector.shape_cast %94 : vector<1x8x1xf32> to vector<8x1xf32>
    %96 = vector.shape_cast %72 : vector<8x1xf32> to vector<1x8x1xf32>
    tpu.vector_store %arg9[%c1_57, %c0_58, %c0_59], %96 {strides = array<i32>} : memref<4x8x1xf32, #tpu.memory_space<vmem>>, vector<1x8x1xf32>,
    %c0_60 = arith.constant 0 : index
    %c0_61 = arith.constant 0 : index
    %c16 = arith.constant 16 : index
    %97 = vector.load %arg3[%c0_60, %c0_61, %c16] : memref<1x8x32xbf16, #tpu.memory_space<vmem>>, vector<1x8x8xbf16>
    %98 = vector.shape_cast %97 : vector<1x8x8xbf16> to vector<8x8xbf16>
    %c0_62 = arith.constant 0 : index
    %c0_63 = arith.constant 0 : index
    %c16_64 = arith.constant 16 : index
    %99 = vector.load %arg4[%c0_62, %c0_63, %c16_64] : memref<1x8x64xbf16, #tpu.memory_space<vmem>>, vector<1x8x8xbf16>
    %100 = vector.shape_cast %99 : vector<1x8x8xbf16> to vector<8x8xbf16>
    %c0_65 = arith.constant 0 : index
    %c0_66 = arith.constant 0 : index
    %c48 = arith.constant 48 : index
    %101 = vector.load %arg4[%c0_65, %c0_66, %c48] : memref<1x8x64xbf16, #tpu.memory_space<vmem>>, vector<1x8x8xbf16>
    %102 = vector.shape_cast %101 : vector<1x8x8xbf16> to vector<8x8xbf16>
    %cst_67 = arith.constant dense<0.000000e+00> : vector<8x8xf32>
    %103 = tpu.matmul %98, %100, %cst_67 {dimension_numbers = #tpu.dot_dimension_numbers<[1], [1], [0], [0], [0, 0, 1, 0], [], []>} : vector<8x8xbf16>, vector<8x8xbf16>, vector<8x8xf32> -> vector<8x8xf32>
    %104 = vector.broadcast %16 : vector<1x8xf32> to vector<8x8xf32>
    %105 = arith.addf %103, %104 : vector<8x8xf32>
    %cst_68 = arith.constant -1.000000e+09 : f32
    %106 = vector.broadcast %cst_68 : f32 to vector<8x8xf32>
    %107 = arith.select %14, %106, %105 : vector<8x8xi1>, vector<8x8xf32>
    %c2 = arith.constant 2 : index
    %c0_69 = arith.constant 0 : index
    %c0_70 = arith.constant 0 : index
    %108 = vector.load %arg9[%c2, %c0_69, %c0_70] : memref<4x8x1xf32, #tpu.memory_space<vmem>>, vector<1x8x1xf32>
    %109 = vector.shape_cast %108 : vector<1x8x1xf32> to vector<8x1xf32>
    %cst_71 = arith.constant dense<0xFF800000> : vector<8xf32>
    %110 = vector.multi_reduction <maximumf>, %107, %cst_71 [1] : vector<8x8xf32> to vector<8xf32>
    %111 = vector.shape_cast %110 : vector<8xf32> to vector<8x1xf32>
    %112 = arith.maximumf %109, %111 : vector<8x1xf32>
    %113 = arith.subf %109, %112 : vector<8x1xf32>
    %114 = math.exp %113 : vector<8x1xf32>
    %115 = vector.broadcast %112 : vector<8x1xf32> to vector<8x8xf32>
    %116 = arith.subf %107, %115 : vector<8x8xf32>
    %117 = math.exp %116 : vector<8x8xf32>
    %c2_72 = arith.constant 2 : index
    %c0_73 = arith.constant 0 : index
    %c0_74 = arith.constant 0 : index
    %118 = vector.load %arg10[%c2_72, %c0_73, %c0_74] : memref<4x8x1xf32, #tpu.memory_space<vmem>>, vector<1x8x1xf32>
    %119 = vector.shape_cast %118 : vector<1x8x1xf32> to vector<8x1xf32>
    %120 = arith.mulf %114, %119 : vector<8x1xf32>
    %cst_75 = arith.constant dense<0.000000e+00> : vector<8xf32>
    %121 = vector.multi_reduction <add>, %117, %cst_75 [1] : vector<8x8xf32> to vector<8xf32>
    %122 = vector.shape_cast %121 : vector<8xf32> to vector<8x1xf32>
    %123 = arith.addf %120, %122 : vector<8x1xf32>
    %c2_76 = arith.constant 2 : index
    %c0_77 = arith.constant 0 : index
    %c0_78 = arith.constant 0 : index
    %124 = vector.load %arg10[%c2_76, %c0_77, %c0_78] : memref<4x8x1xf32, #tpu.memory_space<vmem>>, vector<1x8x1xf32>
    %125 = vector.shape_cast %124 : vector<1x8x1xf32> to vector<8x1xf32>
    %126 = vector.shape_cast %123 : vector<8x1xf32> to vector<1x8x1xf32>
    tpu.vector_store %arg10[%c2_76, %c0_77, %c0_78], %126 {strides = array<i32>} : memref<4x8x1xf32, #tpu.memory_space<vmem>>, vector<1x8x1xf32>,
    %c0_79 = arith.constant 0 : index
    %c16_80 = arith.constant 16 : index
    %127 = vector.load %arg11[%c0_79, %c16_80] : memref<8x32xf32, #tpu.memory_space<vmem>>, vector<8x8xf32>
    %128 = vector.broadcast %114 : vector<8x1xf32> to vector<8x8xf32>
    %129 = arith.mulf %128, %127 : vector<8x8xf32>
    %130 = arith.truncf %117 : vector<8x8xf32> to vector<8x8xbf16>
    %cst_81 = arith.constant dense<0.000000e+00> : vector<8x8xf32>
    %131 = tpu.matmul %130, %102, %cst_81 {dimension_numbers = #tpu.dot_dimension_numbers<[1], [0], [0], [1], [0, 0, 1, 1], [], []>} : vector<8x8xbf16>, vector<8x8xbf16>, vector<8x8xf32> -> vector<8x8xf32>
    %132 = arith.addf %129, %131 : vector<8x8xf32>
    %c0_82 = arith.constant 0 : index
    %c16_83 = arith.constant 16 : index
    %133 = vector.load %arg11[%c0_82, %c16_83] : memref<8x32xf32, #tpu.memory_space<vmem>>, vector<8x8xf32>
    tpu.vector_store %arg11[%c0_82, %c16_83], %132 {strides = array<i32>} : memref<8x32xf32, #tpu.memory_space<vmem>>, vector<8x8xf32>,
    %c2_84 = arith.constant 2 : index
    %c0_85 = arith.constant 0 : index
    %c0_86 = arith.constant 0 : index
    %134 = vector.load %arg9[%c2_84, %c0_85, %c0_86] : memref<4x8x1xf32, #tpu.memory_space<vmem>>, vector<1x8x1xf32>
    %135 = vector.shape_cast %134 : vector<1x8x1xf32> to vector<8x1xf32>
    %136 = vector.shape_cast %112 : vector<8x1xf32> to vector<1x8x1xf32>
    tpu.vector_store %arg9[%c2_84, %c0_85, %c0_86], %136 {strides = array<i32>} : memref<4x8x1xf32, #tpu.memory_space<vmem>>, vector<1x8x1xf32>,
    %c0_87 = arith.constant 0 : index
    %c0_88 = arith.constant 0 : index
    %c24 = arith.constant 24 : index
    %137 = vector.load %arg3[%c0_87, %c0_88, %c24] : memref<1x8x32xbf16, #tpu.memory_space<vmem>>, vector<1x8x8xbf16>
    %138 = vector.shape_cast %137 : vector<1x8x8xbf16> to vector<8x8xbf16>
    %c0_89 = arith.constant 0 : index
    %c0_90 = arith.constant 0 : index
    %c24_91 = arith.constant 24 : index
    %139 = vector.load %arg4[%c0_89, %c0_90, %c24_91] : memref<1x8x64xbf16, #tpu.memory_space<vmem>>, vector<1x8x8xbf16>
    %140 = vector.shape_cast %139 : vector<1x8x8xbf16> to vector<8x8xbf16>
    %c0_92 = arith.constant 0 : index
    %c0_93 = arith.constant 0 : index
    %c56 = arith.constant 56 : index
    %141 = vector.load %arg4[%c0_92, %c0_93, %c56] : memref<1x8x64xbf16, #tpu.memory_space<vmem>>, vector<1x8x8xbf16>
    %142 = vector.shape_cast %141 : vector<1x8x8xbf16> to vector<8x8xbf16>
    %cst_94 = arith.constant dense<0.000000e+00> : vector<8x8xf32>
    %143 = tpu.matmul %138, %140, %cst_94 {dimension_numbers = #tpu.dot_dimension_numbers<[1], [1], [0], [0], [0, 0, 1, 0], [], []>} : vector<8x8xbf16>, vector<8x8xbf16>, vector<8x8xf32> -> vector<8x8xf32>
    %144 = vector.broadcast %16 : vector<1x8xf32> to vector<8x8xf32>
    %145 = arith.addf %143, %144 : vector<8x8xf32>
    %cst_95 = arith.constant -1.000000e+09 : f32
    %146 = vector.broadcast %cst_95 : f32 to vector<8x8xf32>
    %147 = arith.select %14, %146, %145 : vector<8x8xi1>, vector<8x8xf32>
    %c3 = arith.constant 3 : index
    %c0_96 = arith.constant 0 : index
    %c0_97 = arith.constant 0 : index
    %148 = vector.load %arg9[%c3, %c0_96, %c0_97] : memref<4x8x1xf32, #tpu.memory_space<vmem>>, vector<1x8x1xf32>
    %149 = vector.shape_cast %148 : vector<1x8x1xf32> to vector<8x1xf32>
    %cst_98 = arith.constant dense<0xFF800000> : vector<8xf32>
    %150 = vector.multi_reduction <maximumf>, %147, %cst_98 [1] : vector<8x8xf32> to vector<8xf32>
    %151 = vector.shape_cast %150 : vector<8xf32> to vector<8x1xf32>
    %152 = arith.maximumf %149, %151 : vector<8x1xf32>
    %153 = arith.subf %149, %152 : vector<8x1xf32>
    %154 = math.exp %153 : vector<8x1xf32>
    %155 = vector.broadcast %152 : vector<8x1xf32> to vector<8x8xf32>
    %156 = arith.subf %147, %155 : vector<8x8xf32>
    %157 = math.exp %156 : vector<8x8xf32>
    %c3_99 = arith.constant 3 : index
    %c0_100 = arith.constant 0 : index
    %c0_101 = arith.constant 0 : index
    %158 = vector.load %arg10[%c3_99, %c0_100, %c0_101] : memref<4x8x1xf32, #tpu.memory_space<vmem>>, vector<1x8x1xf32>
    %159 = vector.shape_cast %158 : vector<1x8x1xf32> to vector<8x1xf32>
    %160 = arith.mulf %154, %159 : vector<8x1xf32>
    %cst_102 = arith.constant dense<0.000000e+00> : vector<8xf32>
    %161 = vector.multi_reduction <add>, %157, %cst_102 [1] : vector<8x8xf32> to vector<8xf32>
    %162 = vector.shape_cast %161 : vector<8xf32> to vector<8x1xf32>
    %163 = arith.addf %160, %162 : vector<8x1xf32>
    %c3_103 = arith.constant 3 : index
    %c0_104 = arith.constant 0 : index
    %c0_105 = arith.constant 0 : index
    %164 = vector.load %arg10[%c3_103, %c0_104, %c0_105] : memref<4x8x1xf32, #tpu.memory_space<vmem>>, vector<1x8x1xf32>
    %165 = vector.shape_cast %164 : vector<1x8x1xf32> to vector<8x1xf32>
    %166 = vector.shape_cast %163 : vector<8x1xf32> to vector<1x8x1xf32>
    tpu.vector_store %arg10[%c3_103, %c0_104, %c0_105], %166 {strides = array<i32>} : memref<4x8x1xf32, #tpu.memory_space<vmem>>, vector<1x8x1xf32>,
    %c0_106 = arith.constant 0 : index
    %c24_107 = arith.constant 24 : index
    %167 = vector.load %arg11[%c0_106, %c24_107] : memref<8x32xf32, #tpu.memory_space<vmem>>, vector<8x8xf32>
    %168 = vector.broadcast %154 : vector<8x1xf32> to vector<8x8xf32>
    %169 = arith.mulf %168, %167 : vector<8x8xf32>
    %170 = arith.truncf %157 : vector<8x8xf32> to vector<8x8xbf16>
    %cst_108 = arith.constant dense<0.000000e+00> : vector<8x8xf32>
    %171 = tpu.matmul %170, %142, %cst_108 {dimension_numbers = #tpu.dot_dimension_numbers<[1], [0], [0], [1], [0, 0, 1, 1], [], []>} : vector<8x8xbf16>, vector<8x8xbf16>, vector<8x8xf32> -> vector<8x8xf32>
    %172 = arith.addf %169, %171 : vector<8x8xf32>
    %c0_109 = arith.constant 0 : index
    %c24_110 = arith.constant 24 : index
    %173 = vector.load %arg11[%c0_109, %c24_110] : memref<8x32xf32, #tpu.memory_space<vmem>>, vector<8x8xf32>
    tpu.vector_store %arg11[%c0_109, %c24_110], %172 {strides = array<i32>} : memref<8x32xf32, #tpu.memory_space<vmem>>, vector<8x8xf32>,
    %c3_111 = arith.constant 3 : index
    %c0_112 = arith.constant 0 : index
    %c0_113 = arith.constant 0 : index
    %174 = vector.load %arg9[%c3_111, %c0_112, %c0_113] : memref<4x8x1xf32, #tpu.memory_space<vmem>>, vector<1x8x1xf32>
    %175 = vector.shape_cast %174 : vector<1x8x1xf32> to vector<8x1xf32>
    %176 = vector.shape_cast %152 : vector<8x1xf32> to vector<1x8x1xf32>
    tpu.vector_store %arg9[%c3_111, %c0_112, %c0_113], %176 {strides = array<i32>} : memref<4x8x1xf32, #tpu.memory_space<vmem>>, vector<1x8x1xf32>,
    %c0_i32_114 = arith.constant 0 : i32
    %177 = arith.cmpi eq, %arg2, %c0_i32_114 : i32
    %178 = arith.extui %177 : i1 to i32
    %c0_i32_115 = arith.constant 0 : i32
    %179 = arith.cmpi ne, %178, %c0_i32_115 : i32
    scf.if %179 {
      %c0_116 = arith.constant 0 : index
      %c0_117 = arith.constant 0 : index
      %c0_118 = arith.constant 0 : index
      %180 = vector.load %arg10[%c0_116, %c0_117, %c0_118] : memref<4x8x1xf32, #tpu.memory_space<vmem>>, vector<1x8x1xf32>
      %181 = vector.shape_cast %180 : vector<1x8x1xf32> to vector<8x1xf32>
      %182 = tpu.reciprocal %181 {approx = true} : vector<8x1xf32> -> vector<8x1xf32>
      %c0_119 = arith.constant 0 : index
      %c0_120 = arith.constant 0 : index
      %183 = vector.load %arg11[%c0_119, %c0_120] : memref<8x32xf32, #tpu.memory_space<vmem>>, vector<8x8xf32>
      %184 = vector.broadcast %182 : vector<8x1xf32> to vector<8x8xf32>
      %185 = arith.mulf %183, %184 : vector<8x8xf32>
      %c0_121 = arith.constant 0 : index
      %c0_122 = arith.constant 0 : index
      %186 = vector.load %arg11[%c0_121, %c0_122] : memref<8x32xf32, #tpu.memory_space<vmem>>, vector<8x8xf32>
      tpu.vector_store %arg11[%c0_121, %c0_122], %185 {strides = array<i32>} : memref<8x32xf32, #tpu.memory_space<vmem>>, vector<8x8xf32>,
      %c1_123 = arith.constant 1 : index
      %c0_124 = arith.constant 0 : index
      %c0_125 = arith.constant 0 : index
      %187 = vector.load %arg10[%c1_123, %c0_124, %c0_125] : memref<4x8x1xf32, #tpu.memory_space<vmem>>, vector<1x8x1xf32>
      %188 = vector.shape_cast %187 : vector<1x8x1xf32> to vector<8x1xf32>
      %189 = tpu.reciprocal %188 {approx = true} : vector<8x1xf32> -> vector<8x1xf32>
      %c0_126 = arith.constant 0 : index
      %c8_127 = arith.constant 8 : index
      %190 = vector.load %arg11[%c0_126, %c8_127] : memref<8x32xf32, #tpu.memory_space<vmem>>, vector<8x8xf32>
      %191 = vector.broadcast %189 : vector<8x1xf32> to vector<8x8xf32>
      %192 = arith.mulf %190, %191 : vector<8x8xf32>
      %c0_128 = arith.constant 0 : index
      %c8_129 = arith.constant 8 : index
      %193 = vector.load %arg11[%c0_128, %c8_129] : memref<8x32xf32, #tpu.memory_space<vmem>>, vector<8x8xf32>
      tpu.vector_store %arg11[%c0_128, %c8_129], %192 {strides = array<i32>} : memref<8x32xf32, #tpu.memory_space<vmem>>, vector<8x8xf32>,
      %c2_130 = arith.constant 2 : index
      %c0_131 = arith.constant 0 : index
      %c0_132 = arith.constant 0 : index
      %194 = vector.load %arg10[%c2_130, %c0_131, %c0_132] : memref<4x8x1xf32, #tpu.memory_space<vmem>>, vector<1x8x1xf32>
      %195 = vector.shape_cast %194 : vector<1x8x1xf32> to vector<8x1xf32>
      %196 = tpu.reciprocal %195 {approx = true} : vector<8x1xf32> -> vector<8x1xf32>
      %c0_133 = arith.constant 0 : index
      %c16_134 = arith.constant 16 : index
      %197 = vector.load %arg11[%c0_133, %c16_134] : memref<8x32xf32, #tpu.memory_space<vmem>>, vector<8x8xf32>
      %198 = vector.broadcast %196 : vector<8x1xf32> to vector<8x8xf32>
      %199 = arith.mulf %197, %198 : vector<8x8xf32>
      %c0_135 = arith.constant 0 : index
      %c16_136 = arith.constant 16 : index
      %200 = vector.load %arg11[%c0_135, %c16_136] : memref<8x32xf32, #tpu.memory_space<vmem>>, vector<8x8xf32>
      tpu.vector_store %arg11[%c0_135, %c16_136], %199 {strides = array<i32>} : memref<8x32xf32, #tpu.memory_space<vmem>>, vector<8x8xf32>,
      %c3_137 = arith.constant 3 : index
      %c0_138 = arith.constant 0 : index
      %c0_139 = arith.constant 0 : index
      %201 = vector.load %arg10[%c3_137, %c0_138, %c0_139] : memref<4x8x1xf32, #tpu.memory_space<vmem>>, vector<1x8x1xf32>
      %202 = vector.shape_cast %201 : vector<1x8x1xf32> to vector<8x1xf32>
      %203 = tpu.reciprocal %202 {approx = true} : vector<8x1xf32> -> vector<8x1xf32>
      %c0_140 = arith.constant 0 : index
      %c24_141 = arith.constant 24 : index
      %204 = vector.load %arg11[%c0_140, %c24_141] : memref<8x32xf32, #tpu.memory_space<vmem>>, vector<8x8xf32>
      %205 = vector.broadcast %203 : vector<8x1xf32> to vector<8x8xf32>
      %206 = arith.mulf %204, %205 : vector<8x8xf32>
      %c0_142 = arith.constant 0 : index
      %c24_143 = arith.constant 24 : index
      %207 = vector.load %arg11[%c0_142, %c24_143] : memref<8x32xf32, #tpu.memory_space<vmem>>, vector<8x8xf32>
      tpu.vector_store %arg11[%c0_142, %c24_143], %206 {strides = array<i32>} : memref<8x32xf32, #tpu.memory_space<vmem>>, vector<8x8xf32>,
      %c0_144 = arith.constant 0 : index
      %c0_145 = arith.constant 0 : index
      %208 = vector.load %arg11[%c0_144, %c0_145] : memref<8x32xf32, #tpu.memory_space<vmem>>, vector<8x32xf32>
      %209 = arith.truncf %208 : vector<8x32xf32> to vector<8x32xbf16>
      %c0_146 = arith.constant 0 : index
      %c0_147 = arith.constant 0 : index
      %210 = vector.load %arg6[%c0_146, %c0_147] : memref<32x32xbf16, #tpu.memory_space<vmem>>, vector<32x32xbf16>
      %cst_148 = arith.constant dense<0.000000e+00> : vector<8x32xf32>
      %211 = tpu.matmul %209, %210, %cst_148 {dimension_numbers = #tpu.dot_dimension_numbers<[1], [0], [0], [1], [0, 0, 1, 1], [], []>} : vector<8x32xbf16>, vector<32x32xbf16>, vector<8x32xf32> -> vector<8x32xf32>
      %c0_149 = arith.constant 0 : index
      %c0_150 = arith.constant 0 : index
      %212 = vector.load %arg7[%c0_149, %c0_150] : memref<1x32xf32, #tpu.memory_space<vmem>>, vector<1x32xf32>
      %213 = vector.broadcast %212 : vector<1x32xf32> to vector<8x32xf32>
      %214 = arith.addf %211, %213 : vector<8x32xf32>
      %215 = arith.truncf %214 : vector<8x32xf32> to vector<8x32xbf16>
      %c0_151 = arith.constant 0 : index
      %c0_152 = arith.constant 0 : index
      %c0_153 = arith.constant 0 : index
      %216 = vector.load %arg8[%c0_151, %c0_152, %c0_153] : memref<1x8x32xbf16, #tpu.memory_space<vmem>>, vector<1x8x32xbf16>
      %217 = vector.shape_cast %216 : vector<1x8x32xbf16> to vector<8x32xbf16>
      %218 = vector.shape_cast %215 : vector<8x32xbf16> to vector<1x8x32xbf16>
      tpu.vector_store %arg8[%c0_151, %c0_152, %c0_153], %218 {strides = array<i32>} : memref<1x8x32xbf16, #tpu.memory_space<vmem>>, vector<1x8x32xbf16>,
    } else {
    }
    return
  }
  func.func @transform_0(%arg0: i32, %arg1: i32, %arg2: i32) -> (i32, i32, i32) {
    %c0_i32 = arith.constant 0 : i32
    %c0_i32_0 = arith.constant 0 : i32
    return %arg0, %arg1, %c0_i32 : i32, i32, i32
  }
  func.func @transform_1(%arg0: i32, %arg1: i32, %arg2: i32) -> (i32, i32, i32) {
    %c0_i32 = arith.constant 0 : i32
    %c0_i32_0 = arith.constant 0 : i32
    return %arg0, %arg2, %c0_i32 : i32, i32, i32
  }
  func.func @transform_2(%arg0: i32, %arg1: i32, %arg2: i32) -> (i32, i32, i32) {
    %c0_i32 = arith.constant 0 : i32
    %c0_i32_0 = arith.constant 0 : i32
    return %arg0, %c0_i32, %arg2 : i32, i32, i32
  }
  func.func @transform_3(%arg0: i32, %arg1: i32, %arg2: i32) -> (i32, i32) {
    %c0_i32 = arith.constant 0 : i32
    %c0_i32_0 = arith.constant 0 : i32
    %c0_i32_1 = arith.constant 0 : i32
    return %c0_i32, %c0_i32_0 : i32, i32
  }
  func.func @transform_4(%arg0: i32, %arg1: i32, %arg2: i32) -> (i32, i32) {
    %c0_i32 = arith.constant 0 : i32
    %c0_i32_0 = arith.constant 0 : i32
    %c0_i32_1 = arith.constant 0 : i32
    return %c0_i32, %c0_i32_0 : i32, i32
  }
  func.func @transform_5(%arg0: i32, %arg1: i32, %arg2: i32) -> (i32, i32, i32) {
    %c0_i32 = arith.constant 0 : i32
    %c0_i32_0 = arith.constant 0 : i32
    return %arg0, %arg1, %c0_i32 : i32, i32, i32
  }
}

module attributes {stable_mosaic.version = 11 : i64} {
  func.func @_linear_nobias_kernel(%arg0: i32, %arg1: i32, %arg2: memref<16x32xbf16, #tpu.memory_space<vmem>>, %arg3: memref<32x64xbf16, #tpu.memory_space<vmem>>, %arg4: memref<16x64xf32, #tpu.memory_space<vmem>>) attributes {dimension_semantics = [#tpu.dimension_semantics<parallel>, #tpu.dimension_semantics<parallel>], iteration_bounds = array<i64: 1, 1>, scalar_prefetch = 0 : i64, scratch_operands = 0 : i64, tpu.core_type = #tpu.core_type<tc>, window_params = [{transform_indices = @transform_0, window_bounds = array<i64: 16, 32>}, {transform_indices = @transform_1, window_bounds = array<i64: 32, 64>}, {transform_indices = @transform_2, window_bounds = array<i64: 16, 64>}]} {
    %c0 = arith.constant 0 : index
    %c0_0 = arith.constant 0 : index
    %0 = vector.load %arg2[%c0, %c0_0] : memref<16x32xbf16, #tpu.memory_space<vmem>>, vector<16x32xbf16>
    %c0_1 = arith.constant 0 : index
    %c0_2 = arith.constant 0 : index
    %1 = vector.load %arg3[%c0_1, %c0_2] : memref<32x64xbf16, #tpu.memory_space<vmem>>, vector<32x64xbf16>
    %cst = arith.constant dense<0.000000e+00> : vector<16x64xf32>
    %2 = tpu.matmul %0, %1, %cst {dimension_numbers = #tpu.dot_dimension_numbers<[1], [0], [0], [1], [0, 0, 1, 1], [], []>} : vector<16x32xbf16>, vector<32x64xbf16>, vector<16x64xf32> -> vector<16x64xf32>
    %c0_3 = arith.constant 0 : index
    %c0_4 = arith.constant 0 : index
    %3 = vector.load %arg4[%c0_3, %c0_4] : memref<16x64xf32, #tpu.memory_space<vmem>>, vector<16x64xf32>
    tpu.vector_store %arg4[%c0_3, %c0_4], %2 {strides = array<i32>} : memref<16x64xf32, #tpu.memory_space<vmem>>, vector<16x64xf32>,
    return
  }
  func.func @transform_0(%arg0: i32, %arg1: i32) -> (i32, i32) {
    %c0_i32 = arith.constant 0 : i32
    %c0_i32_0 = arith.constant 0 : i32
    return %arg1, %c0_i32 : i32, i32
  }
  func.func @transform_1(%arg0: i32, %arg1: i32) -> (i32, i32) {
    %c0_i32 = arith.constant 0 : i32
    %c0_i32_0 = arith.constant 0 : i32
    return %c0_i32, %arg0 : i32, i32
  }
  func.func @transform_2(%arg0: i32, %arg1: i32) -> (i32, i32) {
    %c0_i32 = arith.constant 0 : i32
    return %arg1, %arg0 : i32, i32
  }
}

</mosaic_0001>

<bundles_post_ra>
// kernel: transformer_forward.34
= control target key start
LH: loop header
LB: loop body
LE: loop exit
PB: predicated region body
PF: predicated region fallthrough
CT: control target
= control target key end

     0   :  { %8 = vsyncpa [#allocation3], 0  ;;  %s376_s0 = inlined_call_operand.hbm [shape: bf16[16,32], index: 0, kind: input, shape index: {}]   ;;  %s377_s1 = inlined_call_operand.hbm [shape: bf16[32,64], index: 1, kind: input, shape index: {}]   ;;  %s378_s2 = inlined_call_operand.hbm [shape: f32[1,64], index: 2, kind: input, shape index: {}]   ;;  %s379_s3 = inlined_call_operand.hbm [shape: bf16[16,64], index: 3, kind: output, shape index: {}]  }
   0x1   :  { %9 = vsyncpa [#allocation6], 0 }
   0x2   :  { %10 = vsyncpa [#allocation4], 0  ;;  %s284_s12 = smov [#allocation5]   ;;  %s285_s14 = smov [#allocation2]  }
   0x3   :  { %s28_s13 = sshll.u32 %s284_s12, 4  ;;  %s16_s15 = sshll.u32 %s285_s14, 4  ;;  %s29_s13 = int_to_ptr.vmem [resolvable:$true] %s28_s13  ;;  %s312_s15 = int_to_ptr.vmem [resolvable:$true] %s16_s15 }
   0x4   :  { %s190_s18 = scalar_lea.hbm %s377_s1, 256 }
   0x5   :  { %p191_p0 = scmp.ne.s32.totalorder %s377_s1, %s190_s18  ;;  %p194_p1 = scmp.lt.u32.totalorder %s190_s18, %s377_s1 }
   0x7   :  { %p196_p2 = pnand %p194_p1, %p191_p0 }
   0x9   :  { %199 = shalt.err (!%p196_p2)
}
   0xa   :  { %s200_s23 = scalar_lea.vmem %s29_s13, 256  ;;  %p205_p4 = scmp.lt.s32.totalorder %s29_s13, %s29_s13 }
   0xb   :  { %p201_p3 = scmp.ne.s32.totalorder %s29_s13, %s200_s23  ;;  %p206_p5 = scmp.lt.s32.totalorder %s200_s23, %s200_s23 }
   0xd   :  { %p207_p6 = por %p206_p5, %p205_p4 }
   0xf   :  { %p208_p7 = pnand %p207_p6, %p201_p3 }
  0x11   :  { %211 = shalt.err (!%p208_p7)
}
  0x12   :  { %s286_s24 = smov 64   ;;  %s287_s25 = smov 4  }
  0x13   :  { %34 = dma.hbm_to_vmem [thread:$0]  %s377_s1, 256, %s29_s13, [#allocation6], %s286_s24, %s286_s24, %s287_s25  }
  0x14   :  { %s212_s30 = scalar_lea.hbm %s376_s0, 128 }
  0x15   :  { %p213_p8 = scmp.ne.s32.totalorder %s376_s0, %s212_s30  ;;  %p216_p9 = scmp.lt.u32.totalorder %s212_s30, %s376_s0 }
  0x17   :  { %p218_p10 = pnand %p216_p9, %p213_p8 }
  0x19   :  { %221 = shalt.err (!%p218_p10)
}
  0x1a   :  { %s222_s8 = scalar_lea.vmem %s312_s15, 128  ;;  %p227_p12 = scmp.lt.s32.totalorder %s312_s15, %s312_s15 }
  0x1b   :  { %p223_p11 = scmp.ne.s32.totalorder %s312_s15, %s222_s8  ;;  %p228_p13 = scmp.lt.s32.totalorder %s222_s8, %s222_s8 }
  0x1d   :  { %p229_p0 = por %p228_p13, %p227_p12 }
  0x1f   :  { %p230_p1 = pnand %p229_p0, %p223_p11 }
  0x21   :  { %233 = shalt.err (!%p230_p1)
}
  0x22   :  { %22 = dma.hbm_to_vmem [thread:$0]  %s376_s0, 128, %s312_s15, [#allocation3], %s286_s24, %s286_s24, %s287_s25  }
  0x23   :  { %s288_s10 = smov [#allocation7]   ;;  %s234_s14 = scalar_lea.hbm %s378_s2, 16 }
  0x24   :  { %s41_s11 = sshll.u32 %s288_s10, 4  ;;  %p235_p2 = scmp.ne.s32.totalorder %s378_s2, %s234_s14  ;;  %s42_s11 = int_to_ptr.vmem [resolvable:$true] %s41_s11 }
  0x25   :  { %p238_p3 = scmp.lt.u32.totalorder %s234_s14, %s378_s2 }
  0x27   :  { %p240_p4 = pnand %p238_p3, %p235_p2 }
  0x29   :  { %243 = shalt.err (!%p240_p4)
}
  0x2a   :  { %s244_s20 = scalar_lea.vmem %s42_s11, 16  ;;  %s248_s0 = scalar_lea.vmem %s42_s11, 32 }
  0x2b   :  { %p245_p5 = scmp.ne.s32.totalorder %s42_s11, %s244_s20  ;;  %p249_p6 = scmp.lt.s32.totalorder %s42_s11, %s42_s11 }
  0x2c   :  { %p250_p7 = scmp.lt.s32.totalorder %s248_s0, %s244_s20 }
  0x2e   :  { %p251_p8 = por %p250_p7, %p249_p6 }
  0x30   :  { %p252_p9 = pnand %p251_p8, %p245_p5 }
  0x32   :  { %255 = shalt.err (!%p252_p9)
}
  0x33   :  { %44 = dma.hbm_to_vmem [thread:$0]  %s378_s2, 16, %s42_s11, [#allocation6]  }
  0x34   :  { %278 = dma.done.wait [#allocation3], 128  }
  0x35   :  { %279 = vsyncadd [#allocation3], 4294967168 }
  0x36   :  { %280 = dma.done.wait [#allocation6], 272  }
  0x37   :  { %281 = vsyncadd [#allocation6], 4294967024  ;;  %v289_v0 = vmov 0.0   ;;  %vm290_vm0 = vmmov 0   ;;  %v187_v1 = vld [vmem:[#allocation5] sm:$0xff]   ;;  %v188_v2 = vld [vmem:[#allocation5 + $0x8] sm:$0xff]  }
  0x38   :  { %171 = vmatprep.subr.bf16.mxu0 %v289_v0  ;;  %175 = vmatprep.mubr.msk.bf16.mxu0 %vm290_vm0, %v289_v0  ;;  %v189_v3 = vld [vmem:[#allocation2] sm:$0xff]   ;;  %vm85_vm1 = vcmask 261120   ;;  %v159_v4 = vld [vmem:[#allocation7] ss:$0 sm:$0xff]  ;;  %vm138_vm2 = vcmask 519168   ;;  %s291_s2 = smov [#allocation8]  }
  0x39   :  { %172 = vmatpush3.bf16.msra.mxu0 %v187_v1  ;;  %s146_s22 = sshll.u32 %s291_s2, 4  ;;  %s147_s22 = int_to_ptr.vmem [resolvable:$true] %s146_s22 }
  0x3a   :  { %173 = vmatprep.subr.bf16.mxu0 %v289_v0  ;;  %s256_s23 = scalar_lea.vmem %s147_s22, 128  ;;  %p261_p11 = scmp.lt.s32.totalorder %s147_s22, %s147_s22 }
  0x3b   :  { %p257_p10 = scmp.ne.s32.totalorder %s147_s22, %s256_s23  ;;  %p262_p12 = scmp.lt.s32.totalorder %s256_s23, %s256_s23 }
  0x3d   :  { %174 = vmatpush3.bf16.msra.mxu0 %v188_v2  ;;  %p263_p13 = por %p262_p12, %p261_p11 }
  0x3f   :  { %p264_p0 = pnand %p263_p13, %p257_p10 }
  0x40   :  { %176 = vmatmul.mubr.msk.bf16.vlgmr.msra.gmra.mrb[0].mxu0 %vm85_vm1, %v189_v3 }
 0x113   :  { %v123_v5 = vpop.f32.mrb[0].mxu0 }
 0x114   :  { %v124_v6 = vadd.f32 %v159_v4, %v123_v5  ;;  %v177_v7 = vpop.f32.mrb[1].mxu0 }
 0x115   :  { %v126_v8 = vpop.f32.mrb[2].mxu0 }
 0x116   :  { %v166_v9 = vpack.c.bf16 %v124_v6, %v124_v6  ;;  %v127_v10 = vadd.f32 %v159_v4, %v126_v8  ;;  %v178_v11 = vpop.f32.mrb[3].mxu0 }
 0x118   :  { %v167_v12 = vpack.c.bf16 %v127_v10, %v127_v10  ;;  %139 = vst.msk [vmem:[#allocation8] sm:$0xf] %vm138_vm2, %v166_v9 }
 0x11a   :  { %140 = vst.msk [vmem:[#allocation8 + $0x4] sm:$0xf] %vm138_vm2, %v167_v12 }
 0x11b   :  { %267 = shalt.err (!%p264_p0)
}
 0x11c   :  { %s268_s28 = scalar_lea.hbm %s379_s3, 128 }
 0x11d   :  { %p269_p1 = scmp.ne.s32.totalorder %s379_s3, %s268_s28  ;;  %p272_p2 = scmp.lt.u32.totalorder %s268_s28, %s379_s3 }
 0x11f   :  { %p274_p3 = pnand %p272_p2, %p269_p1 }
 0x121   :  { %277 = shalt.err (!%p274_p3)
}
 0x122   :  { %152 = dma.vmem_to_hbm [thread:$0]  %s147_s22, 128, %s379_s3, [#allocation4], %s286_s24, %s286_s24, %s287_s25  }
 0x123   :  { %282 = dma.done.wait [#allocation4], 128  }
 0x124   :  { %283 = vsyncadd [#allocation4], 4294967168 }
 0x125   :  { %156 = vsyncpa [#allocation3], 1 }
 0x126   :  { %157 = vsyncpa [#allocation6], 1 }
 0x127   :  { %158 = vsyncpa [#allocation4], 1 }

// kernel: transformer_forward.33
= control target key start
LH: loop header
LB: loop body
LE: loop exit
PB: predicated region body
PF: predicated region fallthrough
CT: control target
= control target key end

     0   :  { %8 = vsyncpa [#allocation3], 0  ;;  %s376_s0 = inlined_call_operand.hbm [shape: bf16[16,32], index: 0, kind: input, shape index: {}]   ;;  %s377_s1 = inlined_call_operand.hbm [shape: bf16[32,32], index: 1, kind: input, shape index: {}]   ;;  %s378_s2 = inlined_call_operand.hbm [shape: f32[1,32], index: 2, kind: input, shape index: {}]   ;;  %s379_s3 = inlined_call_operand.hbm [shape: bf16[16,32], index: 3, kind: output, shape index: {}]  }
   0x1   :  { %9 = vsyncpa [#allocation6], 0 }
   0x2   :  { %10 = vsyncpa [#allocation4], 0  ;;  %s284_s12 = smov [#allocation5]   ;;  %s285_s14 = smov [#allocation2]  }
   0x3   :  { %s28_s13 = sshll.u32 %s284_s12, 4  ;;  %s16_s15 = sshll.u32 %s285_s14, 4  ;;  %s29_s13 = int_to_ptr.vmem [resolvable:$true] %s28_s13  ;;  %s312_s15 = int_to_ptr.vmem [resolvable:$true] %s16_s15 }
   0x4   :  { %s190_s18 = scalar_lea.hbm %s377_s1, 256 }
   0x5   :  { %p191_p0 = scmp.ne.s32.totalorder %s377_s1, %s190_s18  ;;  %p194_p1 = scmp.lt.u32.totalorder %s190_s18, %s377_s1 }
   0x7   :  { %p196_p2 = pnand %p194_p1, %p191_p0 }
   0x9   :  { %199 = shalt.err (!%p196_p2)
}
   0xa   :  { %s200_s23 = scalar_lea.vmem %s29_s13, 256  ;;  %p205_p4 = scmp.lt.s32.totalorder %s29_s13, %s29_s13 }
   0xb   :  { %p201_p3 = scmp.ne.s32.totalorder %s29_s13, %s200_s23  ;;  %p206_p5 = scmp.lt.s32.totalorder %s200_s23, %s200_s23 }
   0xd   :  { %p207_p6 = por %p206_p5, %p205_p4 }
   0xf   :  { %p208_p7 = pnand %p207_p6, %p201_p3 }
  0x11   :  { %211 = shalt.err (!%p208_p7)
}
  0x12   :  { %s286_s24 = smov 64   ;;  %s287_s25 = smov 4  }
  0x13   :  { %34 = dma.hbm_to_vmem [thread:$0]  %s377_s1, 256, %s29_s13, [#allocation6], %s286_s24, %s286_s24, %s287_s25  }
  0x14   :  { %s212_s30 = scalar_lea.hbm %s376_s0, 128 }
  0x15   :  { %p213_p8 = scmp.ne.s32.totalorder %s376_s0, %s212_s30  ;;  %p216_p9 = scmp.lt.u32.totalorder %s212_s30, %s376_s0 }
  0x17   :  { %p218_p10 = pnand %p216_p9, %p213_p8 }
  0x19   :  { %221 = shalt.err (!%p218_p10)
}
  0x1a   :  { %s222_s8 = scalar_lea.vmem %s312_s15, 128  ;;  %p227_p12 = scmp.lt.s32.totalorder %s312_s15, %s312_s15 }
  0x1b   :  { %p223_p11 = scmp.ne.s32.totalorder %s312_s15, %s222_s8  ;;  %p228_p13 = scmp.lt.s32.totalorder %s222_s8, %s222_s8 }
  0x1d   :  { %p229_p0 = por %p228_p13, %p227_p12 }
  0x1f   :  { %p230_p1 = pnand %p229_p0, %p223_p11 }
  0x21   :  { %233 = shalt.err (!%p230_p1)
}
  0x22   :  { %22 = dma.hbm_to_vmem [thread:$0]  %s376_s0, 128, %s312_s15, [#allocation3], %s286_s24, %s286_s24, %s287_s25  }
  0x23   :  { %s288_s10 = smov [#allocation7]   ;;  %s234_s14 = scalar_lea.hbm %s378_s2, 16 }
  0x24   :  { %s41_s11 = sshll.u32 %s288_s10, 4  ;;  %p235_p2 = scmp.ne.s32.totalorder %s378_s2, %s234_s14  ;;  %s42_s11 = int_to_ptr.vmem [resolvable:$true] %s41_s11 }
  0x25   :  { %p238_p3 = scmp.lt.u32.totalorder %s234_s14, %s378_s2 }
  0x27   :  { %p240_p4 = pnand %p238_p3, %p235_p2 }
  0x29   :  { %243 = shalt.err (!%p240_p4)
}
  0x2a   :  { %s244_s20 = scalar_lea.vmem %s42_s11, 16  ;;  %s248_s0 = scalar_lea.vmem %s42_s11, 32 }
  0x2b   :  { %p245_p5 = scmp.ne.s32.totalorder %s42_s11, %s244_s20  ;;  %p249_p6 = scmp.lt.s32.totalorder %s42_s11, %s42_s11 }
  0x2c   :  { %p250_p7 = scmp.lt.s32.totalorder %s248_s0, %s244_s20 }
  0x2e   :  { %p251_p8 = por %p250_p7, %p249_p6 }
  0x30   :  { %p252_p9 = pnand %p251_p8, %p245_p5 }
  0x32   :  { %255 = shalt.err (!%p252_p9)
}
  0x33   :  { %44 = dma.hbm_to_vmem [thread:$0]  %s378_s2, 16, %s42_s11, [#allocation6]  }
  0x34   :  { %278 = dma.done.wait [#allocation3], 128  }
  0x35   :  { %279 = vsyncadd [#allocation3], 4294967168 }
  0x36   :  { %280 = dma.done.wait [#allocation6], 272  }
  0x37   :  { %281 = vsyncadd [#allocation6], 4294967024  ;;  %v289_v0 = vmov 0.0   ;;  %vm290_vm0 = vmmov 0   ;;  %v187_v1 = vld [vmem:[#allocation5] sm:$0xff]   ;;  %v188_v2 = vld [vmem:[#allocation5 + $0x8] sm:$0xff]  }
  0x38   :  { %171 = vmatprep.subr.bf16.mxu0 %v289_v0  ;;  %175 = vmatprep.mubr.msk.bf16.mxu0 %vm290_vm0, %v289_v0  ;;  %v189_v3 = vld [vmem:[#allocation2] sm:$0xff]   ;;  %vm85_vm1 = vcmask 261120   ;;  %v159_v4 = vld [vmem:[#allocation7] ss:$0 sm:$0xff]  ;;  %vm138_vm2 = vcmask 257024   ;;  %s291_s2 = smov [#allocation8]  }
  0x39   :  { %172 = vmatpush3.bf16.msra.mxu0 %v187_v1  ;;  %s146_s22 = sshll.u32 %s291_s2, 4  ;;  %s147_s22 = int_to_ptr.vmem [resolvable:$true] %s146_s22 }
  0x3a   :  { %173 = vmatprep.subr.bf16.mxu0 %v289_v0  ;;  %s256_s23 = scalar_lea.vmem %s147_s22, 128  ;;  %p261_p11 = scmp.lt.s32.totalorder %s147_s22, %s147_s22 }
  0x3b   :  { %p257_p10 = scmp.ne.s32.totalorder %s147_s22, %s256_s23  ;;  %p262_p12 = scmp.lt.s32.totalorder %s256_s23, %s256_s23 }
  0x3d   :  { %174 = vmatpush3.bf16.msra.mxu0 %v188_v2  ;;  %p263_p13 = por %p262_p12, %p261_p11 }
  0x3f   :  { %p264_p0 = pnand %p263_p13, %p257_p10 }
  0x40   :  { %176 = vmatmul.mubr.msk.bf16.vlgmr.msra.gmra.mrb[0].mxu0 %vm85_vm1, %v189_v3 }
 0x113   :  { %v123_v5 = vpop.f32.mrb[0].mxu0 }
 0x114   :  { %v124_v6 = vadd.f32 %v159_v4, %v123_v5  ;;  %v177_v7 = vpop.f32.mrb[1].mxu0 }
 0x115   :  { %v126_v8 = vpop.f32.mrb[2].mxu0 }
 0x116   :  { %v166_v9 = vpack.c.bf16 %v124_v6, %v124_v6  ;;  %v127_v10 = vadd.f32 %v159_v4, %v126_v8  ;;  %v178_v11 = vpop.f32.mrb[3].mxu0 }
 0x118   :  { %v167_v12 = vpack.c.bf16 %v127_v10, %v127_v10  ;;  %139 = vst.msk [vmem:[#allocation8] sm:$0xf] %vm138_vm2, %v166_v9 }
 0x11a   :  { %140 = vst.msk [vmem:[#allocation8 + $0x4] sm:$0xf] %vm138_vm2, %v167_v12 }
 0x11b   :  { %267 = shalt.err (!%p264_p0)
}
 0x11c   :  { %s268_s28 = scalar_lea.hbm %s379_s3, 128 }
 0x11d   :  { %p269_p1 = scmp.ne.s32.totalorder %s379_s3, %s268_s28  ;;  %p272_p2 = scmp.lt.u32.totalorder %s268_s28, %s379_s3 }
 0x11f   :  { %p274_p3 = pnand %p272_p2, %p269_p1 }
 0x121   :  { %277 = shalt.err (!%p274_p3)
}
 0x122   :  { %152 = dma.vmem_to_hbm [thread:$0]  %s147_s22, 128, %s379_s3, [#allocation4], %s286_s24, %s286_s24, %s287_s25  }
 0x123   :  { %282 = dma.done.wait [#allocation4], 128  }
 0x124   :  { %283 = vsyncadd [#allocation4], 4294967168 }
 0x125   :  { %156 = vsyncpa [#allocation3], 1 }
 0x126   :  { %157 = vsyncpa [#allocation6], 1 }
 0x127   :  { %158 = vsyncpa [#allocation4], 1 }

// kernel: transformer_forward.36
= control target key start
LH: loop header
LB: loop body
LE: loop exit
PB: predicated region body
PF: predicated region fallthrough
CT: control target
= control target key end

     0   :  { %9 = vsyncpa [#allocation3], 0  ;;  %s410_s0 = inlined_call_operand.hbm [shape: bf16[16,32], index: 0, kind: input, shape index: {}]   ;;  %s411_s1 = inlined_call_operand.hbm [shape: bf16[16,32], index: 1, kind: input, shape index: {}]   ;;  %s412_s2 = inlined_call_operand.hbm [shape: f32[1,32], index: 2, kind: input, shape index: {}]   ;;  %s413_s3 = inlined_call_operand.hbm [shape: f32[1,32], index: 3, kind: input, shape index: {}]   ;;  %s414_s4 = inlined_call_operand.hbm [shape: bf16[16,32], index: 4, kind: output, shape index: {}]  }
   0x1   :  { %10 = vsyncpa [#allocation6], 0 }
   0x2   :  { %11 = vsyncpa [#allocation9], 0 }
   0x3   :  { %12 = vsyncpa [#allocation4], 0  ;;  %s298_s15 = smov [#allocation5]   ;;  %s299_s17 = smov [#allocation2]  }
   0x4   :  { %s30_s16 = sshll.u32 %s298_s15, 4  ;;  %s18_s18 = sshll.u32 %s299_s17, 4  ;;  %s31_s16 = int_to_ptr.vmem [resolvable:$true] %s30_s16  ;;  %s330_s18 = int_to_ptr.vmem [resolvable:$true] %s18_s18 }
   0x5   :  { %s180_s21 = scalar_lea.hbm %s411_s1, 128 }
   0x6   :  { %p181_p0 = scmp.ne.s32.totalorder %s411_s1, %s180_s21  ;;  %p184_p1 = scmp.lt.u32.totalorder %s180_s21, %s411_s1 }
   0x8   :  { %p186_p2 = pnand %p184_p1, %p181_p0 }
   0xa   :  { %189 = shalt.err (!%p186_p2)
}
   0xb   :  { %s190_s26 = scalar_lea.vmem %s31_s16, 128  ;;  %p195_p4 = scmp.lt.s32.totalorder %s31_s16, %s31_s16 }
   0xc   :  { %p191_p3 = scmp.ne.s32.totalorder %s31_s16, %s190_s26  ;;  %p196_p5 = scmp.lt.s32.totalorder %s190_s26, %s190_s26 }
   0xe   :  { %p197_p6 = por %p196_p5, %p195_p4 }
  0x10   :  { %p198_p7 = pnand %p197_p6, %p191_p3 }
  0x12   :  { %201 = shalt.err (!%p198_p7)
}
  0x13   :  { %s300_s27 = smov 64   ;;  %s301_s28 = smov 4  }
  0x14   :  { %36 = dma.hbm_to_vmem [thread:$0]  %s411_s1, 128, %s31_s16, [#allocation6], %s300_s27, %s300_s27, %s301_s28  }
  0x15   :  { %s202_s7 = scalar_lea.hbm %s410_s0, 128 }
  0x16   :  { %p203_p8 = scmp.ne.s32.totalorder %s410_s0, %s202_s7  ;;  %p206_p9 = scmp.lt.u32.totalorder %s202_s7, %s410_s0 }
  0x18   :  { %p208_p10 = pnand %p206_p9, %p203_p8 }
  0x1a   :  { %211 = shalt.err (!%p208_p10)
}
  0x1b   :  { %s212_s12 = scalar_lea.vmem %s330_s18, 128  ;;  %p217_p12 = scmp.lt.s32.totalorder %s330_s18, %s330_s18 }
  0x1c   :  { %p213_p11 = scmp.ne.s32.totalorder %s330_s18, %s212_s12  ;;  %p218_p13 = scmp.lt.s32.totalorder %s212_s12, %s212_s12 }
  0x1e   :  { %p219_p0 = por %p218_p13, %p217_p12 }
  0x20   :  { %p220_p1 = pnand %p219_p0, %p213_p11 }
  0x22   :  { %223 = shalt.err (!%p220_p1)
}
  0x23   :  { %24 = dma.hbm_to_vmem [thread:$0]  %s410_s0, 128, %s330_s18, [#allocation3], %s300_s27, %s300_s27, %s301_s28  }
  0x24   :  { %s302_s14 = smov [#allocation7]   ;;  %s303_s16 = smov [#allocation8]  }
  0x25   :  { %s43_s15 = sshll.u32 %s302_s14, 4  ;;  %s53_s17 = sshll.u32 %s303_s16, 4  ;;  %s44_s15 = int_to_ptr.vmem [resolvable:$true] %s43_s15  ;;  %s54_s17 = int_to_ptr.vmem [resolvable:$true] %s53_s17 }
  0x26   :  { %s224_s21 = scalar_lea.hbm %s412_s2, 16 }
  0x27   :  { %p225_p2 = scmp.ne.s32.totalorder %s412_s2, %s224_s21  ;;  %p228_p3 = scmp.lt.u32.totalorder %s224_s21, %s412_s2 }
  0x29   :  { %p230_p4 = pnand %p228_p3, %p225_p2 }
  0x2b   :  { %233 = shalt.err (!%p230_p4)
}
  0x2c   :  { %s234_s0 = scalar_lea.vmem %s44_s15, 16  ;;  %s238_s18 = scalar_lea.vmem %s44_s15, 32 }
  0x2d   :  { %p235_p5 = scmp.ne.s32.totalorder %s44_s15, %s234_s0  ;;  %p239_p6 = scmp.lt.s32.totalorder %s44_s15, %s44_s15 }
  0x2e   :  { %p240_p7 = scmp.lt.s32.totalorder %s238_s18, %s234_s0 }
  0x30   :  { %p241_p8 = por %p240_p7, %p239_p6 }
  0x32   :  { %p242_p9 = pnand %p241_p8, %p235_p5 }
  0x34   :  { %245 = shalt.err (!%p242_p9)
}
  0x35   :  { %46 = dma.hbm_to_vmem [thread:$0]  %s412_s2, 16, %s44_s15, [#allocation6]  }
  0x36   :  { %s246_s6 = scalar_lea.hbm %s413_s3, 16 }
  0x37   :  { %p247_p10 = scmp.ne.s32.totalorder %s413_s3, %s246_s6  ;;  %p250_p11 = scmp.lt.u32.totalorder %s246_s6, %s413_s3 }
  0x39   :  { %p252_p12 = pnand %p250_p11, %p247_p10 }
  0x3b   :  { %255 = shalt.err (!%p252_p12)
}
  0x3c   :  { %s256_s11 = scalar_lea.vmem %s54_s17, 16  ;;  %s260_s12 = scalar_lea.vmem %s54_s17, 32 }
  0x3d   :  { %p257_p13 = scmp.ne.s32.totalorder %s54_s17, %s256_s11  ;;  %p261_p0 = scmp.lt.s32.totalorder %s54_s17, %s54_s17 }
  0x3e   :  { %p262_p1 = scmp.lt.s32.totalorder %s260_s12, %s256_s11 }
  0x40   :  { %p263_p2 = por %p262_p1, %p261_p0 }
  0x42   :  { %p264_p3 = pnand %p263_p2, %p257_p13 }
  0x44   :  { %267 = shalt.err (!%p264_p3)
}
  0x45   :  { %56 = dma.hbm_to_vmem [thread:$0]  %s413_s3, 16, %s54_s17, [#allocation9]  }
  0x46   :  { %290 = dma.done.wait [#allocation3], 128  }
  0x47   :  { %291 = vsyncadd [#allocation3], 4294967168 }
  0x48   :  { %292 = dma.done.wait [#allocation6], 144  }
  0x49   :  { %293 = vsyncadd [#allocation6], 4294967152 }
  0x4a   :  { %294 = dma.done.wait [#allocation9], 16  }
  0x4b   :  { %295 = vsyncadd [#allocation9], 4294967280  ;;  %v162_v0 = vld [vmem:[#allocation2] sm:$0xff]   ;;  %v166_v1 = vld [vmem:[#allocation5] sm:$0xff]   ;;  %vm79_vm0 = vcmask 261120   ;;  %vm133_vm1 = vcmask 257024  }
  0x4c   :  { %v163_v2 = vunpack.c.l.bf16 %v162_v0  ;;  %v167_v3 = vunpack.c.l.bf16 %v166_v1  ;;  %v164_v4 = vunpack.c.h.bf16 %v162_v0  ;;  %v168_v5 = vunpack.c.h.bf16 %v166_v1  ;;  %v155_v27 = vld [vmem:[#allocation7] ss:$0 sm:$0xff]  ;;  %v156_v29 = vld [vmem:[#allocation8] ss:$0 sm:$0xff]  ;;  %s304_s3 = smov [#allocation10]  }
  0x4d   :  { %s141_s13 = sshll.u32 %s304_s3, 4  ;;  %s142_s13 = int_to_ptr.vmem [resolvable:$true] %s141_s13 }
  0x4e   :  { %v77_v6 = vadd.f32 %v167_v3, %v163_v2  ;;  %v78_v7 = vadd.f32 %v168_v5, %v164_v4  ;;  %s268_s14 = scalar_lea.vmem %s142_s13, 128  ;;  %p273_p5 = scmp.lt.s32.totalorder %s142_s13, %s142_s13 }
  0x4f   :  { %p269_p4 = scmp.ne.s32.totalorder %s142_s13, %s268_s14  ;;  %p274_p6 = scmp.lt.s32.totalorder %s268_s14, %s268_s14 }
  0x50   :  { %v80_v8 = vsel %vm79_vm0, %v77_v6, 0.0  ;;  %v83_v9 = vsel %vm79_vm0, %v78_v7, 0.0 }
  0x51   :  { %81 = vadd.xlane.f32.xlu0 %v80_v8  ;;  %p275_p7 = por %p274_p6, %p273_p5 }
  0x53   :  { %p276_p8 = pnand %p275_p7, %p269_p4 }
  0x55   :  { %84 = vadd.xlane.f32.xlu0 %v83_v9 }
  0xde   :  { %v82_v10 = vpop.xlane.xlu0 %81 }
  0xdf   :  { %v87_v11 = vmul.f32 0.03125, %v82_v10 }
  0xe1   :  { %v89_v12 = vsub.f32 %v77_v6, %v87_v11 }
  0xe2   :  { %v85_v13 = vpop.xlane.xlu0 %84 }
  0xe3   :  { %v88_v14 = vmul.f32 0.03125, %v85_v13  ;;  %v91_v15 = vmul.f32 %v89_v12, %v89_v12 }
  0xe5   :  { %v90_v16 = vsub.f32 %v78_v7, %v88_v14  ;;  %v93_v17 = vsel %vm79_vm0, %v91_v15, 0.0 }
  0xe6   :  { %94 = vadd.xlane.f32.xlu1 %v93_v17 }
  0xe7   :  { %v92_v18 = vmul.f32 %v90_v16, %v90_v16 }
  0xe9   :  { %v96_v19 = vsel %vm79_vm0, %v92_v18, 0.0 }
  0xea   :  { %97 = vadd.xlane.f32.xlu1 %v96_v19 }
 0x173   :  { %v95_v20 = vpop.xlane.xlu1 %94 }
 0x174   :  { %v99_v21 = vmul.f32 0.03125, %v95_v20 }
 0x176   :  { %v101_v22 = vadd.f32 1e-05, %v99_v21 }
 0x177   :  { %v98_v23 = vpop.xlane.xlu1 %97 }
 0x178   :  { %176 = vrsqrt.f32 %v101_v22  ;;  %v100_v24 = vmul.f32 0.03125, %v98_v23 }
 0x17a   :  { %v102_v25 = vadd.f32 1e-05, %v100_v24 }
 0x17c   :  { %178 = vrsqrt.f32 %v102_v25 }
 0x182   :  { %v177_v26 = vpop.eup %176 }
 0x183   :  { %v105_v28 = vmul.f32 %v177_v26, %v89_v12 }
 0x185   :  { %v114_v30 = vmul.f32 %v155_v27, %v105_v28 }
 0x186   :  { %v179_v31 = vpop.eup %178 }
 0x187   :  { %v106_v32 = vmul.f32 %v179_v31, %v90_v16  ;;  %v123_v33 = vadd.f32 %v156_v29, %v114_v30 }
 0x189   :  { %v115_v34 = vmul.f32 %v155_v27, %v106_v32  ;;  %v159_v35 = vpack.c.bf16 %v123_v33, %v123_v33 }
 0x18b   :  { %v124_v36 = vadd.f32 %v156_v29, %v115_v34  ;;  %134 = vst.msk [vmem:[#allocation10] sm:$0xf] %vm133_vm1, %v159_v35 }
 0x18d   :  { %v160_v37 = vpack.c.bf16 %v124_v36, %v124_v36 }
 0x18f   :  { %135 = vst.msk [vmem:[#allocation10 + $0x4] sm:$0xf] %vm133_vm1, %v160_v37 }
 0x190   :  { %279 = shalt.err (!%p276_p8)
}
 0x191   :  { %s280_s17 = scalar_lea.hbm %s414_s4, 128 }
 0x192   :  { %p281_p9 = scmp.ne.s32.totalorder %s414_s4, %s280_s17  ;;  %p284_p10 = scmp.lt.u32.totalorder %s280_s17, %s414_s4 }
 0x194   :  { %p286_p11 = pnand %p284_p10, %p281_p9 }
 0x196   :  { %289 = shalt.err (!%p286_p11)
}
 0x197   :  { %147 = dma.vmem_to_hbm [thread:$0]  %s142_s13, 128, %s414_s4, [#allocation4], %s300_s27, %s300_s27, %s301_s28  }
 0x198   :  { %296 = dma.done.wait [#allocation4], 128  }
 0x199   :  { %297 = vsyncadd [#allocation4], 4294967168 }
 0x19a   :  { %151 = vsyncpa [#allocation3], 1 }
 0x19b   :  { %152 = vsyncpa [#allocation6], 1 }
 0x19c   :  { %153 = vsyncpa [#allocation9], 1 }
 0x19d   :  { %154 = vsyncpa [#allocation4], 1 }

// kernel: transformer_forward.35
= control target key start
LH: loop header
LB: loop body
LE: loop exit
PB: predicated region body
PF: predicated region fallthrough
CT: control target
= control target key end

     0   :  { %s2295_s0 = inlined_call_operand.hbm [shape: bf16[2,8,32], index: 0, kind: input, shape index: {}]   ;;  %s2296_s1 = inlined_call_operand.hbm [shape: bf16[2,8,64], index: 1, kind: input, shape index: {}]   ;;  %s2297_s2 = inlined_call_operand.hbm [shape: f32[2,1,8], index: 2, kind: input, shape index: {}]   ;;  %s2298_s3 = inlined_call_operand.hbm [shape: bf16[32,32], index: 3, kind: input, shape index: {}]   ;;  %s2299_s4 = inlined_call_operand.hbm [shape: f32[1,32], index: 4, kind: input, shape index: {}]   ;;  %s2300_s5 = inlined_call_operand.hbm [shape: bf16[2,8,32], index: 5, kind: output, shape index: {}]  }
   0x1   :  { %2315 = sst [smem:[#allocation21_spill]] %s2296_s1 }
   0x2   :  { %2316 = sst [smem:[#allocation22_spill]] %s2298_s3 }
   0x3   :  { %10 = vsyncpa [#allocation6], 0 }
   0x4   :  { %12 = vsyncpa [#allocation6 + $0x1], 0 }
   0x5   :  { %13 = vsyncpa [#allocation9], 0 }
   0x6   :  { %15 = vsyncpa [#allocation9 + $0x1], 0 }
   0x7   :  { %16 = vsyncpa [#allocation12], 0 }
   0x8   :  { %17 = vsyncpa [#allocation7], 0 }
   0x9   :  { %19 = vsyncpa [#allocation7 + $0x1], 0  ;;  %s1798_s18 = smov 0   ;;  %s1800_s19 = smov 0  }
   0xa   :  { %s1802_s20 = smov 0   ;;  %s1804_s21 = smov 0  }
   0xb   :  { %s1806_s22 = smov 0   ;;  %s1808_s23 = smov 0  }
   0xc LB: > { %s1829_s24 = sadd.s32 4294967295, %s1744_s23   ;;  %s1250_s25 = sadd.s32 4294967294, %s1744_s23   ;;  %s1744_s23 = sphi %s1808_s23, %s25_s23   ;;  %s1740_s22 = sphi %s1806_s22, %s2350_s22   ;;  %s1736_s21 = sphi %s1804_s21, %s2349_s21   ;;  %s1732_s20 = sphi %s1802_s20, %s2348_s20   ;;  %s1728_s19 = sphi %s1800_s19, %s2347_s19   ;;  %s1724_s18 = sphi %s1798_s18, %s2346_s18  }
   0xd   : > { %p66_p0 = scmp.ne.s32.totalorder %s1728_s19, %s1724_s18  ;;  %p2301_p1 = scmp.eq.s32.totalorder %s1829_s24, 0 }
   0xe   : > { %p196_p3 = scmp.eq.s32.totalorder %s1250_s25, 1  ;;  %p1251_p5 = scmp.ge.s32.totalorder %s1744_s23, 1 }
   0xf   : > { %p1838_p4 = por %p2301_p1, %p66_p0  ;;  %p203_p7 = scmp.lt.s32.totalorder %s1744_s23, 3 }
  0x10   : > { %p1843_p6 = por %p196_p3, %p66_p0  ;;  %s1746_s29 = smov [#allocation11]  }
  0x11   : > { %s2317_s26 = scalar_select %p1838_p4, 1, 0 }
  0x12   : > { %s2318_s27 = scalar_select %p1843_p6, 1, 0 }
  0x13   : > { %p1848_p8 = pnand %p1251_p5, %p203_p7  ;;  %s215_s30 = sshll.u32 %s1746_s29, 4  ;;  %s216_s30 = int_to_ptr.vmem [resolvable:$true] %s215_s30 }
  0x14   : > { %s44_s7 = sadd.s32 1, %s1740_s22  ;;  %s2321_s3 = sld [smem:[#allocation22_spill]] }
  0x15   : > { %s2319_s28 = scalar_select %p1848_p8, 1, 0 }
  0x16   : > { %p1381_p9 = pneg %p1848_p8 }
  0x18   : > { %p1857_p11 = pnand %p1381_p9, %p2301_p1 }
  0x1a   : > { %s2320_s6 = scalar_select %p1857_p11, 1, 0 }
  0x1b   : > { %s1508_s10 = scalar_lea.hbm %s2321_s3, 256  ;;  %p2307_p13 = pneg %p1857_p11 }
  0x1c   : > { %p1509_p12 = scmp.ne.s32.totalorder %s2321_s3, %s1508_s10  ;;  %p1515_p5 = scmp.lt.u32.totalorder %s1508_s10, %s2321_s3 }
  0x1e   : > { %p1511_p0 = pnand %p2307_p13, %p1509_p12 }
  0x20   : > { %p1512_p3 = pneg %p1511_p0 }
  0x22   : > { %p1517_p7 = pnand %p1515_p5, %p1512_p3 }
  0x24   : > { %1520 = shalt.err (!%p1517_p7)
}
  0x25   : > { %s1521_s15 = scalar_lea.vmem %s216_s30, 256  ;;  %p1529_p2 = scmp.lt.s32.totalorder %s216_s30, %s216_s30 }
  0x26   : > { %p1522_p9 = scmp.ne.s32.totalorder %s216_s30, %s1521_s15  ;;  %p1530_p6 = scmp.lt.s32.totalorder %s1521_s15, %s1521_s15 }
  0x28   : > { %p1524_p10 = pnand %p1522_p9, %p2307_p13  ;;  %p1531_p4 = por %p1530_p6, %p1529_p2 }
  0x2a   : > { %p1525_p1 = pneg %p1524_p10 }
  0x2c   : > { %p1532_p8 = pnand %p1531_p4, %p1525_p1 }
  0x2e   : > { %1535 = shalt.err (!%p1532_p8)
}
  0x2f   : > { %s1747_s16 = smov 64   ;;  %s1748_s17 = smov 4  }
  0x30   : > { %1384 = dma.hbm_to_vmem [thread:$0]  (!%p1857_p11), %s2321_s3, 256, %s216_s30, [#allocation12], %s1747_s16, %s1747_s16, %s1748_s17  }
  0x31   : > { %p46_p1 = scmp.ge.s32.totalorder %s44_s7, 2  ;;  %s53_s8 = sadd.s32 1, %s1732_s20 }
  0x32   : > { %p60_p2 = scmp.ne.s32.totalorder %s1732_s20, %s1728_s19  ;;  %p61_p4 = scmp.eq.s32.totalorder %s1744_s23, 0 }
  0x33   : > { %s2352_s7 = smov (%p46_p1, %s44_s7), 0  ;;  %p2323_p8 = scmp.eq.s32.totalorder %s1829_s24, 1 }
  0x34   : > { %2322 = sst [smem:[#allocation19_spill]] %s2352_s7  ;;  %p62_p6 = por %p61_p4, %p60_p2 }
  0x35   : > { %p1892_p10 = por %p2323_p8, %p60_p2  ;;  %s48_s10 = ssub.s32 %s1740_s22, %s2352_s7 }
  0x36   : > { %p1404_p12 = scmp.lt.s32.totalorder %s1744_s23, 2  ;;  %p51_p0 = scmp.eq.s32.totalorder %s48_s10, 0 }
  0x37   : > { %s2324_s9 = scalar_select %p1892_p10, 1, 0 }
  0x38   : > { %s1900_s11 = sand.u32 1, %s1732_s20   ;;  %s2306_s12 = sshll.u32 %s1740_s22, 6 }
  0x39   : > { %s2305_s30 = sshll.u32 %s1900_s11, 2  ;;  %p1907_p3 = pnand %p1404_p12, %p62_p6 }
  0x3a   : > { %s1905_s13 = scalar_select %p51_p0, %s1732_s20, %s53_s8  }
  0x3b   : > { %s2326_s14 = scalar_select %p1907_p3, 1, 0 }
  0x3c   : > { %2325 = sst [smem:[#allocation20_spill]] %s1905_s13  ;;  %s259_s15 = sand.u32 1, %s1744_s23  }
  0x3d   : > { %s2327_s1 = sld [smem:[#allocation21_spill]]  ;;  %s263_s29 = scalar_lea.vmem [#allocation8], %s2305_s30 }
  0x3e   : > { %s271_s8 = sshll.u32 %s263_s29, 4  ;;  %s1749_s10 = smov [#allocation13]   ;;  %s1921_s8 = int_to_ptr.vmem [resolvable:$true] %s271_s8 }
  0x3f   : > { %s1923_s3 = sshll.u32 %s1749_s10, 4  ;;  %s1925_s7 = scalar_lea.sflag [#allocation9], %s259_s15  ;;  %s230_s3 = int_to_ptr.vmem [resolvable:$true] %s1923_s3 }
  0x40   : > { %p1931_p7 = pneg %p1907_p3 }
  0x42   : > { %s2328_s16 = scalar_select %p1931_p7, 1, 0 }
  0x43   : > { %s1917_s25 = scalar_lea.hbm %s2327_s1, %s2306_s12  ;;  %s1541_s30 = scalar_lea.hbm %s2327_s1, 128 }
  0x44   : > { %s1536_s13 = scalar_lea.hbm %s1917_s25, 64  ;;  %p1542_p2 = scmp.lt.u32.totalorder %s1917_s25, %s2327_s1 }
  0x45   : > { %p1537_p5 = scmp.ne.s32.totalorder %s1917_s25, %s1536_s13  ;;  %p1543_p4 = scmp.lt.u32.totalorder %s1541_s30, %s1536_s13 }
  0x46   : > { %p1545_p8 = scmp.lt.u32.totalorder %s1536_s13, %s1917_s25 }
  0x47   : > { %p1539_p9 = pnand %p1931_p7, %p1537_p5  ;;  %p1544_p6 = por %p1543_p4, %p1542_p2 }
  0x49   : > { %p1540_p1 = pneg %p1539_p9  ;;  %p1546_p12 = por %p1545_p8, %p1544_p6 }
  0x4b   : > { %p1547_p0 = pnand %p1546_p12, %p1540_p1 }
  0x4d   : > { %1550 = shalt.err (!%p1547_p0)
}
  0x4e   : > { %s1551_s15 = scalar_lea.vmem %s1921_s8, 64  ;;  %s1750_s17 = smov [#allocation8]  }
  0x4f   : > { %p1552_p5 = scmp.ne.s32.totalorder %s1921_s8, %s1551_s15  ;;  %s1556_s29 = sshll.u32 %s1750_s17, 4  ;;  %s1557_s29 = int_to_ptr.vmem [resolvable:$false] %s1556_s29 }
  0x50   : > { %s1558_s12 = scalar_lea.vmem %s1557_s29, 128  ;;  %p1559_p10 = scmp.lt.s32.totalorder %s1921_s8, %s1557_s29 }
  0x51   : > { %p1554_p9 = pnand %p1552_p5, %p1931_p7  ;;  %p1560_p11 = scmp.lt.s32.totalorder %s1558_s12, %s1551_s15 }
  0x53   : > { %p1555_p13 = pneg %p1554_p9  ;;  %p1561_p2 = por %p1560_p11, %p1559_p10 }
  0x55   : > { %p1562_p4 = pnand %p1561_p2, %p1555_p13 }
  0x57   : > { %1565 = shalt.err (!%p1562_p4)
}
  0x58   : > { %1394 = dma.hbm_to_vmem [thread:$0]  (!%p1907_p3), %s1917_s25, 64, %s1921_s8, %s1925_s7  }
  0x59   : > { %s1566_s10 = scalar_lea.hbm %s2299_s4, 16  ;;  %p2329_p11 = scmp.ne.s32.totalorder %s2320_s6, 0 }
  0x5a   : > { %p1567_p1 = scmp.ne.s32.totalorder %s2299_s4, %s1566_s10  ;;  %p1573_p8 = scmp.lt.u32.totalorder %s1566_s10, %s2299_s4 }
  0x5b   : > { %p2330_p13 = pneg %p2329_p11 }
  0x5d   : > { %p1569_p10 = pnand %p1567_p1, %p2330_p13 }
  0x5f   : > { %p1570_p6 = pneg %p1569_p10 }
  0x61   : > { %p1575_p12 = pnand %p1573_p8, %p1570_p6 }
  0x63   : > { %1578 = shalt.err (!%p1575_p12)
}
  0x64   : > { %s1579_s25 = scalar_lea.vmem %s230_s3, 16  ;;  %p2331_p5 = pmov %p2330_p13 }
  0x65   : > { %p1580_p0 = scmp.ne.s32.totalorder %s230_s3, %s1579_s25  ;;  %s1586_s8 = scalar_lea.vmem %s230_s3, 32 }
  0x66   : > { %p1587_p4 = scmp.lt.s32.totalorder %s230_s3, %s230_s3  ;;  %p1588_p3 = scmp.lt.s32.totalorder %s1586_s8, %s1579_s25 }
  0x67   : > { %p1582_p9 = pnand %p1580_p0, %p2331_p5 }
  0x68   : > { %p1589_p7 = por %p1588_p3, %p1587_p4 }
  0x69   : > { %p1583_p2 = pneg %p1582_p9 }
  0x6b   : > { %p1590_p1 = pnand %p1589_p7, %p1583_p2 }
  0x6d   : > { %1593 = shalt.err (!%p1590_p1)
}
  0x6e   : > { %1387 = dma.hbm_to_vmem [thread:$0]  (!%p2329_p11), %s2299_s4, 16, %s230_s3, [#allocation12]  }
  0x6f   : > { %s2332_s30 = sshll.u32 %s1740_s22, 6  ;;  %s2333_s15 = sshll.u32 %s1900_s11, 2 }
  0x70   : > { %s1981_s17 = scalar_lea.hbm %s2295_s0, %s2332_s30  ;;  %s244_s6 = scalar_lea.vmem [#allocation5], %s2333_s15 }
  0x71   : > { %s252_s29 = sshll.u32 %s244_s6, 4  ;;  %s1259_s25 = sshll.u32 %s1740_s22, 4  ;;  %s1985_s29 = int_to_ptr.vmem [resolvable:$true] %s252_s29 }
  0x72   : > { %s241_s8 = scalar_lea.sflag [#allocation6], %s1900_s11  ;;  %s1594_s1 = scalar_lea.hbm %s1981_s17, 64 }
  0x73   : > { %p1595_p3 = scmp.ne.s32.totalorder %s1981_s17, %s1594_s1  ;;  %p2334_p7 = scmp.ne.s32.totalorder %s2328_s16, 0 }
  0x74   : > { %s1599_s30 = scalar_lea.hbm %s2295_s0, 128  ;;  %p1600_p10 = scmp.lt.u32.totalorder %s1981_s17, %s2295_s0 }
  0x75   : > { %p1597_p11 = pnand %p1595_p3, %p2334_p7  ;;  %p1601_p6 = scmp.lt.u32.totalorder %s1599_s30, %s1594_s1 }
  0x76   : > { %p1603_p12 = scmp.lt.u32.totalorder %s1594_s1, %s1981_s17 }
  0x77   : > { %p1598_p13 = pneg %p1597_p11  ;;  %p1602_p8 = por %p1601_p6, %p1600_p10 }
  0x79   : > { %p1604_p0 = por %p1603_p12, %p1602_p8 }
  0x7b   : > { %p1605_p5 = pnand %p1604_p0, %p1598_p13 }
  0x7d   : > { %1608 = shalt.err (!%p1605_p5)
}
  0x7e   : > { %s1609_s15 = scalar_lea.vmem %s1985_s29, 64  ;;  %s1751_s6 = smov [#allocation5]  }
  0x7f   : > { %p1610_p9 = scmp.ne.s32.totalorder %s1985_s29, %s1609_s15  ;;  %s1614_s3 = sshll.u32 %s1751_s6, 4  ;;  %s1615_s3 = int_to_ptr.vmem [resolvable:$false] %s1614_s3 }
  0x80   : > { %s1616_s12 = scalar_lea.vmem %s1615_s3, 128  ;;  %p1617_p1 = scmp.lt.s32.totalorder %s1985_s29, %s1615_s3 }
  0x81   : > { %p1612_p2 = pnand %p1610_p9, %p2334_p7  ;;  %p1618_p3 = scmp.lt.s32.totalorder %s1616_s12, %s1609_s15 }
  0x83   : > { %p1613_p4 = pneg %p1612_p2  ;;  %p1619_p11 = por %p1618_p3, %p1617_p1 }
  0x85   : > { %p1620_p10 = pnand %p1619_p11, %p1613_p4 }
  0x87   : > { %1623 = shalt.err (!%p1620_p10)
}
  0x88   : > { %p2335_p13 = scmp.ne.s32.totalorder %s2326_s14, 0  ;;  %s2015_s13 = scalar_lea.hbm %s2297_s2, %s1259_s25 }
  0x89   : > { %s281_s10 = scalar_lea.vmem [#allocation10], %s1900_s11  ;;  %s1624_s6 = scalar_lea.hbm %s2015_s13, 16 }
  0x8a   : > { %1391 = dma.hbm_to_vmem [thread:$0]  (!%p2335_p13), %s1981_s17, 64, %s1985_s29, %s241_s8  }
  0x8b   : > { %s289_s15 = sshll.u32 %s281_s10, 4  ;;  %p1625_p6 = scmp.ne.s32.totalorder %s2015_s13, %s1624_s6  ;;  %s290_s15 = int_to_ptr.vmem [resolvable:$true] %s289_s15 }
  0x8c   : > { %s1629_s29 = scalar_lea.hbm %s2297_s2, 32  ;;  %p1630_p0 = scmp.lt.u32.totalorder %s2015_s13, %s2297_s2 }
  0x8d   : > { %p1627_p8 = pnand %p1625_p6, %p2334_p7  ;;  %p1631_p5 = scmp.lt.u32.totalorder %s1629_s29, %s1624_s6 }
  0x8e   : > { %p1633_p2 = scmp.lt.u32.totalorder %s1624_s6, %s2015_s13 }
  0x8f   : > { %p1628_p12 = pneg %p1627_p8  ;;  %p1632_p9 = por %p1631_p5, %p1630_p0 }
  0x91   : > { %p1634_p4 = por %p1633_p2, %p1632_p9 }
  0x93   : > { %p1635_p1 = pnand %p1634_p4, %p1628_p12 }
  0x95   : > { %1638 = shalt.err (!%p1635_p1)
}
  0x96   : > { %s1639_s11 = scalar_lea.vmem %s290_s15, 16  ;;  %s1752_s25 = smov [#allocation10]  }
  0x97   : > { %p1640_p3 = scmp.ne.s32.totalorder %s290_s15, %s1639_s11  ;;  %s1644_s1 = sshll.u32 %s1752_s25, 4  ;;  %s1645_s1 = int_to_ptr.vmem [resolvable:$false] %s1644_s1 }
  0x98   : > { %s1646_s30 = scalar_lea.vmem %s1645_s1, 32  ;;  %p1647_p6 = scmp.lt.s32.totalorder %s290_s15, %s1645_s1 }
  0x99   : > { %p1642_p11 = pnand %p1640_p3, %p2334_p7  ;;  %p1648_p8 = scmp.lt.s32.totalorder %s1646_s30, %s1639_s11 }
  0x9b   : > { %p1643_p10 = pneg %p1642_p11  ;;  %p1649_p13 = por %p1648_p8, %p1647_p6 }
  0x9d   : > { %p1650_p0 = pnand %p1649_p13, %p1643_p10 }
  0x9f   : > { %1653 = shalt.err (!%p1650_p0)
}
  0xa0   : > { %p2336_p5 = scmp.ne.s32.totalorder %s2326_s14, 0  ;;  %p2337_p12 = scmp.ne.s32.totalorder %s2319_s28, 0 }
  0xa1   : > { %s2039_s16 = sand.u32 (!%p2337_p12), 1, %s1728_s19   ;;  %p2338_p7 = scmp.ne.s32.totalorder (!%p2337_p12), %s2317_s26, 0 }
  0xa2   : > { %1397 = dma.hbm_to_vmem [thread:$0]  (!%p2336_p5), %s2015_s13, 16, %s290_s15, %s1925_s7  }
  0xa3   : > { %298 = sbr.rel (%p2337_p12) target bundleno = 1845 (0x735), region = 40  ;;  %s2042_s10 = sshll.u32 (!%p2337_p12), %s2039_s16, 2 }
  0xa4   : > { %s301_s6 = scalar_lea.sflag (!%p2337_p12), [#allocation6], %s2039_s16  ;;  %s2046_s3 = scalar_lea.vmem (!%p2337_p12), [#allocation5], %s2042_s10 }
  0xaa   : > { %1707 = dma.done.wait (%p2338_p7), %s301_s6, 64  }
  0xab   : > { %1709 = vsyncadd (%p2338_p7), %s301_s6, 4294967232  ;;  %s309_s28 = sand.u32 1, %s1829_s24   ;;  %s2054_s14 = scalar_lea.vmem [#allocation8], %s2042_s10 }
  0xac   : > { %s310_s7 = scalar_lea.sflag [#allocation9], %s309_s28 }
  0xad   : > { %1711 = dma.done.wait (%p2338_p7), %s310_s7, 80  }
  0xae   : > { %1713 = vsyncadd (%p2338_p7), %s310_s7, 4294967216  ;;  %s321_s13 = scalar_lea.vmem [#allocation10], %s2039_s16  ;;  %p2339_p13 = scmp.eq.s32.totalorder %s1829_s24, 0 }
  0xb0   : > { %1715 = dma.done.wait (%p2339_p13), [#allocation12], 272   ;;  %p2340_p9 = pmov %p2339_p13 }
  0xb1   : > { %v1753_v0 = vmov 0.0   ;;  %vm1754_vm0 = vmmov 0   ;;  %vm396_vm1 = vcmask 64512   ;;  %v389_v1 = vld [vmem:[%s2054_s14] sm:$0xf]  ;;  %vm370_vm2 = vcmask 7168  }
  0xb2   : > { %1717 = vsyncadd (%p2340_p9), [#allocation12], 4294967024  ;;  %1309 = vmatprep.subr.bf16.mxu0 %v1753_v0  ;;  %1311 = vmatprep.mubr.msk.bf16.mxu0 %vm1754_vm0, %v1753_v0  ;;  %v401_v2 = vsel %vm396_vm1, %v389_v1, 0  ;;  %v388_v3 = vld [vmem:[%s2046_s3] sm:$0xf]  ;;  %v1755_v4 = vmov -inf   ;;  %v382_v5 = vlaneseq  ;;  %v1268_v16 = vcombine.low %v389_v1, %v389_v1 }
  0xb3   : > { %1315 = vmatprep.subr.bf16.mxu1 %v1753_v0  ;;  %1317 = vmatprep.mubr.msk.bf16.mxu1 %vm1754_vm0, %v1753_v0  ;;  %371 = vst.msk [vmem:[#allocation2] sm:$0xff] %vm370_vm2, %v1755_v4  ;;  %372 = vst.msk [vmem:[#allocation2 + $0x8] sm:$0xff] %vm370_vm2, %v1755_v4  ;;  %v2092_v7 = vld [vmem:[%s321_s13] ss:$0 sm:$0xff]  ;;  %v1756_v15 = vmov 0   ;;  %s1757_s24 = smov 96  }
  0xb4   : > { %1310 = vmatpush3.bf16.xpose.msra.mxu0 %v401_v2  ;;  %373 = vst.msk [vmem:[#allocation2 + $0x10] sm:$0xff] %vm370_vm2, %v1755_v4  ;;  %374 = vst.msk [vmem:[#allocation2 + $0x18] sm:$0xff] %vm370_vm2, %v1755_v4  ;;  %v2090_v6 = vand.u32 127, %v382_v5  ;;  %1474 = vset.pattern.permute.xlu0 %v1756_v15  ;;  %v2100_v17 = vld [vmem:[%s2054_s14] ss:$0 sps:$4 sm:$0xff]   ;;  %s1758_s26 = smov 120  }
  0xb5   : > { %1327 = vmatprep.subr.bf16.mxu0 %v1753_v0  ;;  %375 = vst.msk [vmem:[#allocation3] sm:$0xff] %vm370_vm2, %v1753_v0  ;;  %376 = vst.msk [vmem:[#allocation3 + $0x8] sm:$0xff] %vm370_vm2, %v1753_v0  ;;  %1475 = vset.pattern.permute.xlu1 %v1756_v15  ;;  %v1477_v18 = vld [vmem:[%s2046_s3] ss:$0 sps:$4 sm:$0xff]   ;;  %v2105_v19 = vld [vmem:[%s2054_s14] ss:$0 sps:$4 sm:$0xff]  }
  0xb6   : > { %377 = vst.msk [vmem:[#allocation3 + $0x10] sm:$0xff] %vm370_vm2, %v1753_v0  ;;  %378 = vst.msk [vmem:[#allocation3 + $0x18] sm:$0xff] %vm370_vm2, %v1753_v0  ;;  %vm386_vm3 = vcmp.ge.s32.totalorder %v2090_v6, 8  ;;  %479 = vrot.lane.b32.xlu1 %v1268_v16, %s1757_s24  ;;  %s1759_s15 = smov 112   ;;  %v1479_v20 = vld [vmem:[%s2046_s3] ss:$0 sps:$4 sm:$0xff]  }
  0xb7   : > { %v2110_v21 = vld [vmem:[%s2054_s14] ss:$0 sps:$4 sm:$0xff]   ;;  %s1760_s17 = smov 104   ;;  %v1481_v22 = vld [vmem:[%s2046_s3] ss:$0 sps:$4 sm:$0xff]   ;;  %vm484_vm4 = vcmask 1043456  }
  0xb8   : > { %s1761_s29 = smov 88   ;;  %s1762_s8 = smov 80   ;;  %vm379_vm5 = vcmask 261120   ;;  %vm676_vm6 = vcmask 130112   ;;  %vm824_vm7 = vcmask 195712   ;;  %vm972_vm8 = vcmask 261312  }
  0xb9   : > { %s1763_s12 = smov 72   ;;  %380 = vst.msk [vmem:[#allocation4] sm:$0xff] %vm379_vm5, %v1753_v0  ;;  %s1764_s11 = smov 8   ;;  %vm1088_vm9 = vcmask 257024  }
  0xba   : > { %541 = vrot.lane.b32.xlu1 %v2100_v17, %s1758_s26  ;;  %v2114_v23 = vld [vmem:[#allocation2] sm:$0xff]  ;;  %v2162_v5 = vld [vmem:[#allocation2 + $0x8] sm:$0xff]  ;;  %s1765_s25 = smov 16   ;;  %s1766_s1 = smov 24  }
  0xbb   : > { %1312 = vmatmul.mubr.msk.bf16.vlgmr.msra.gmra.mrb[0].mxu0 %vm396_vm1, %v388_v3  ;;  %v2172_v6 = vld [vmem:[#allocation2 + $0x10] sm:$0xff]  ;;  %s1287_s30 = sshll.u32 %s1736_s21, 6  ;;  %s364_s6 = scalar_lea.vmem [#allocation14], %s2042_s10 }
  0xbc   : > { %1329 = vmatprep.mubr.msk.bf16.mxu0 %vm1754_vm0, %v1753_v0  ;;  %s1105_s3 = sshll.u32 %s364_s6, 4  ;;  %s2246_s14 = scalar_lea.hbm %s2300_s5, %s1287_s30  ;;  %s2248_s3 = int_to_ptr.vmem [resolvable:$true] %s1105_s3 }
  0xbd   : > { %s1091_s21 = scalar_lea.sflag [#allocation7], %s2039_s16  ;;  %s1654_s10 = scalar_lea.vmem %s2248_s3, 64 }
  0xbe   : > { %536 = vrot.lane.b32.xlu1 %v1477_v18, %s1758_s26  ;;  %p1655_p2 = scmp.ne.s32.totalorder %s2248_s3, %s1654_s10  ;;  %p2341_p4 = scmp.ne.s32.totalorder %s2324_s9, 0 }
  0xbf   : > { %s1767_s13 = smov [#allocation14]  }
  0xc0   : > { %p1656_p1 = pnand %p1655_p2, %p2341_p4  ;;  %s1658_s24 = sshll.u32 %s1767_s13, 4  ;;  %s1659_s24 = int_to_ptr.vmem [resolvable:$false] %s1658_s24 }
  0xc1   : > { %s1660_s26 = scalar_lea.vmem %s1659_s24, 128  ;;  %p1661_p11 = scmp.lt.s32.totalorder %s2248_s3, %s1659_s24 }
  0xc2   : > { %689 = vrot.lane.b32.xlu1 %v2105_v19, %s1759_s15  ;;  %p1657_p3 = pneg %p1656_p1  ;;  %p1662_p10 = scmp.lt.s32.totalorder %s1660_s26, %s1654_s10 }
  0xc4   : > { %p1663_p6 = por %p1662_p10, %p1661_p11 }
  0xc6   : > { %684 = vrot.lane.b32.xlu1 %v1479_v20, %s1759_s15  ;;  %p1664_p8 = pnand %p1663_p6, %p1657_p3 }
  0xca   : > { %837 = vrot.lane.b32.xlu1 %v2110_v21, %s1760_s17 }
  0xce   : > { %832 = vrot.lane.b32.xlu1 %v1481_v22, %s1760_s17 }
 0x128   : > { %v480_v27 = vpop.permute.xlu1 %479 }
 0x129   : > { %v486_v28 = vsel %vm484_vm4, %v480_v27, 0 }
 0x12a   : > { %1316 = vmatpush3.bf16.msra.mxu1 %v486_v28 }
 0x12b   : > { %1321 = vmatprep.subr.bf16.mxu1 %v1753_v0 }
 0x12c   : > { %v542_v32 = vpop.permute.xlu1 %541 }
 0x12d   : > { %v547_v35 = vsel %vm396_vm1, %v542_v32, 0 }
 0x130   : > { %v537_v33 = vpop.permute.xlu1 %536 }
 0x134   : > { %v690_v37 = vpop.permute.xlu1 %689 }
 0x135   : > { %v695_v39 = vsel %vm396_vm1, %v690_v37, 0 }
 0x138   : > { %v685_v38 = vpop.permute.xlu1 %684 }
 0x13c   : > { %v838_v40 = vpop.permute.xlu1 %837 }
 0x13d   : > { %v843_v41 = vsel %vm396_vm1, %v838_v40, 0 }
 0x140   : > { %v833_v42 = vpop.permute.xlu1 %832 }
 0x18e   : > { %v437_v8 = vpop.f32.mrb[0].mxu0 }
 0x18f   : > { %v438_v9 = vadd.f32 %v2092_v7, %v437_v8  ;;  %v1313_v10 = vpop.f32.mrb[1].mxu0 }
 0x190   : > { %v440_v11 = vpop.f32.mrb[2].mxu0 }
 0x191   : > { %v1314_v12 = vpop.f32.mrb[3].mxu0  ;;  %v443_v13 = vsel %vm386_vm3, -1e+09, %v438_v9 }
 0x192   : > { %v445_v14 = vsel %vm396_vm1, %v443_v13, -inf }
 0x193   : > { %446 = vmax.xlane.f32.xlu0 %v445_v14 }
 0x220   : > { %v447_v24 = vpop.xlane.xlu0 %446 }
 0x221   : > { %v2117_v25 = vmax.f32 %v2114_v23, %v447_v24 }
 0x223   : > { %v449_v26 = vsub.f32 %v2114_v23, %v2117_v25  ;;  %530 = vst.msk [vmem:[#allocation2] sm:$0xff] %vm370_vm2, %v2117_v25  ;;  %454 = vperm.xlu0 %1474, %v2117_v25  }
 0x2a2   : > { %v455_v29 = vpop.permute.xlu0 %454 }
 0x2a3   : > { %v457_v30 = vsub.f32 %v443_v13, %v455_v29  ;;  %v2183_v13 = vld [vmem:[#allocation2 + $0x18] sm:$0xff] }
 0x2a5   : > { %v458_v31 = vmul.f32 1.442695, %v457_v30 }
 0x2a7   : > { %1484 = vpow2.f32 %v458_v31 }
 0x2b1   : > { %v2126_v34 = vpop.eup %1484 }
 0x2b2   : > { %v475_v36 = vpack.c.bf16 %v2126_v34, %v2126_v34 }
 0x2b4   : > { %1318 = vmatmul.mubr.msk.bf16.vlgmr.msra.gmra.mrb[0].mxu1 %vm396_vm1, %v475_v36 }
 0x2b5   : > { %1322 = vmatpush3.bf16.xpose.msra.mxu1 %v547_v35  ;;  %1323 = vmatprep.mubr.msk.bf16.mxu1 %vm1754_vm0, %v1753_v0 }
 0x2b6   : > { %1333 = vmatprep.subr.bf16.mxu1 %v1753_v0 }
 0x2bc   : > { %1324 = vmatmul.mubr.msk.bf16.vlgmr.msra.gmra.mrb[4].mxu1 %vm396_vm1, %v537_v33 }
 0x2bd   : > { %1334 = vmatpush3.bf16.xpose.msra.mxu1 %v695_v39  ;;  %1335 = vmatprep.mubr.msk.bf16.mxu1 %vm1754_vm0, %v1753_v0 }
 0x2be   : > { %1345 = vmatprep.subr.bf16.mxu1 %v1753_v0 }
 0x2c4   : > { %1336 = vmatmul.mubr.msk.bf16.vlgmr.msra.gmra.mrb[8].mxu1 %vm396_vm1, %v685_v38 }
 0x2c5   : > { %1346 = vmatpush3.bf16.xpose.msra.mxu1 %v843_v41  ;;  %1347 = vmatprep.mubr.msk.bf16.mxu1 %vm1754_vm0, %v1753_v0 }
 0x2c6   : > { %1357 = vmatprep.subr.bf16.mxu1 %v1753_v0 }
 0x2cc   : > { %1348 = vmatmul.mubr.msk.bf16.vlgmr.msra.gmra.mrb[12].mxu1 %vm396_vm1, %v833_v42 }
 0x2cd   : > { %1361 = vmatprep.mubr.msk.bf16.mxu1 %vm1754_vm0, %v1753_v0 }
 0x387   : > { %v2148_v43 = vpop.f32.mrb[0].mxu1 }
 0x388   : > { %v1319_v44 = vpop.f32.mrb[1].mxu1 }
 0x389   : > { %v525_v45 = vpop.f32.mrb[2].mxu1 }
 0x38a   : > { %v1320_v46 = vpop.f32.mrb[3].mxu1 }
 0x38b   : > { %v460_v46 = vld [vmem:[#allocation3] sm:$0xff] }
 0x38f   : > { %v583_v47 = vpop.f32.mrb[4].mxu1 }
 0x390   : > { %v584_v48 = vadd.f32 %v2092_v7, %v583_v47  ;;  %v1325_v49 = vpop.f32.mrb[5].mxu1 }
 0x391   : > { %v586_v50 = vpop.f32.mrb[6].mxu1 }
 0x392   : > { %v1326_v51 = vpop.f32.mrb[7].mxu1  ;;  %v589_v52 = vsel %vm386_vm3, -1e+09, %v584_v48 }
 0x393   : > { %v592_v53 = vsel %vm396_vm1, %v589_v52, -inf }
 0x394   : > { %593 = vmax.xlane.f32.xlu1 %v592_v53 }
 0x397   : > { %v731_v54 = vpop.f32.mrb[8].mxu1 }
 0x398   : > { %v732_v55 = vadd.f32 %v2092_v7, %v731_v54  ;;  %v1337_v56 = vpop.f32.mrb[9].mxu1 }
 0x399   : > { %v734_v57 = vpop.f32.mrb[10].mxu1 }
 0x39a   : > { %v1338_v58 = vpop.f32.mrb[11].mxu1  ;;  %v737_v59 = vsel %vm386_vm3, -1e+09, %v732_v55  ;;  %v468_v57 = vld [vmem:[#allocation4] sm:$0xff] }
 0x39b   : > { %v740_v60 = vsel %vm396_vm1, %v737_v59, -inf }
 0x39c   : > { %741 = vmax.xlane.f32.xlu0 %v740_v60  ;;  %v756_v60 = vld [vmem:[#allocation3 + $0x10] sm:$0xff] }
 0x39f   : > { %v879_v61 = vpop.f32.mrb[12].mxu1 }
 0x3a0   : > { %v880_v62 = vadd.f32 %v2092_v7, %v879_v61  ;;  %v1349_v63 = vpop.f32.mrb[13].mxu1 }
 0x3a1   : > { %v882_v1 = vpop.f32.mrb[14].mxu1 }
 0x3a2   : > { %v885_v2 = vsel %vm386_vm3, -1e+09, %v880_v62  ;;  %v1350_v3 = vpop.f32.mrb[15].mxu1 }
 0x3a3   : > { %v888_v4 = vsel %vm396_vm1, %v885_v2, -inf }
 0x3a4   : > { %889 = vmax.xlane.f32.xlu1 %v888_v4  ;;  %v904_v4 = vld [vmem:[#allocation3 + $0x18] sm:$0xff] }
 0x421   : > { %v594_v8 = vpop.xlane.xlu1 %593 }
 0x422   : > { %v2165_v9 = vmax.f32 %v2162_v5, %v594_v8 }
 0x424   : > { %v596_v10 = vsub.f32 %v2162_v5, %v2165_v9  ;;  %678 = vst.msk [vmem:[#allocation2 + $0x8] sm:$0xff] %vm370_vm2, %v2165_v9  ;;  %601 = vperm.xlu1 %1475, %v2165_v9  }
 0x426   : > { %v597_v45 = vmul.f32 1.442695, %v596_v10 }
 0x428   : > { %623 = vrot.lane.b32.xlu1 %v2100_v17, %s1761_s29  ;;  %v462_v17 = vsel %vm396_vm1, %v2126_v34, 0.0  ;;  %v450_v34 = vmul.f32 1.442695, %v449_v26 }
 0x429   : > { %v742_v7 = vpop.xlane.xlu0 %741 }
 0x42a   : > { %v2176_v11 = vmax.f32 %v2172_v6, %v742_v7 }
 0x42c   : > { %v744_v12 = vsub.f32 %v2172_v6, %v2176_v11  ;;  %826 = vst.msk [vmem:[#allocation2 + $0x10] sm:$0xff] %vm370_vm2, %v2176_v11  ;;  %749 = vperm.xlu0 %1474, %v2176_v11  }
 0x42e   : > { %v745_v51 = vmul.f32 1.442695, %v744_v12 }
 0x431   : > { %v890_v14 = vpop.xlane.xlu1 %889 }
 0x432   : > { %v2186_v15 = vmax.f32 %v2183_v13, %v890_v14 }
 0x434   : > { %v892_v16 = vsub.f32 %v2183_v13, %v2186_v15  ;;  %974 = vst.msk [vmem:[#allocation2 + $0x18] sm:$0xff] %vm370_vm2, %v2186_v15  ;;  %897 = vperm.xlu1 %1475, %v2186_v15  }
 0x436   : > { %v893_v53 = vmul.f32 1.442695, %v892_v16 }
 0x438   : > { %771 = vrot.lane.b32.xlu1 %v2105_v19, %s1762_s8 }
 0x43c   : > { %919 = vrot.lane.b32.xlu1 %v2110_v21, %s1763_s12 }
 0x44b   : > { %463 = vadd.xlane.f32.xlu0 %v462_v17 }
 0x4a3   : > { %v602_v18 = vpop.permute.xlu1 %601 }
 0x4a4   : > { %v604_v20 = vsub.f32 %v589_v52, %v602_v18  ;;  %v608_v52 = vld [vmem:[#allocation3 + $0x8] sm:$0xff] }
 0x4a6   : > { %v605_v22 = vmul.f32 1.442695, %v604_v20 }
 0x4a7   : > { %v624_v24 = vpop.permute.xlu1 %623 }
 0x4a8   : > { %1486 = vpow2.f32 %v605_v22  ;;  %v629_v27 = vsel %vm484_vm4, %v624_v24, 0 }
 0x4a9   : > { %1328 = vmatpush3.bf16.msra.mxu0 %v629_v27 }
 0x4aa   : > { %1339 = vmatprep.subr.bf16.mxu0 %v1753_v0 }
 0x4ab   : > { %v750_v28 = vpop.permute.xlu0 %749 }
 0x4ac   : > { %v752_v29 = vsub.f32 %v737_v59, %v750_v28 }
 0x4ae   : > { %v753_v19 = vmul.f32 1.442695, %v752_v29 }
 0x4b0   : > { %1488 = vpow2.f32 %v753_v19 }
 0x4b2   : > { %v1487_v30 = vpop.eup %1486 }
 0x4b3   : > { %v898_v21 = vpop.permute.xlu1 %897  ;;  %v610_v31 = vsel %vm396_vm1, %v1487_v30, 0.0  ;;  %v622_v32 = vpack.c.bf16 %v1487_v30, %v1487_v30 }
 0x4b4   : > { %v900_v33 = vsub.f32 %v885_v2, %v898_v21  ;;  %611 = vadd.xlane.f32.xlu1 %v610_v31  ;;  %v1482_v21 = vld [vmem:[#allocation11] sm:$0xff]   ;;  %v1483_v31 = vld [vmem:[#allocation11 + $0x8] sm:$0xff]  }
 0x4b5   : > { %1330 = vmatmul.mubr.msk.bf16.vlgmr.msra.gmra.mrb[4].mxu0 %vm396_vm1, %v622_v32  ;;  %1358 = vmatpush3.bf16.msra.mxu1 %v1482_v21 }
 0x4b6   : > { %v901_v35 = vmul.f32 1.442695, %v900_v33  ;;  %1341 = vmatprep.mubr.msk.bf16.mxu0 %vm1754_vm0, %v1753_v0  ;;  %1359 = vmatprep.subr.bf16.mxu1 %v1753_v0 }
 0x4b7   : > { %v772_v36 = vpop.permute.xlu1 %771 }
 0x4b8   : > { %1490 = vpow2.f32 %v901_v35  ;;  %v777_v37 = vsel %vm484_vm4, %v772_v36, 0 }
 0x4b9   : > { %1340 = vmatpush3.bf16.msra.mxu0 %v777_v37  ;;  %1492 = vpow2.f32 %v450_v34  ;;  %1360 = vmatpush3.bf16.msra.mxu1 %v1483_v31 }
 0x4ba   : > { %v1489_v38 = vpop.eup %1488  ;;  %1351 = vmatprep.subr.bf16.mxu0 %v1753_v0  ;;  %1494 = vpow2.f32 %v597_v45 }
 0x4bb   : > { %v758_v39 = vsel %vm396_vm1, %v1489_v38, 0.0  ;;  %v770_v40 = vpack.c.bf16 %v1489_v38, %v1489_v38  ;;  %v920_v41 = vpop.permute.xlu1 %919  ;;  %1496 = vpow2.f32 %v745_v51 }
 0x4bc   : > { %759 = vadd.xlane.f32.xlu0 %v758_v39  ;;  %v925_v23 = vsel %vm484_vm4, %v920_v41, 0  ;;  %1498 = vpow2.f32 %v893_v53 }
 0x4bd   : > { %1342 = vmatmul.mubr.msk.bf16.vlgmr.msra.gmra.mrb[8].mxu0 %vm396_vm1, %v770_v40 }
 0x4be   : > { %1352 = vmatpush3.bf16.msra.mxu0 %v925_v23  ;;  %1353 = vmatprep.mubr.msk.bf16.mxu0 %vm1754_vm0, %v1753_v0 }
 0x4c2   : > { %v1491_v25 = vpop.eup %1490 }
 0x4c3   : > { %v906_v26 = vsel %vm396_vm1, %v1491_v25, 0.0  ;;  %v918_v42 = vpack.c.bf16 %v1491_v25, %v1491_v25  ;;  %v1493_v44 = vpop.eup %1492 }
 0x4c4   : > { %907 = vadd.xlane.f32.xlu0 %v906_v26  ;;  %v461_v47 = vmul.f32 %v1493_v44, %v460_v46  ;;  %v1495_v49 = vpop.eup %1494 }
 0x4c5   : > { %1354 = vmatmul.mubr.msk.bf16.vlgmr.msra.gmra.mrb[12].mxu0 %vm396_vm1, %v918_v42  ;;  %471 = vperm.xlu1 %1475, %v1493_v44   ;;  %v609_v54 = vmul.f32 %v1495_v49, %v608_v52  ;;  %v1497_v58 = vpop.eup %1496 }
 0x4c6   : > { %v757_v63 = vmul.f32 %v1497_v58, %v756_v60  ;;  %v1499_v3 = vpop.eup %1498 }
 0x4c7   : > { %v905_v5 = vmul.f32 %v1499_v3, %v904_v4 }
 0x4d8   : > { %v464_v48 = vpop.xlane.xlu0 %463 }
 0x4d9   : > { %v465_v50 = vadd.f32 %v464_v48, %v461_v47 }
 0x4da   : > { %618 = vperm.xlu0 %1474, %v1495_v49  }
 0x4db   : > { %467 = vst.msk [vmem:[#allocation3] sm:$0xff] %vm370_vm2, %v465_v50 }
 0x4e2   : > { %v978_v10 = vld [vmem:[#allocation3] sm:$0xff] }
 0x4e3   : > { %1500 = vrcp.f32 %v978_v10 }
 0x4ed   : > { %v1501_v20 = vpop.eup %1500 }
 0x541   : > { %v612_v55 = vpop.xlane.xlu1 %611 }
 0x542   : > { %v613_v56 = vadd.f32 %v612_v55, %v609_v54 }
 0x544   : > { %614 = vst.msk [vmem:[#allocation3 + $0x8] sm:$0xff] %vm370_vm2, %v613_v56 }
 0x545   : > { %v472_v59 = vpop.permute.xlu1 %471 }
 0x546   : > { %v474_v61 = vmul.f32 %v472_v59, %v468_v57 }
 0x548   : > { %v528_v62 = vadd.f32 %v2148_v43, %v474_v61 }
 0x549   : > { %v760_v1 = vpop.xlane.xlu0 %759 }
 0x54a   : > { %529 = vst.msk [vmem:[#allocation4] sm:$0xff] %vm396_vm1, %v528_v62  ;;  %v761_v2 = vadd.f32 %v760_v1, %v757_v63 }
 0x54b   : > { %v988_v13 = vld [vmem:[#allocation3 + $0x8] sm:$0xff] }
 0x54c   : > { %762 = vst.msk [vmem:[#allocation3 + $0x10] sm:$0xff] %vm370_vm2, %v761_v2 }
 0x551   : > { %v908_v8 = vpop.xlane.xlu0 %907  ;;  %v615_v33 = vld [vmem:[#allocation4] sm:$0xff] }
 0x552   : > { %v909_v9 = vadd.f32 %v908_v8, %v905_v5 }
 0x553   : > { %v998_v12 = vld [vmem:[#allocation3 + $0x10] sm:$0xff] }
 0x554   : > { %910 = vst.msk [vmem:[#allocation3 + $0x18] sm:$0xff] %vm370_vm2, %v909_v9  ;;  %1502 = vrcp.f32 %v998_v12 }
 0x555   : > { %1504 = vrcp.f32 %v988_v13 }
 0x559   : > { %v619_v32 = vpop.permute.xlu0 %618 }
 0x55a   : > { %v621_v34 = vmul.f32 %v619_v32, %v615_v33 }
 0x55b   : > { %v1008_v18 = vld [vmem:[#allocation3 + $0x18] sm:$0xff] }
 0x55c   : > { %1506 = vrcp.f32 %v1008_v18 }
 0x55e   : > { %v1503_v22 = vpop.eup %1502 }
 0x55f   : > { %v1505_v19 = vpop.eup %1504 }
 0x566   : > { %v1507_v30 = vpop.eup %1506 }
 0x588   : > { %v665_v6 = vpop.f32.mrb[4].mxu0 }
 0x589   : > { %v1331_v7 = vpop.f32.mrb[5].mxu0  ;;  %672 = vrot.lane.b32.xlu1 %v665_v6, %s1764_s11 }
 0x58a   : > { %v668_v43 = vpop.f32.mrb[6].mxu0 }
 0x58b   : > { %v1332_v11 = vpop.f32.mrb[7].mxu0 }
 0x58d   : > { %766 = vperm.xlu1 %1475, %v1497_v58   ;;  %v1282_v58 = vld [vmem:[#allocation13] ss:$0 sm:$0xff] }
 0x590   : > { %v813_v14 = vpop.f32.mrb[8].mxu0 }
 0x591   : > { %v1343_v15 = vpop.f32.mrb[9].mxu0  ;;  %820 = vrot.lane.b32.xlu0 %v813_v14, %s1765_s25  ;;  %914 = vperm.xlu1 %1475, %v1499_v3  }
 0x592   : > { %v816_v16 = vpop.f32.mrb[10].mxu0 }
 0x593   : > { %v1344_v17 = vpop.f32.mrb[11].mxu0 }
 0x595   : > { %983 = vperm.xlu1 %1475, %v1501_v20  }
 0x598   : > { %v961_v24 = vpop.f32.mrb[12].mxu0 }
 0x599   : > { %v1355_v27 = vpop.f32.mrb[13].mxu0  ;;  %968 = vrot.lane.b32.xlu0 %v961_v24, %s1766_s1  ;;  %1003 = vperm.xlu1 %1475, %v1503_v22  }
 0x59a   : > { %v964_v28 = vpop.f32.mrb[14].mxu0 }
 0x59b   : > { %v1356_v29 = vpop.f32.mrb[15].mxu0 }
 0x59d   : > { %993 = vperm.xlu0 %1474, %v1505_v19  }
 0x5a1   : > { %1013 = vperm.xlu0 %1474, %v1507_v30  }
 0x5fb   : > { %v673_v35 = vpop.permute.xlu1 %672 }
 0x5fc   : > { %v675_v36 = vadd.f32 %v673_v35, %v621_v34 }
 0x5fe   : > { %677 = vst.msk [vmem:[#allocation4] sm:$0xff] %vm676_vm6, %v675_v36 }
 0x603   : > { %v821_v40 = vpop.permute.xlu0 %820 }
 0x605   : > { %v763_v37 = vld [vmem:[#allocation4] sm:$0xff] }
 0x60b   : > { %v969_v26 = vpop.permute.xlu0 %968 }
 0x60c   : > { %v767_v38 = vpop.permute.xlu1 %766 }
 0x60d   : > { %v769_v39 = vmul.f32 %v767_v38, %v763_v37 }
 0x60f   : > { %v823_v41 = vadd.f32 %v821_v40, %v769_v39 }
 0x610   : > { %v915_v25 = vpop.permute.xlu1 %914 }
 0x611   : > { %825 = vst.msk [vmem:[#allocation4] sm:$0xff] %vm824_vm7, %v823_v41 }
 0x614   : > { %v984_v45 = vpop.permute.xlu1 %983 }
 0x618   : > { %v911_v23 = vld [vmem:[#allocation4] sm:$0xff]  ;;  %v1004_v50 = vpop.permute.xlu1 %1003 }
 0x619   : > { %v917_v0 = vmul.f32 %v915_v25, %v911_v23 }
 0x61b   : > { %v971_v42 = vadd.f32 %v969_v26, %v917_v0 }
 0x61c   : > { %v994_v47 = vpop.permute.xlu0 %993 }
 0x61d   : > { %973 = vst.msk [vmem:[#allocation4] sm:$0xff] %vm972_vm8, %v971_v42 }
 0x620   : > { %v1014_v53 = vpop.permute.xlu0 %1013 }
 0x624   : > { %v980_v44 = vld [vmem:[#allocation4] sm:$0xff] }
 0x625   : > { %v986_v46 = vmul.f32 %v984_v45, %v980_v44 }
 0x627   : > { %987 = vst.msk [vmem:[#allocation4] sm:$0xff] %vm396_vm1, %v986_v46 }
 0x62e   : > { %v990_v48 = vld [vmem:[#allocation4] sm:$0xff] }
 0x62f   : > { %v996_v49 = vmul.f32 %v994_v47, %v990_v48 }
 0x631   : > { %997 = vst.msk [vmem:[#allocation4] sm:$0xff] %vm676_vm6, %v996_v49 }
 0x638   : > { %v1000_v51 = vld [vmem:[#allocation4] sm:$0xff] }
 0x639   : > { %v1006_v52 = vmul.f32 %v1004_v50, %v1000_v51 }
 0x63b   : > { %1007 = vst.msk [vmem:[#allocation4] sm:$0xff] %vm824_vm7, %v1006_v52 }
 0x642   : > { %v1010_v54 = vld [vmem:[#allocation4] sm:$0xff] }
 0x643   : > { %v1016_v55 = vmul.f32 %v1014_v53, %v1010_v54 }
 0x645   : > { %1017 = vst.msk [vmem:[#allocation4] sm:$0xff] %vm972_vm8, %v1016_v55 }
 0x64c   : > { %v1018_v56 = vld [vmem:[#allocation4] sm:$0xff] }
 0x64d   : > { %v1019_v57 = vpack.c.bf16 %v1018_v56, %v1018_v56 }
 0x64f   : > { %1362 = vmatmul.mubr.msk.bf16.vlgmr.msra.gmra.mrb[16].mxu1 %vm379_vm5, %v1019_v57 }
 0x722   : > { %v1081_v59 = vpop.f32.mrb[16].mxu1 }
 0x723   : > { %v1082_v60 = vadd.f32 %v1282_v58, %v1081_v59  ;;  %v1363_v61 = vpop.f32.mrb[17].mxu1 }
 0x724   : > { %v1084_v62 = vpop.f32.mrb[18].mxu1 }
 0x725   : > { %v1087_v63 = vpack.c.bf16 %v1082_v60, %v1082_v60  ;;  %v1364_v1 = vpop.f32.mrb[19].mxu1 }
 0x727   : > { %1089 = vst.msk [vmem:[%s364_s6] sm:$0xf] %vm1088_vm9, %v1087_v63 }
 0x728   : > { %1667 = shalt.err (!%p1664_p8)
}
 0x729   : > { %s1668_s16 = scalar_lea.hbm %s2246_s14, 64  ;;  %s1672_s29 = scalar_lea.hbm %s2300_s5, 128 }
 0x72a   : > { %p1669_p0 = scmp.ne.s32.totalorder %s2246_s14, %s1668_s16  ;;  %p1673_p7 = scmp.lt.u32.totalorder %s2246_s14, %s2300_s5 }
 0x72b   : > { %p1674_p13 = scmp.lt.u32.totalorder %s1672_s29, %s1668_s16  ;;  %p1676_p2 = scmp.lt.u32.totalorder %s1668_s16, %s2246_s14 }
 0x72c   : > { %p1670_p5 = pnand %p1669_p0, %p2341_p4 }
 0x72d   : > { %p1675_p9 = por %p1674_p13, %p1673_p7 }
 0x72e   : > { %p1671_p12 = pneg %p1670_p5 }
 0x72f   : > { %p1677_p1 = por %p1676_p2, %p1675_p9 }
 0x731   : > { %p1678_p3 = pnand %p1677_p1, %p1671_p12 }
 0x733   : > { %1681 = shalt.err (!%p1678_p3)
}
 0x734   : > { %1379 = dma.vmem_to_hbm [thread:$0]  (%p2341_p4), %s2248_s3, 64, %s2246_s14, %s1091_s21  }
 0x735 PF: > { %s1117_s11 = sand.u32 1, %s1724_s18   ;;  %p2342_p11 = scmp.ne.s32.totalorder %s2318_s27, 0 }
 0x736   : > { %p2343_p10 = scmp.ge.s32.totalorder %s1744_s23, 2  ;;  %s1118_s25 = scalar_lea.sflag [#allocation7], %s1117_s11 }
 0x738   : > { %p1399_p6 = pnand %p2343_p10, %p2342_p11 }
 0x73a   : > { %1719 = dma.done.wait (!%p1399_p6), %s1118_s25, 64  }
 0x73b   : > { %1721 = vsyncadd (!%p1399_p6), %s1118_s25, 4294967232  ;;  %s25_s23 = sadd.s32 1, %s1744_s23   ;;  %s2344_s9 = sld [smem:[#allocation20_spill]] }
 0x73c   : > { %p22_p8 = scmp.ge.s32.totalorder %s25_s23, 4   ;;  %s2345_s1 = sld [smem:[#allocation19_spill]] }
 0x73d   : > { %s2346_s18 = smov %s1728_s19  ;;  %s2347_s19 = smov %s1732_s20 }
 0x73e   : > { %s2349_s21 = smov %s1740_s22  ;;  %24 = sbr.rel (!%p22_p8) target bundleno = 12 (0xc), region = 131 }
 0x741   : > { %s2348_s20 = smov %s2344_s9 }
 0x742   : > { %s2350_s22 = smov %s2345_s1 }
 0x745   :  { %1123 = vsyncpa [#allocation6], 1 }
 0x746   :  { %1125 = vsyncpa [#allocation6 + $0x1], 1 }
 0x747   :  { %1126 = vsyncpa [#allocation9], 1 }
 0x748   :  { %1128 = vsyncpa [#allocation9 + $0x1], 1 }
 0x749   :  { %1129 = vsyncpa [#allocation12], 1 }
 0x74a   :  { %1130 = vsyncpa [#allocation7], 1 }
 0x74b   :  { %1132 = vsyncpa [#allocation7 + $0x1], 1 }

// kernel: transformer_forward.37
= control target key start
LH: loop header
LB: loop body
LE: loop exit
PB: predicated region body
PF: predicated region fallthrough
CT: control target
= control target key end

     0   :  { %10 = vsyncpa [#allocation3], 0  ;;  %s609_s0 = inlined_call_operand.hbm [shape: bf16[16,32], index: 0, kind: input, shape index: {}]   ;;  %s610_s1 = inlined_call_operand.hbm [shape: bf16[32,64], index: 1, kind: input, shape index: {}]   ;;  %s611_s2 = inlined_call_operand.hbm [shape: f32[1,64], index: 2, kind: input, shape index: {}]   ;;  %s612_s3 = inlined_call_operand.hbm [shape: bf16[64,32], index: 3, kind: input, shape index: {}]   ;;  %s613_s4 = inlined_call_operand.hbm [shape: f32[1,32], index: 4, kind: input, shape index: {}]   ;;  %s614_s5 = inlined_call_operand.hbm [shape: bf16[16,32], index: 5, kind: output, shape index: {}]  }
   0x1   :  { %11 = vsyncpa [#allocation6], 0 }
   0x2   :  { %12 = vsyncpa [#allocation9], 0 }
   0x3   :  { %13 = vsyncpa [#allocation4], 0  ;;  %s478_s18 = smov [#allocation5]   ;;  %s479_s20 = smov [#allocation8]  }
   0x4   :  { %s31_s19 = sshll.u32 %s478_s18, 4  ;;  %s53_s21 = sshll.u32 %s479_s20, 4  ;;  %s32_s19 = int_to_ptr.vmem [resolvable:$true] %s31_s19  ;;  %s518_s21 = int_to_ptr.vmem [resolvable:$true] %s53_s21 }
   0x5   :  { %s338_s24 = scalar_lea.hbm %s610_s1, 256 }
   0x6   :  { %p339_p0 = scmp.ne.s32.totalorder %s610_s1, %s338_s24  ;;  %p342_p1 = scmp.lt.u32.totalorder %s338_s24, %s610_s1 }
   0x8   :  { %p344_p2 = pnand %p342_p1, %p339_p0 }
   0xa   :  { %347 = shalt.err (!%p344_p2)
}
   0xb   :  { %s348_s29 = scalar_lea.vmem %s32_s19, 256  ;;  %p353_p4 = scmp.lt.s32.totalorder %s32_s19, %s32_s19 }
   0xc   :  { %p349_p3 = scmp.ne.s32.totalorder %s32_s19, %s348_s29  ;;  %p354_p5 = scmp.lt.s32.totalorder %s348_s29, %s348_s29 }
   0xe   :  { %p355_p6 = por %p354_p5, %p353_p4 }
  0x10   :  { %p356_p7 = pnand %p355_p6, %p349_p3 }
  0x12   :  { %359 = shalt.err (!%p356_p7)
}
  0x13   :  { %s480_s30 = smov 64   ;;  %s481_s6 = smov 4  }
  0x14   :  { %37 = dma.hbm_to_vmem [thread:$0]  %s610_s1, 256, %s32_s19, [#allocation6], %s480_s30, %s480_s30, %s481_s6  }
  0x15   :  { %s360_s11 = scalar_lea.hbm %s612_s3, 512 }
  0x16   :  { %p361_p8 = scmp.ne.s32.totalorder %s612_s3, %s360_s11  ;;  %p364_p9 = scmp.lt.u32.totalorder %s360_s11, %s612_s3 }
  0x18   :  { %p366_p10 = pnand %p364_p9, %p361_p8 }
  0x1a   :  { %369 = shalt.err (!%p366_p10)
}
  0x1b   :  { %s370_s16 = scalar_lea.vmem %s518_s21, 512  ;;  %p375_p12 = scmp.lt.s32.totalorder %s518_s21, %s518_s21 }
  0x1c   :  { %p371_p11 = scmp.ne.s32.totalorder %s518_s21, %s370_s16  ;;  %p376_p13 = scmp.lt.s32.totalorder %s370_s16, %s370_s16 }
  0x1e   :  { %p377_p0 = por %p376_p13, %p375_p12 }
  0x20   :  { %p378_p1 = pnand %p377_p0, %p371_p11 }
  0x22   :  { %381 = shalt.err (!%p378_p1)
}
  0x23   :  { %59 = dma.hbm_to_vmem [thread:$0]  %s612_s3, 512, %s518_s21, [#allocation9], %s480_s30, %s480_s30, %s481_s6  }
  0x24   :  { %s482_s18 = smov [#allocation2]   ;;  %s483_s20 = smov [#allocation7]  }
  0x25   :  { %s19_s19 = sshll.u32 %s482_s18, 4  ;;  %s44_s22 = sshll.u32 %s483_s20, 4  ;;  %s20_s19 = int_to_ptr.vmem [resolvable:$true] %s19_s19  ;;  %s45_s22 = int_to_ptr.vmem [resolvable:$true] %s44_s22 }
  0x26   :  { %s382_s25 = scalar_lea.hbm %s609_s0, 128 }
  0x27   :  { %p383_p2 = scmp.ne.s32.totalorder %s609_s0, %s382_s25  ;;  %p386_p3 = scmp.lt.u32.totalorder %s382_s25, %s609_s0 }
  0x29   :  { %p388_p4 = pnand %p386_p3, %p383_p2 }
  0x2b   :  { %391 = shalt.err (!%p388_p4)
}
  0x2c   :  { %s392_s3 = scalar_lea.vmem %s20_s19, 128  ;;  %p397_p6 = scmp.lt.s32.totalorder %s20_s19, %s20_s19 }
  0x2d   :  { %p393_p5 = scmp.ne.s32.totalorder %s20_s19, %s392_s3  ;;  %p398_p7 = scmp.lt.s32.totalorder %s392_s3, %s392_s3 }
  0x2f   :  { %p399_p8 = por %p398_p7, %p397_p6 }
  0x31   :  { %p400_p9 = pnand %p399_p8, %p393_p5 }
  0x33   :  { %403 = shalt.err (!%p400_p9)
}
  0x34   :  { %25 = dma.hbm_to_vmem [thread:$0]  %s609_s0, 128, %s20_s19, [#allocation3], %s480_s30, %s480_s30, %s481_s6  }
  0x35   :  { %s404_s10 = scalar_lea.hbm %s611_s2, 16 }
  0x36   :  { %p405_p10 = scmp.ne.s32.totalorder %s611_s2, %s404_s10  ;;  %p408_p11 = scmp.lt.u32.totalorder %s404_s10, %s611_s2 }
  0x38   :  { %p410_p12 = pnand %p408_p11, %p405_p10 }
  0x3a   :  { %413 = shalt.err (!%p410_p12)
}
  0x3b   :  { %s414_s15 = scalar_lea.vmem %s45_s22, 16  ;;  %s418_s16 = scalar_lea.vmem %s45_s22, 32 }
  0x3c   :  { %p415_p13 = scmp.ne.s32.totalorder %s45_s22, %s414_s15  ;;  %p419_p0 = scmp.lt.s32.totalorder %s45_s22, %s45_s22 }
  0x3d   :  { %p420_p1 = scmp.lt.s32.totalorder %s418_s16, %s414_s15 }
  0x3f   :  { %p421_p2 = por %p420_p1, %p419_p0 }
  0x41   :  { %p422_p3 = pnand %p421_p2, %p415_p13 }
  0x43   :  { %425 = shalt.err (!%p422_p3)
}
  0x44   :  { %47 = dma.hbm_to_vmem [thread:$0]  %s611_s2, 16, %s45_s22, [#allocation6]  }
  0x45   :  { %s484_s17 = smov [#allocation10]   ;;  %s426_s23 = scalar_lea.hbm %s613_s4, 16 }
  0x46   :  { %s66_s18 = sshll.u32 %s484_s17, 4  ;;  %p427_p4 = scmp.ne.s32.totalorder %s613_s4, %s426_s23  ;;  %s67_s18 = int_to_ptr.vmem [resolvable:$true] %s66_s18 }
  0x47   :  { %p430_p5 = scmp.lt.u32.totalorder %s426_s23, %s613_s4 }
  0x49   :  { %p432_p6 = pnand %p430_p5, %p427_p4 }
  0x4b   :  { %435 = shalt.err (!%p432_p6)
}
  0x4c   :  { %s436_s28 = scalar_lea.vmem %s67_s18, 16  ;;  %s440_s2 = scalar_lea.vmem %s67_s18, 32 }
  0x4d   :  { %p437_p7 = scmp.ne.s32.totalorder %s67_s18, %s436_s28  ;;  %p441_p8 = scmp.lt.s32.totalorder %s67_s18, %s67_s18 }
  0x4e   :  { %p442_p9 = scmp.lt.s32.totalorder %s440_s2, %s436_s28 }
  0x50   :  { %p443_p10 = por %p442_p9, %p441_p8 }
  0x52   :  { %p444_p11 = pnand %p443_p10, %p437_p7 }
  0x54   :  { %447 = shalt.err (!%p444_p11)
}
  0x55   :  { %69 = dma.hbm_to_vmem [thread:$0]  %s613_s4, 16, %s67_s18, [#allocation9]  }
  0x56   :  { %470 = dma.done.wait [#allocation3], 128  }
  0x57   :  { %471 = vsyncadd [#allocation3], 4294967168 }
  0x58   :  { %472 = dma.done.wait [#allocation6], 272  }
  0x59   :  { %473 = vsyncadd [#allocation6], 4294967024 }
  0x5a   :  { %474 = dma.done.wait [#allocation9], 528  }
  0x5b   :  { %475 = vsyncadd [#allocation9], 4294966768  ;;  %v485_v0 = vmov 0.0   ;;  %vm486_vm0 = vmmov 0   ;;  %v331_v1 = vld [vmem:[#allocation5] sm:$0xff]   ;;  %v332_v2 = vld [vmem:[#allocation5 + $0x8] sm:$0xff]  }
  0x5c   :  { %301 = vmatprep.subr.bf16.mxu0 %v485_v0  ;;  %305 = vmatprep.mubr.msk.bf16.mxu0 %vm486_vm0, %v485_v0  ;;  %v334_v3 = vld [vmem:[#allocation8] sm:$0xff]   ;;  %v335_v5 = vld [vmem:[#allocation8 + $0x8] sm:$0xff]   ;;  %vm116_vm1 = vcmask 261120   ;;  %v336_v6 = vld [vmem:[#allocation8 + $0x10] sm:$0xff]   ;;  %vm203_vm2 = vcmask 523264   ;;  %vm256_vm3 = vcmask 257024  }
  0x5d   :  { %309 = vmatprep.subr.bf16.mxu1 %v485_v0  ;;  %317 = vmatprep.mubr.msk.bf16.mxu1 %vm486_vm0, %v485_v0  ;;  %v333_v4 = vld [vmem:[#allocation2] sm:$0xff]   ;;  %v337_v7 = vld [vmem:[#allocation8 + $0x18] sm:$0xff]   ;;  %v283_v18 = vld [vmem:[#allocation10] ss:$0 sm:$0xff]  ;;  %s487_s4 = smov [#allocation11]  }
  0x5e   :  { %302 = vmatpush3.bf16.msra.mxu0 %v331_v1  ;;  %310 = vmatpush3.bf16.msra.mxu1 %v334_v3  ;;  %v278_v8 = vld [vmem:[#allocation7] ss:$0 sm:$0xff]  ;;  %s264_s3 = sshll.u32 %s487_s4, 4  ;;  %s265_s3 = int_to_ptr.vmem [resolvable:$true] %s264_s3 }
  0x5f   :  { %303 = vmatprep.subr.bf16.mxu0 %v485_v0  ;;  %311 = vmatprep.subr.bf16.mxu1 %v485_v0  ;;  %s448_s21 = scalar_lea.vmem %s265_s3, 128  ;;  %p453_p13 = scmp.lt.s32.totalorder %s265_s3, %s265_s3 }
  0x60   :  { %p449_p12 = scmp.ne.s32.totalorder %s265_s3, %s448_s21  ;;  %p454_p0 = scmp.lt.s32.totalorder %s448_s21, %s448_s21 }
  0x62   :  { %304 = vmatpush3.bf16.msra.mxu0 %v332_v2  ;;  %312 = vmatpush3.bf16.msra.mxu1 %v335_v5  ;;  %p455_p1 = por %p454_p0, %p453_p13 }
  0x63   :  { %313 = vmatprep.subr.bf16.mxu1 %v485_v0 }
  0x64   :  { %p456_p2 = pnand %p455_p1, %p449_p12 }
  0x65   :  { %306 = vmatmul.mubr.msk.bf16.vlgmr.msra.gmra.mrb[0].mxu0 %vm116_vm1, %v333_v4 }
  0x66   :  { %314 = vmatpush3.bf16.msra.mxu1 %v336_v6 }
  0x67   :  { %315 = vmatprep.subr.bf16.mxu1 %v485_v0 }
  0x6a   :  { %316 = vmatpush3.bf16.msra.mxu1 %v337_v7 }
 0x138   :  { %v154_v9 = vpop.f32.mrb[0].mxu0 }
 0x139   :  { %v155_v10 = vadd.f32 %v278_v8, %v154_v9  ;;  %v307_v11 = vpop.f32.mrb[1].mxu0 }
 0x13a   :  { %v157_v12 = vpop.f32.mrb[2].mxu0 }
 0x13b   :  { %v158_v13 = vadd.f32 %v278_v8, %v157_v12  ;;  %v308_v14 = vpop.f32.mrb[3].mxu0  ;;  %v161_v15 = vmax.f32 %v155_v10, 0.0 }
 0x13d   :  { %v162_v16 = vmax.f32 %v158_v13, 0.0 }
 0x13f   :  { %v163_v17 = vpack.c.bf16 %v162_v16, %v161_v15 }
 0x141   :  { %318 = vmatmul.mubr.msk.bf16.vlgmr.msra.gmra.mrb[0].mxu1 %vm203_vm2, %v163_v17 }
 0x214   :  { %v241_v19 = vpop.f32.mrb[0].mxu1 }
 0x215   :  { %v242_v20 = vadd.f32 %v283_v18, %v241_v19  ;;  %v319_v21 = vpop.f32.mrb[1].mxu1 }
 0x216   :  { %v244_v22 = vpop.f32.mrb[2].mxu1 }
 0x217   :  { %v291_v23 = vpack.c.bf16 %v242_v20, %v242_v20  ;;  %v245_v24 = vadd.f32 %v283_v18, %v244_v22  ;;  %v320_v25 = vpop.f32.mrb[3].mxu1 }
 0x219   :  { %v292_v26 = vpack.c.bf16 %v245_v24, %v245_v24  ;;  %257 = vst.msk [vmem:[#allocation11] sm:$0xf] %vm256_vm3, %v291_v23 }
 0x21b   :  { %258 = vst.msk [vmem:[#allocation11 + $0x4] sm:$0xf] %vm256_vm3, %v292_v26 }
 0x21c   :  { %459 = shalt.err (!%p456_p2)
}
 0x21d   :  { %s460_s9 = scalar_lea.hbm %s614_s5, 128 }
 0x21e   :  { %p461_p3 = scmp.ne.s32.totalorder %s614_s5, %s460_s9  ;;  %p464_p4 = scmp.lt.u32.totalorder %s460_s9, %s614_s5 }
 0x220   :  { %p466_p5 = pnand %p464_p4, %p461_p3 }
 0x222   :  { %469 = shalt.err (!%p466_p5)
}
 0x223   :  { %270 = dma.vmem_to_hbm [thread:$0]  %s265_s3, 128, %s614_s5, [#allocation4], %s480_s30, %s480_s30, %s481_s6  }
 0x224   :  { %476 = dma.done.wait [#allocation4], 128  }
 0x225   :  { %477 = vsyncadd [#allocation4], 4294967168 }
 0x226   :  { %274 = vsyncpa [#allocation3], 1 }
 0x227   :  { %275 = vsyncpa [#allocation6], 1 }
 0x228   :  { %276 = vsyncpa [#allocation9], 1 }
 0x229   :  { %277 = vsyncpa [#allocation4], 1 }

// kernel: transformer_forward.65
= control target key start
LH: loop header
LB: loop body
LE: loop exit
PB: predicated region body
PF: predicated region fallthrough
CT: control target
= control target key end

     0   :  { %7 = vsyncpa [#allocation3], 0  ;;  %s289_s0 = inlined_call_operand.hbm [shape: bf16[16,32], index: 0, kind: input, shape index: {}]   ;;  %s290_s1 = inlined_call_operand.hbm [shape: bf16[32,64], index: 1, kind: input, shape index: {}]   ;;  %s291_s2 = inlined_call_operand.hbm [shape: f32[16,64], index: 2, kind: output, shape index: {}]  }
   0x1   :  { %8 = vsyncpa [#allocation6], 0 }
   0x2   :  { %9 = vsyncpa [#allocation4], 0  ;;  %s229_s9 = smov [#allocation2]   ;;  %s157_s13 = scalar_lea.hbm %s289_s0, 128 }
   0x3   :  { %s15_s10 = sshll.u32 %s229_s9, 4  ;;  %p158_p0 = scmp.ne.s32.totalorder %s289_s0, %s157_s13  ;;  %s16_s10 = int_to_ptr.vmem [resolvable:$true] %s15_s10 }
   0x4   :  { %p161_p1 = scmp.lt.u32.totalorder %s157_s13, %s289_s0 }
   0x6   :  { %p163_p2 = pnand %p161_p1, %p158_p0 }
   0x8   :  { %166 = shalt.err (!%p163_p2)
}
   0x9   :  { %s167_s18 = scalar_lea.vmem %s16_s10, 128  ;;  %p172_p4 = scmp.lt.s32.totalorder %s16_s10, %s16_s10 }
   0xa   :  { %p168_p3 = scmp.ne.s32.totalorder %s16_s10, %s167_s18  ;;  %p173_p5 = scmp.lt.s32.totalorder %s167_s18, %s167_s18 }
   0xc   :  { %p174_p6 = por %p173_p5, %p172_p4 }
   0xe   :  { %p175_p7 = pnand %p174_p6, %p168_p3 }
  0x10   :  { %178 = shalt.err (!%p175_p7)
}
  0x11   :  { %s230_s19 = smov 64   ;;  %s231_s20 = smov 4  }
  0x12   :  { %21 = dma.hbm_to_vmem [thread:$0]  %s289_s0, 128, %s16_s10, [#allocation3], %s230_s19, %s230_s19, %s231_s20  }
  0x13   :  { %s232_s23 = smov [#allocation5]   ;;  %s179_s27 = scalar_lea.hbm %s290_s1, 256 }
  0x14   :  { %s27_s24 = sshll.u32 %s232_s23, 4  ;;  %p180_p8 = scmp.ne.s32.totalorder %s290_s1, %s179_s27  ;;  %s28_s24 = int_to_ptr.vmem [resolvable:$true] %s27_s24 }
  0x15   :  { %p183_p9 = scmp.lt.u32.totalorder %s179_s27, %s290_s1 }
  0x17   :  { %p185_p10 = pnand %p183_p9, %p180_p8 }
  0x19   :  { %188 = shalt.err (!%p185_p10)
}
  0x1a   :  { %s189_s4 = scalar_lea.vmem %s28_s24, 256  ;;  %p194_p12 = scmp.lt.s32.totalorder %s28_s24, %s28_s24 }
  0x1b   :  { %p190_p11 = scmp.ne.s32.totalorder %s28_s24, %s189_s4  ;;  %p195_p13 = scmp.lt.s32.totalorder %s189_s4, %s189_s4 }
  0x1d   :  { %p196_p0 = por %p195_p13, %p194_p12 }
  0x1f   :  { %p197_p1 = pnand %p196_p0, %p190_p11 }
  0x21   :  { %200 = shalt.err (!%p197_p1)
}
  0x22   :  { %33 = dma.hbm_to_vmem [thread:$0]  %s290_s1, 256, %s28_s24, [#allocation6], %s230_s19, %s230_s19, %s231_s20  }
  0x23   :  { %223 = dma.done.wait [#allocation3], 128  }
  0x24   :  { %224 = vsyncadd [#allocation3], 4294967168 }
  0x25   :  { %225 = dma.done.wait [#allocation6], 256  }
  0x26   :  { %226 = vsyncadd [#allocation6], 4294967040  ;;  %v233_v0 = vmov 0.0   ;;  %vm234_vm0 = vmmov 0   ;;  %v154_v1 = vld [vmem:[#allocation5] sm:$0xff]   ;;  %v155_v2 = vld [vmem:[#allocation5 + $0x8] sm:$0xff]  }
  0x27   :  { %137 = vmatprep.subr.bf16.mxu0 %v233_v0  ;;  %141 = vmatprep.mubr.msk.bf16.mxu0 %vm234_vm0, %v233_v0  ;;  %v156_v3 = vld [vmem:[#allocation2] sm:$0xff]   ;;  %vm64_vm1 = vcmask 261120   ;;  %s235_s6 = smov [#allocation7]   ;;  %vm109_vm2 = vcmask 523264  }
  0x28   :  { %138 = vmatpush3.bf16.msra.mxu0 %v154_v1  ;;  %s117_s7 = sshll.u32 %s235_s6, 4  ;;  %s118_s7 = int_to_ptr.vmem [resolvable:$true] %s117_s7 }
  0x29   :  { %139 = vmatprep.subr.bf16.mxu0 %v233_v0  ;;  %s201_s1 = scalar_lea.vmem %s118_s7, 256  ;;  %p206_p3 = scmp.lt.s32.totalorder %s118_s7, %s118_s7 }
  0x2a   :  { %p202_p2 = scmp.ne.s32.totalorder %s118_s7, %s201_s1  ;;  %p207_p4 = scmp.lt.s32.totalorder %s201_s1, %s201_s1 }
  0x2c   :  { %140 = vmatpush3.bf16.msra.mxu0 %v155_v2  ;;  %p208_p5 = por %p207_p4, %p206_p3 }
  0x2e   :  { %p209_p6 = pnand %p208_p5, %p202_p2 }
  0x2f   :  { %142 = vmatmul.mubr.msk.bf16.vlgmr.msra.gmra.mrb[0].mxu0 %vm64_vm1, %v156_v3 }
 0x102   :  { %v102_v4 = vpop.f32.mrb[0].mxu0 }
 0x103   :  { %110 = vst.msk [vmem:[#allocation7] sm:$0xff] %vm109_vm2, %v102_v4  ;;  %v143_v5 = vpop.f32.mrb[1].mxu0 }
 0x104   :  { %v105_v6 = vpop.f32.mrb[2].mxu0 }
 0x105   :  { %111 = vst.msk [vmem:[#allocation7 + $0x8] sm:$0xff] %vm109_vm2, %v105_v6  ;;  %v144_v7 = vpop.f32.mrb[3].mxu0 }
 0x106   :  { %212 = shalt.err (!%p209_p6)
}
 0x107   :  { %s213_s10 = scalar_lea.hbm %s291_s2, 256 }
 0x108   :  { %p214_p7 = scmp.ne.s32.totalorder %s291_s2, %s213_s10  ;;  %p217_p8 = scmp.lt.u32.totalorder %s213_s10, %s291_s2 }
 0x10a   :  { %p219_p9 = pnand %p217_p8, %p214_p7 }
 0x10c   :  { %222 = shalt.err (!%p219_p9)
}
 0x10d   :  { %s236_s15 = smov 128   ;;  %s237_s16 = smov 8  }
 0x10e   :  { %123 = dma.vmem_to_hbm [thread:$0]  %s118_s7, 256, %s291_s2, [#allocation4], %s236_s15, %s236_s15, %s237_s16  }
 0x10f   :  { %227 = dma.done.wait [#allocation4], 256  }
 0x110   :  { %228 = vsyncadd [#allocation4], 4294967040 }
 0x111   :  { %127 = vsyncpa [#allocation3], 1 }
 0x112   :  { %128 = vsyncpa [#allocation6], 1 }
 0x113   :  { %129 = vsyncpa [#allocation4], 1 }

// kernel: transformer_forward.47
= control target key start
LH: loop header
LB: loop body
LE: loop exit
PB: predicated region body
PF: predicated region fallthrough
CT: control target
= control target key end

     0   :  { %s2305_s0 = inlined_call_operand.hbm [shape: bf16[2,8,32], index: 0, kind: input, shape index: {}]   ;;  %s2306_s1 = inlined_call_operand.hbm [shape: bf16[2,8,64], index: 1, kind: input, shape index: {}]   ;;  %s2307_s2 = inlined_call_operand.hbm [shape: f32[2,1,8], index: 2, kind: input, shape index: {}]   ;;  %s2308_s3 = inlined_call_operand.hbm [shape: bf16[32,32], index: 3, kind: input, shape index: {}]   ;;  %s2309_s4 = inlined_call_operand.hbm [shape: f32[1,32], index: 4, kind: input, shape index: {}]   ;;  %s2310_s5 = inlined_call_operand.hbm [shape: bf16[2,8,32], index: 5, kind: output, shape index: {}]  }
   0x1   :  { %2325 = sst [smem:[#allocation21_spill]] %s2306_s1 }
   0x2   :  { %2326 = sst [smem:[#allocation22_spill]] %s2308_s3 }
   0x3   :  { %10 = vsyncpa [#allocation6], 0 }
   0x4   :  { %12 = vsyncpa [#allocation6 + $0x1], 0 }
   0x5   :  { %13 = vsyncpa [#allocation9], 0 }
   0x6   :  { %15 = vsyncpa [#allocation9 + $0x1], 0 }
   0x7   :  { %16 = vsyncpa [#allocation12], 0 }
   0x8   :  { %17 = vsyncpa [#allocation7], 0 }
   0x9   :  { %19 = vsyncpa [#allocation7 + $0x1], 0  ;;  %s1805_s18 = smov 0   ;;  %s1807_s19 = smov 0  }
   0xa   :  { %s1809_s20 = smov 0   ;;  %s1811_s21 = smov 0  }
   0xb   :  { %s1813_s22 = smov 0   ;;  %s1815_s23 = smov 0  }
   0xc LB: > { %s1836_s24 = sadd.s32 4294967295, %s1751_s23   ;;  %s1257_s25 = sadd.s32 4294967294, %s1751_s23   ;;  %s1751_s23 = sphi %s1815_s23, %s25_s23   ;;  %s1747_s22 = sphi %s1813_s22, %s2362_s22   ;;  %s1743_s21 = sphi %s1811_s21, %s2361_s21   ;;  %s1739_s20 = sphi %s1809_s20, %s2360_s20   ;;  %s1735_s19 = sphi %s1807_s19, %s2359_s19   ;;  %s1731_s18 = sphi %s1805_s18, %s2358_s18  }
   0xd   : > { %p66_p0 = scmp.ne.s32.totalorder %s1735_s19, %s1731_s18  ;;  %p2311_p1 = scmp.eq.s32.totalorder %s1836_s24, 0 }
   0xe   : > { %p196_p3 = scmp.eq.s32.totalorder %s1257_s25, 1  ;;  %p1258_p5 = scmp.ge.s32.totalorder %s1751_s23, 1 }
   0xf   : > { %p1845_p4 = por %p2311_p1, %p66_p0  ;;  %p203_p7 = scmp.lt.s32.totalorder %s1751_s23, 3 }
  0x10   : > { %p1850_p6 = por %p196_p3, %p66_p0  ;;  %s1753_s29 = smov [#allocation11]  }
  0x11   : > { %s2327_s26 = scalar_select %p1845_p4, 1, 0 }
  0x12   : > { %s2328_s27 = scalar_select %p1850_p6, 1, 0 }
  0x13   : > { %p1855_p8 = pnand %p1258_p5, %p203_p7  ;;  %s215_s30 = sshll.u32 %s1753_s29, 4  ;;  %s216_s30 = int_to_ptr.vmem [resolvable:$true] %s215_s30 }
  0x14   : > { %s44_s7 = sadd.s32 1, %s1747_s22  ;;  %s2331_s3 = sld [smem:[#allocation22_spill]] }
  0x15   : > { %s2329_s28 = scalar_select %p1855_p8, 1, 0 }
  0x16   : > { %p1388_p9 = pneg %p1855_p8 }
  0x18   : > { %p1864_p11 = pnand %p1388_p9, %p2311_p1 }
  0x1a   : > { %s2330_s6 = scalar_select %p1864_p11, 1, 0 }
  0x1b   : > { %s1515_s10 = scalar_lea.hbm %s2331_s3, 256  ;;  %p2317_p13 = pneg %p1864_p11 }
  0x1c   : > { %p1516_p12 = scmp.ne.s32.totalorder %s2331_s3, %s1515_s10  ;;  %p1522_p5 = scmp.lt.u32.totalorder %s1515_s10, %s2331_s3 }
  0x1e   : > { %p1518_p0 = pnand %p2317_p13, %p1516_p12 }
  0x20   : > { %p1519_p3 = pneg %p1518_p0 }
  0x22   : > { %p1524_p7 = pnand %p1522_p5, %p1519_p3 }
  0x24   : > { %1527 = shalt.err (!%p1524_p7)
}
  0x25   : > { %s1528_s15 = scalar_lea.vmem %s216_s30, 256  ;;  %p1536_p2 = scmp.lt.s32.totalorder %s216_s30, %s216_s30 }
  0x26   : > { %p1529_p9 = scmp.ne.s32.totalorder %s216_s30, %s1528_s15  ;;  %p1537_p6 = scmp.lt.s32.totalorder %s1528_s15, %s1528_s15 }
  0x28   : > { %p1531_p10 = pnand %p1529_p9, %p2317_p13  ;;  %p1538_p4 = por %p1537_p6, %p1536_p2 }
  0x2a   : > { %p1532_p1 = pneg %p1531_p10 }
  0x2c   : > { %p1539_p8 = pnand %p1538_p4, %p1532_p1 }
  0x2e   : > { %1542 = shalt.err (!%p1539_p8)
}
  0x2f   : > { %s1754_s16 = smov 64   ;;  %s1755_s17 = smov 4  }
  0x30   : > { %1391 = dma.hbm_to_vmem [thread:$0]  (!%p1864_p11), %s2331_s3, 256, %s216_s30, [#allocation12], %s1754_s16, %s1754_s16, %s1755_s17  }
  0x31   : > { %p46_p1 = scmp.ge.s32.totalorder %s44_s7, 2  ;;  %s53_s8 = sadd.s32 1, %s1739_s20 }
  0x32   : > { %p60_p2 = scmp.ne.s32.totalorder %s1739_s20, %s1735_s19  ;;  %p61_p4 = scmp.eq.s32.totalorder %s1751_s23, 0 }
  0x33   : > { %s2364_s7 = smov (%p46_p1, %s44_s7), 0  ;;  %p2333_p8 = scmp.eq.s32.totalorder %s1836_s24, 1 }
  0x34   : > { %2332 = sst [smem:[#allocation19_spill]] %s2364_s7  ;;  %p62_p6 = por %p61_p4, %p60_p2 }
  0x35   : > { %p1899_p10 = por %p2333_p8, %p60_p2  ;;  %s48_s10 = ssub.s32 %s1747_s22, %s2364_s7 }
  0x36   : > { %p1411_p12 = scmp.lt.s32.totalorder %s1751_s23, 2  ;;  %p51_p0 = scmp.eq.s32.totalorder %s48_s10, 0 }
  0x37   : > { %s2334_s9 = scalar_select %p1899_p10, 1, 0 }
  0x38   : > { %s1907_s11 = sand.u32 1, %s1739_s20   ;;  %s2316_s12 = sshll.u32 %s1747_s22, 6 }
  0x39   : > { %s2315_s30 = sshll.u32 %s1907_s11, 2  ;;  %p1914_p3 = pnand %p1411_p12, %p62_p6 }
  0x3a   : > { %s1912_s13 = scalar_select %p51_p0, %s1739_s20, %s53_s8  }
  0x3b   : > { %s2336_s14 = scalar_select %p1914_p3, 1, 0 }
  0x3c   : > { %2335 = sst [smem:[#allocation20_spill]] %s1912_s13  ;;  %s259_s15 = sand.u32 1, %s1751_s23  }
  0x3d   : > { %s2337_s1 = sld [smem:[#allocation21_spill]]  ;;  %s263_s29 = scalar_lea.vmem [#allocation8], %s2315_s30 }
  0x3e   : > { %s271_s8 = sshll.u32 %s263_s29, 4  ;;  %s1756_s10 = smov [#allocation13]   ;;  %s1928_s8 = int_to_ptr.vmem [resolvable:$true] %s271_s8 }
  0x3f   : > { %s1930_s3 = sshll.u32 %s1756_s10, 4  ;;  %s1932_s7 = scalar_lea.sflag [#allocation9], %s259_s15  ;;  %s230_s3 = int_to_ptr.vmem [resolvable:$true] %s1930_s3 }
  0x40   : > { %p1938_p7 = pneg %p1914_p3 }
  0x42   : > { %s2338_s16 = scalar_select %p1938_p7, 1, 0 }
  0x43   : > { %s1924_s25 = scalar_lea.hbm %s2337_s1, %s2316_s12  ;;  %s1548_s30 = scalar_lea.hbm %s2337_s1, 128 }
  0x44   : > { %s1543_s13 = scalar_lea.hbm %s1924_s25, 64  ;;  %p1549_p2 = scmp.lt.u32.totalorder %s1924_s25, %s2337_s1 }
  0x45   : > { %p1544_p5 = scmp.ne.s32.totalorder %s1924_s25, %s1543_s13  ;;  %p1550_p4 = scmp.lt.u32.totalorder %s1548_s30, %s1543_s13 }
  0x46   : > { %p1552_p8 = scmp.lt.u32.totalorder %s1543_s13, %s1924_s25 }
  0x47   : > { %p1546_p9 = pnand %p1938_p7, %p1544_p5  ;;  %p1551_p6 = por %p1550_p4, %p1549_p2 }
  0x49   : > { %p1547_p1 = pneg %p1546_p9  ;;  %p1553_p12 = por %p1552_p8, %p1551_p6 }
  0x4b   : > { %p1554_p0 = pnand %p1553_p12, %p1547_p1 }
  0x4d   : > { %1557 = shalt.err (!%p1554_p0)
}
  0x4e   : > { %s1558_s15 = scalar_lea.vmem %s1928_s8, 64  ;;  %s1757_s17 = smov [#allocation8]  }
  0x4f   : > { %p1559_p5 = scmp.ne.s32.totalorder %s1928_s8, %s1558_s15  ;;  %s1563_s29 = sshll.u32 %s1757_s17, 4  ;;  %s1564_s29 = int_to_ptr.vmem [resolvable:$false] %s1563_s29 }
  0x50   : > { %s1565_s12 = scalar_lea.vmem %s1564_s29, 128  ;;  %p1566_p10 = scmp.lt.s32.totalorder %s1928_s8, %s1564_s29 }
  0x51   : > { %p1561_p9 = pnand %p1559_p5, %p1938_p7  ;;  %p1567_p11 = scmp.lt.s32.totalorder %s1565_s12, %s1558_s15 }
  0x53   : > { %p1562_p13 = pneg %p1561_p9  ;;  %p1568_p2 = por %p1567_p11, %p1566_p10 }
  0x55   : > { %p1569_p4 = pnand %p1568_p2, %p1562_p13 }
  0x57   : > { %1572 = shalt.err (!%p1569_p4)
}
  0x58   : > { %1401 = dma.hbm_to_vmem [thread:$0]  (!%p1914_p3), %s1924_s25, 64, %s1928_s8, %s1932_s7  }
  0x59   : > { %s1573_s10 = scalar_lea.hbm %s2309_s4, 16  ;;  %p2339_p11 = scmp.ne.s32.totalorder %s2330_s6, 0 }
  0x5a   : > { %p1574_p1 = scmp.ne.s32.totalorder %s2309_s4, %s1573_s10  ;;  %p1580_p8 = scmp.lt.u32.totalorder %s1573_s10, %s2309_s4 }
  0x5b   : > { %p2340_p13 = pneg %p2339_p11 }
  0x5d   : > { %p1576_p10 = pnand %p1574_p1, %p2340_p13 }
  0x5f   : > { %p1577_p6 = pneg %p1576_p10 }
  0x61   : > { %p1582_p12 = pnand %p1580_p8, %p1577_p6 }
  0x63   : > { %1585 = shalt.err (!%p1582_p12)
}
  0x64   : > { %s1586_s25 = scalar_lea.vmem %s230_s3, 16  ;;  %p2341_p5 = pmov %p2340_p13 }
  0x65   : > { %p1587_p0 = scmp.ne.s32.totalorder %s230_s3, %s1586_s25  ;;  %s1593_s8 = scalar_lea.vmem %s230_s3, 32 }
  0x66   : > { %p1594_p4 = scmp.lt.s32.totalorder %s230_s3, %s230_s3  ;;  %p1595_p3 = scmp.lt.s32.totalorder %s1593_s8, %s1586_s25 }
  0x67   : > { %p1589_p9 = pnand %p1587_p0, %p2341_p5 }
  0x68   : > { %p1596_p7 = por %p1595_p3, %p1594_p4 }
  0x69   : > { %p1590_p2 = pneg %p1589_p9 }
  0x6b   : > { %p1597_p1 = pnand %p1596_p7, %p1590_p2 }
  0x6d   : > { %1600 = shalt.err (!%p1597_p1)
}
  0x6e   : > { %1394 = dma.hbm_to_vmem [thread:$0]  (!%p2339_p11), %s2309_s4, 16, %s230_s3, [#allocation12]  }
  0x6f   : > { %s2342_s30 = sshll.u32 %s1747_s22, 6  ;;  %s2343_s15 = sshll.u32 %s1907_s11, 2 }
  0x70   : > { %s1988_s17 = scalar_lea.hbm %s2305_s0, %s2342_s30  ;;  %s244_s6 = scalar_lea.vmem [#allocation5], %s2343_s15 }
  0x71   : > { %s252_s29 = sshll.u32 %s244_s6, 4  ;;  %s1266_s25 = sshll.u32 %s1747_s22, 4  ;;  %s1992_s29 = int_to_ptr.vmem [resolvable:$true] %s252_s29 }
  0x72   : > { %s241_s8 = scalar_lea.sflag [#allocation6], %s1907_s11  ;;  %s1601_s1 = scalar_lea.hbm %s1988_s17, 64 }
  0x73   : > { %p1602_p3 = scmp.ne.s32.totalorder %s1988_s17, %s1601_s1  ;;  %p2344_p7 = scmp.ne.s32.totalorder %s2338_s16, 0 }
  0x74   : > { %s1606_s30 = scalar_lea.hbm %s2305_s0, 128  ;;  %p1607_p10 = scmp.lt.u32.totalorder %s1988_s17, %s2305_s0 }
  0x75   : > { %p1604_p11 = pnand %p1602_p3, %p2344_p7  ;;  %p1608_p6 = scmp.lt.u32.totalorder %s1606_s30, %s1601_s1 }
  0x76   : > { %p1610_p12 = scmp.lt.u32.totalorder %s1601_s1, %s1988_s17 }
  0x77   : > { %p1605_p13 = pneg %p1604_p11  ;;  %p1609_p8 = por %p1608_p6, %p1607_p10 }
  0x79   : > { %p1611_p0 = por %p1610_p12, %p1609_p8 }
  0x7b   : > { %p1612_p5 = pnand %p1611_p0, %p1605_p13 }
  0x7d   : > { %1615 = shalt.err (!%p1612_p5)
}
  0x7e   : > { %s1616_s15 = scalar_lea.vmem %s1992_s29, 64  ;;  %s1758_s6 = smov [#allocation5]  }
  0x7f   : > { %p1617_p9 = scmp.ne.s32.totalorder %s1992_s29, %s1616_s15  ;;  %s1621_s3 = sshll.u32 %s1758_s6, 4  ;;  %s1622_s3 = int_to_ptr.vmem [resolvable:$false] %s1621_s3 }
  0x80   : > { %s1623_s12 = scalar_lea.vmem %s1622_s3, 128  ;;  %p1624_p1 = scmp.lt.s32.totalorder %s1992_s29, %s1622_s3 }
  0x81   : > { %p1619_p2 = pnand %p1617_p9, %p2344_p7  ;;  %p1625_p3 = scmp.lt.s32.totalorder %s1623_s12, %s1616_s15 }
  0x83   : > { %p1620_p4 = pneg %p1619_p2  ;;  %p1626_p11 = por %p1625_p3, %p1624_p1 }
  0x85   : > { %p1627_p10 = pnand %p1626_p11, %p1620_p4 }
  0x87   : > { %1630 = shalt.err (!%p1627_p10)
}
  0x88   : > { %p2345_p13 = scmp.ne.s32.totalorder %s2336_s14, 0  ;;  %s2022_s13 = scalar_lea.hbm %s2307_s2, %s1266_s25 }
  0x89   : > { %s281_s10 = scalar_lea.vmem [#allocation10], %s1907_s11  ;;  %s1631_s6 = scalar_lea.hbm %s2022_s13, 16 }
  0x8a   : > { %1398 = dma.hbm_to_vmem [thread:$0]  (!%p2345_p13), %s1988_s17, 64, %s1992_s29, %s241_s8  }
  0x8b   : > { %s289_s15 = sshll.u32 %s281_s10, 4  ;;  %p1632_p6 = scmp.ne.s32.totalorder %s2022_s13, %s1631_s6  ;;  %s290_s15 = int_to_ptr.vmem [resolvable:$true] %s289_s15 }
  0x8c   : > { %s1636_s29 = scalar_lea.hbm %s2307_s2, 32  ;;  %p1637_p0 = scmp.lt.u32.totalorder %s2022_s13, %s2307_s2 }
  0x8d   : > { %p1634_p8 = pnand %p1632_p6, %p2344_p7  ;;  %p1638_p5 = scmp.lt.u32.totalorder %s1636_s29, %s1631_s6 }
  0x8e   : > { %p1640_p2 = scmp.lt.u32.totalorder %s1631_s6, %s2022_s13 }
  0x8f   : > { %p1635_p12 = pneg %p1634_p8  ;;  %p1639_p9 = por %p1638_p5, %p1637_p0 }
  0x91   : > { %p1641_p4 = por %p1640_p2, %p1639_p9 }
  0x93   : > { %p1642_p1 = pnand %p1641_p4, %p1635_p12 }
  0x95   : > { %1645 = shalt.err (!%p1642_p1)
}
  0x96   : > { %s1646_s11 = scalar_lea.vmem %s290_s15, 16  ;;  %s1759_s25 = smov [#allocation10]  }
  0x97   : > { %p1647_p3 = scmp.ne.s32.totalorder %s290_s15, %s1646_s11  ;;  %s1651_s1 = sshll.u32 %s1759_s25, 4  ;;  %s1652_s1 = int_to_ptr.vmem [resolvable:$false] %s1651_s1 }
  0x98   : > { %s1653_s30 = scalar_lea.vmem %s1652_s1, 32  ;;  %p1654_p6 = scmp.lt.s32.totalorder %s290_s15, %s1652_s1 }
  0x99   : > { %p1649_p11 = pnand %p1647_p3, %p2344_p7  ;;  %p1655_p8 = scmp.lt.s32.totalorder %s1653_s30, %s1646_s11 }
  0x9b   : > { %p1650_p10 = pneg %p1649_p11  ;;  %p1656_p13 = por %p1655_p8, %p1654_p6 }
  0x9d   : > { %p1657_p0 = pnand %p1656_p13, %p1650_p10 }
  0x9f   : > { %1660 = shalt.err (!%p1657_p0)
}
  0xa0   : > { %p2346_p5 = scmp.ne.s32.totalorder %s2336_s14, 0  ;;  %p2347_p12 = scmp.ne.s32.totalorder %s2329_s28, 0 }
  0xa1   : > { %s2046_s16 = sand.u32 (!%p2347_p12), 1, %s1735_s19   ;;  %p2348_p7 = scmp.ne.s32.totalorder (!%p2347_p12), %s2327_s26, 0 }
  0xa2   : > { %1404 = dma.hbm_to_vmem [thread:$0]  (!%p2346_p5), %s2022_s13, 16, %s290_s15, %s1932_s7  }
  0xa3   : > { %298 = sbr.rel (%p2347_p12) target bundleno = 1845 (0x735), region = 40  ;;  %s2049_s10 = sshll.u32 (!%p2347_p12), %s2046_s16, 2 }
  0xa4   : > { %s301_s6 = scalar_lea.sflag (!%p2347_p12), [#allocation6], %s2046_s16  ;;  %s2053_s3 = scalar_lea.vmem (!%p2347_p12), [#allocation5], %s2049_s10 }
  0xaa   : > { %1714 = dma.done.wait (%p2348_p7), %s301_s6, 64  }
  0xab   : > { %1716 = vsyncadd (%p2348_p7), %s301_s6, 4294967232  ;;  %s309_s28 = sand.u32 1, %s1836_s24   ;;  %s2061_s14 = scalar_lea.vmem [#allocation8], %s2049_s10 }
  0xac   : > { %s310_s7 = scalar_lea.sflag [#allocation9], %s309_s28 }
  0xad   : > { %1718 = dma.done.wait (%p2348_p7), %s310_s7, 80  }
  0xae   : > { %1720 = vsyncadd (%p2348_p7), %s310_s7, 4294967216  ;;  %s321_s13 = scalar_lea.vmem [#allocation10], %s2046_s16  ;;  %p2349_p13 = scmp.eq.s32.totalorder %s1836_s24, 0 }
  0xb0   : > { %1722 = dma.done.wait (%p2349_p13), [#allocation12], 272   ;;  %p2350_p9 = pmov %p2349_p13 }
  0xb1   : > { %v1760_v0 = vmov 0.0   ;;  %vm1761_vm0 = vmmov 0   ;;  %vm403_vm1 = vcmask 64512   ;;  %v396_v1 = vld [vmem:[%s2061_s14] sm:$0xf]  ;;  %vm370_vm2 = vcmask 7168  }
  0xb2   : > { %1724 = vsyncadd (%p2350_p9), [#allocation12], 4294967024  ;;  %1316 = vmatprep.subr.bf16.mxu0 %v1760_v0  ;;  %1318 = vmatprep.mubr.msk.bf16.mxu0 %vm1761_vm0, %v1760_v0  ;;  %v408_v2 = vsel %vm403_vm1, %v396_v1, 0  ;;  %v395_v3 = vld [vmem:[%s2053_s3] sm:$0xf]  ;;  %v1762_v4 = vmov -inf   ;;  %v382_v5 = vlaneseq  ;;  %v1275_v18 = vcombine.low %v396_v1, %v396_v1 }
  0xb3   : > { %1322 = vmatprep.subr.bf16.mxu1 %v1760_v0  ;;  %1324 = vmatprep.mubr.msk.bf16.mxu1 %vm1761_vm0, %v1760_v0  ;;  %371 = vst.msk [vmem:[#allocation2] sm:$0xff] %vm370_vm2, %v1762_v4  ;;  %372 = vst.msk [vmem:[#allocation2 + $0x8] sm:$0xff] %vm370_vm2, %v1762_v4  ;;  %v2099_v8 = vld [vmem:[%s321_s13] ss:$0 sm:$0xff]  ;;  %v1763_v17 = vmov 0   ;;  %s1764_s24 = smov 96  }
  0xb4   : > { %1317 = vmatpush3.bf16.xpose.msra.mxu0 %v408_v2  ;;  %373 = vst.msk [vmem:[#allocation2 + $0x10] sm:$0xff] %vm370_vm2, %v1762_v4  ;;  %374 = vst.msk [vmem:[#allocation2 + $0x18] sm:$0xff] %vm370_vm2, %v1762_v4  ;;  %v383_v6 = vand.u32 127, %v382_v5  ;;  %v389_v7 = vshrl.u32 %v382_v5, 7  ;;  %1481 = vset.pattern.permute.xlu0 %v1763_v17  ;;  %v2110_v19 = vld [vmem:[%s2061_s14] ss:$0 sps:$4 sm:$0xff]  }
  0xb5   : > { %1334 = vmatprep.subr.bf16.mxu0 %v1760_v0  ;;  %375 = vst.msk [vmem:[#allocation3] sm:$0xff] %vm370_vm2, %v1760_v0  ;;  %376 = vst.msk [vmem:[#allocation3 + $0x8] sm:$0xff] %vm370_vm2, %v1760_v0  ;;  %1482 = vset.pattern.permute.xlu1 %v1763_v17  ;;  %s1765_s26 = smov 120   ;;  %v1484_v20 = vld [vmem:[%s2053_s3] ss:$0 sps:$4 sm:$0xff]   ;;  %s1766_s15 = smov 112  }
  0xb6   : > { %377 = vst.msk [vmem:[#allocation3 + $0x10] sm:$0xff] %vm370_vm2, %v1760_v0  ;;  %378 = vst.msk [vmem:[#allocation3 + $0x18] sm:$0xff] %vm370_vm2, %v1760_v0  ;;  %vm386_vm3 = vcmp.ge.s32.totalorder %v383_v6, 8  ;;  %vm392_vm4 = vcmp.gt.s32.totalorder %v383_v6, %v389_v7  ;;  %486 = vrot.lane.b32.xlu1 %v1275_v18, %s1764_s24  ;;  %v2115_v21 = vld [vmem:[%s2061_s14] ss:$0 sps:$4 sm:$0xff]   ;;  %s1767_s17 = smov 104  }
  0xb7   : > { %vm2101_vm5 = vmor %vm386_vm3, %vm392_vm4  ;;  %v1486_v22 = vld [vmem:[%s2053_s3] ss:$0 sps:$4 sm:$0xff]   ;;  %v2120_v23 = vld [vmem:[%s2061_s14] ss:$0 sps:$4 sm:$0xff]   ;;  %vm491_vm6 = vcmask 1043456   ;;  %s1768_s29 = smov 88  }
  0xb8   : > { %v1488_v24 = vld [vmem:[%s2053_s3] ss:$0 sps:$4 sm:$0xff]   ;;  %s1769_s8 = smov 80   ;;  %s1770_s12 = smov 72   ;;  %vm379_vm7 = vcmask 261120   ;;  %vm683_vm8 = vcmask 130112  }
  0xb9   : > { %380 = vst.msk [vmem:[#allocation4] sm:$0xff] %vm379_vm7, %v1760_v0  ;;  %s1771_s11 = smov 8   ;;  %s1772_s25 = smov 16   ;;  %vm831_vm9 = vcmask 195712   ;;  %vm979_vm10 = vcmask 261312   ;;  %vm1095_vm11 = vcmask 257024  }
  0xba   : > { %548 = vrot.lane.b32.xlu1 %v2110_v19, %s1765_s26  ;;  %v2124_v25 = vld [vmem:[#allocation2] sm:$0xff]  ;;  %v2172_v7 = vld [vmem:[#allocation2 + $0x8] sm:$0xff]  ;;  %s1773_s1 = smov 24   ;;  %s1294_s30 = sshll.u32 %s1743_s21, 6 }
  0xbb   : > { %1319 = vmatmul.mubr.msk.bf16.vlgmr.msra.gmra.mrb[0].mxu0 %vm403_vm1, %v395_v3  ;;  %s364_s6 = scalar_lea.vmem [#allocation14], %s2049_s10  ;;  %s2256_s14 = scalar_lea.hbm %s2310_s5, %s1294_s30 }
  0xbc   : > { %1336 = vmatprep.mubr.msk.bf16.mxu0 %vm1761_vm0, %v1760_v0  ;;  %s1112_s3 = sshll.u32 %s364_s6, 4  ;;  %s1098_s21 = scalar_lea.sflag [#allocation7], %s2046_s16  ;;  %s2258_s3 = int_to_ptr.vmem [resolvable:$true] %s1112_s3 }
  0xbd   : > { %s1661_s10 = scalar_lea.vmem %s2258_s3, 64  ;;  %p2353_p4 = scmp.ne.s32.totalorder %s2334_s9, 0 }
  0xbe   : > { %543 = vrot.lane.b32.xlu1 %v1484_v20, %s1765_s26  ;;  %p1662_p2 = scmp.ne.s32.totalorder %s2258_s3, %s1661_s10  ;;  %s1774_s13 = smov [#allocation14]  }
  0xbf   : > { %s1665_s24 = sshll.u32 %s1774_s13, 4  ;;  %s1666_s24 = int_to_ptr.vmem [resolvable:$false] %s1665_s24 }
  0xc0   : > { %p1663_p1 = pnand %p1662_p2, %p2353_p4  ;;  %s1667_s26 = scalar_lea.vmem %s1666_s24, 128 }
  0xc1   : > { %p1668_p11 = scmp.lt.s32.totalorder %s2258_s3, %s1666_s24  ;;  %p1669_p10 = scmp.lt.s32.totalorder %s1667_s26, %s1661_s10 }
  0xc2   : > { %696 = vrot.lane.b32.xlu1 %v2115_v21, %s1766_s15  ;;  %p1664_p3 = pneg %p1663_p1 }
  0xc3   : > { %p1670_p6 = por %p1669_p10, %p1668_p11 }
  0xc5   : > { %p1671_p8 = pnand %p1670_p6, %p1664_p3 }
  0xc6   : > { %691 = vrot.lane.b32.xlu1 %v1486_v22, %s1766_s15 }
  0xca   : > { %844 = vrot.lane.b32.xlu1 %v2120_v23, %s1767_s17 }
  0xce   : > { %839 = vrot.lane.b32.xlu1 %v1488_v24, %s1767_s17 }
 0x128   : > { %v487_v29 = vpop.permute.xlu1 %486 }
 0x129   : > { %v493_v30 = vsel %vm491_vm6, %v487_v29, 0 }
 0x12a   : > { %1323 = vmatpush3.bf16.msra.mxu1 %v493_v30 }
 0x12b   : > { %1328 = vmatprep.subr.bf16.mxu1 %v1760_v0 }
 0x12c   : > { %v549_v34 = vpop.permute.xlu1 %548 }
 0x12d   : > { %v554_v37 = vsel %vm403_vm1, %v549_v34, 0 }
 0x130   : > { %v544_v35 = vpop.permute.xlu1 %543 }
 0x134   : > { %v697_v39 = vpop.permute.xlu1 %696 }
 0x135   : > { %v702_v41 = vsel %vm403_vm1, %v697_v39, 0 }
 0x138   : > { %v692_v40 = vpop.permute.xlu1 %691 }
 0x13c   : > { %v845_v42 = vpop.permute.xlu1 %844 }
 0x13d   : > { %v850_v43 = vsel %vm403_vm1, %v845_v42, 0 }
 0x140   : > { %v840_v44 = vpop.permute.xlu1 %839 }
 0x18e   : > { %v444_v9 = vpop.f32.mrb[0].mxu0 }
 0x18f   : > { %v445_v11 = vadd.f32 %v2099_v8, %v444_v9  ;;  %v1320_v12 = vpop.f32.mrb[1].mxu0 }
 0x190   : > { %v447_v13 = vpop.f32.mrb[2].mxu0 }
 0x191   : > { %v1321_v14 = vpop.f32.mrb[3].mxu0  ;;  %v450_v15 = vsel %vm2101_vm5, -1e+09, %v445_v11 }
 0x192   : > { %v452_v16 = vsel %vm403_vm1, %v450_v15, -inf }
 0x193   : > { %453 = vmax.xlane.f32.xlu0 %v452_v16 }
 0x220   : > { %v454_v26 = vpop.xlane.xlu0 %453 }
 0x221   : > { %v2127_v27 = vmax.f32 %v2124_v25, %v454_v26 }
 0x223   : > { %v456_v28 = vsub.f32 %v2124_v25, %v2127_v27  ;;  %537 = vst.msk [vmem:[#allocation2] sm:$0xff] %vm370_vm2, %v2127_v27  ;;  %461 = vperm.xlu0 %1481, %v2127_v27  }
 0x2a2   : > { %v462_v31 = vpop.permute.xlu0 %461 }
 0x2a3   : > { %v464_v32 = vsub.f32 %v450_v15, %v462_v31  ;;  %v2193_v15 = vld [vmem:[#allocation2 + $0x18] sm:$0xff] }
 0x2a5   : > { %v465_v33 = vmul.f32 1.442695, %v464_v32 }
 0x2a7   : > { %1491 = vpow2.f32 %v465_v33 }
 0x2b1   : > { %v2136_v36 = vpop.eup %1491 }
 0x2b2   : > { %v482_v38 = vpack.c.bf16 %v2136_v36, %v2136_v36 }
 0x2b4   : > { %1325 = vmatmul.mubr.msk.bf16.vlgmr.msra.gmra.mrb[0].mxu1 %vm403_vm1, %v482_v38 }
 0x2b5   : > { %1329 = vmatpush3.bf16.xpose.msra.mxu1 %v554_v37  ;;  %1330 = vmatprep.mubr.msk.bf16.mxu1 %vm1761_vm0, %v1760_v0 }
 0x2b6   : > { %1340 = vmatprep.subr.bf16.mxu1 %v1760_v0 }
 0x2bc   : > { %1331 = vmatmul.mubr.msk.bf16.vlgmr.msra.gmra.mrb[4].mxu1 %vm403_vm1, %v544_v35 }
 0x2bd   : > { %1341 = vmatpush3.bf16.xpose.msra.mxu1 %v702_v41  ;;  %1342 = vmatprep.mubr.msk.bf16.mxu1 %vm1761_vm0, %v1760_v0 }
 0x2be   : > { %1352 = vmatprep.subr.bf16.mxu1 %v1760_v0 }
 0x2c4   : > { %1343 = vmatmul.mubr.msk.bf16.vlgmr.msra.gmra.mrb[8].mxu1 %vm403_vm1, %v692_v40 }
 0x2c5   : > { %1353 = vmatpush3.bf16.xpose.msra.mxu1 %v850_v43  ;;  %1354 = vmatprep.mubr.msk.bf16.mxu1 %vm1761_vm0, %v1760_v0 }
 0x2c6   : > { %1364 = vmatprep.subr.bf16.mxu1 %v1760_v0 }
 0x2cc   : > { %1355 = vmatmul.mubr.msk.bf16.vlgmr.msra.gmra.mrb[12].mxu1 %vm403_vm1, %v840_v44 }
 0x2cd   : > { %1368 = vmatprep.mubr.msk.bf16.mxu1 %vm1761_vm0, %v1760_v0 }
 0x387   : > { %v2158_v45 = vpop.f32.mrb[0].mxu1 }
 0x388   : > { %v1326_v46 = vpop.f32.mrb[1].mxu1 }
 0x389   : > { %v532_v47 = vpop.f32.mrb[2].mxu1 }
 0x38a   : > { %v1327_v48 = vpop.f32.mrb[3].mxu1 }
 0x38b   : > { %v467_v48 = vld [vmem:[#allocation3] sm:$0xff] }
 0x38f   : > { %v590_v49 = vpop.f32.mrb[4].mxu1 }
 0x390   : > { %v591_v50 = vadd.f32 %v2099_v8, %v590_v49  ;;  %v1332_v51 = vpop.f32.mrb[5].mxu1 }
 0x391   : > { %v593_v52 = vpop.f32.mrb[6].mxu1 }
 0x392   : > { %v1333_v53 = vpop.f32.mrb[7].mxu1  ;;  %v596_v54 = vsel %vm2101_vm5, -1e+09, %v591_v50 }
 0x393   : > { %v599_v55 = vsel %vm403_vm1, %v596_v54, -inf }
 0x394   : > { %600 = vmax.xlane.f32.xlu1 %v599_v55 }
 0x397   : > { %v738_v56 = vpop.f32.mrb[8].mxu1 }
 0x398   : > { %v739_v57 = vadd.f32 %v2099_v8, %v738_v56  ;;  %v1344_v58 = vpop.f32.mrb[9].mxu1 }
 0x399   : > { %v741_v59 = vpop.f32.mrb[10].mxu1 }
 0x39a   : > { %v1345_v60 = vpop.f32.mrb[11].mxu1  ;;  %v744_v61 = vsel %vm2101_vm5, -1e+09, %v739_v57  ;;  %v475_v59 = vld [vmem:[#allocation4] sm:$0xff] }
 0x39b   : > { %v747_v62 = vsel %vm403_vm1, %v744_v61, -inf }
 0x39c   : > { %748 = vmax.xlane.f32.xlu0 %v747_v62  ;;  %v763_v62 = vld [vmem:[#allocation3 + $0x10] sm:$0xff] }
 0x39f   : > { %v886_v63 = vpop.f32.mrb[12].mxu1 }
 0x3a0   : > { %v887_v1 = vadd.f32 %v2099_v8, %v886_v63  ;;  %v1356_v2 = vpop.f32.mrb[13].mxu1  ;;  %v2182_v8 = vld [vmem:[#allocation2 + $0x10] sm:$0xff] }
 0x3a1   : > { %v889_v3 = vpop.f32.mrb[14].mxu1 }
 0x3a2   : > { %v892_v4 = vsel %vm2101_vm5, -1e+09, %v887_v1  ;;  %v1357_v5 = vpop.f32.mrb[15].mxu1 }
 0x3a3   : > { %v895_v6 = vsel %vm403_vm1, %v892_v4, -inf }
 0x3a4   : > { %896 = vmax.xlane.f32.xlu1 %v895_v6  ;;  %v911_v6 = vld [vmem:[#allocation3 + $0x18] sm:$0xff] }
 0x421   : > { %v601_v9 = vpop.xlane.xlu1 %600 }
 0x422   : > { %v2175_v11 = vmax.f32 %v2172_v7, %v601_v9 }
 0x424   : > { %v603_v12 = vsub.f32 %v2172_v7, %v2175_v11  ;;  %685 = vst.msk [vmem:[#allocation2 + $0x8] sm:$0xff] %vm370_vm2, %v2175_v11  ;;  %608 = vperm.xlu1 %1482, %v2175_v11  }
 0x426   : > { %v604_v47 = vmul.f32 1.442695, %v603_v12 }
 0x428   : > { %630 = vrot.lane.b32.xlu1 %v2110_v19, %s1768_s29  ;;  %v469_v19 = vsel %vm403_vm1, %v2136_v36, 0.0  ;;  %v457_v36 = vmul.f32 1.442695, %v456_v28 }
 0x429   : > { %v749_v10 = vpop.xlane.xlu0 %748 }
 0x42a   : > { %v2186_v13 = vmax.f32 %v2182_v8, %v749_v10 }
 0x42c   : > { %v751_v14 = vsub.f32 %v2182_v8, %v2186_v13  ;;  %833 = vst.msk [vmem:[#allocation2 + $0x10] sm:$0xff] %vm370_vm2, %v2186_v13  ;;  %756 = vperm.xlu0 %1481, %v2186_v13  }
 0x42e   : > { %v752_v53 = vmul.f32 1.442695, %v751_v14 }
 0x431   : > { %v897_v16 = vpop.xlane.xlu1 %896 }
 0x432   : > { %v2196_v17 = vmax.f32 %v2193_v15, %v897_v16 }
 0x434   : > { %v899_v18 = vsub.f32 %v2193_v15, %v2196_v17  ;;  %981 = vst.msk [vmem:[#allocation2 + $0x18] sm:$0xff] %vm370_vm2, %v2196_v17  ;;  %904 = vperm.xlu1 %1482, %v2196_v17  }
 0x436   : > { %v900_v55 = vmul.f32 1.442695, %v899_v18 }
 0x438   : > { %778 = vrot.lane.b32.xlu1 %v2115_v21, %s1769_s8 }
 0x43c   : > { %926 = vrot.lane.b32.xlu1 %v2120_v23, %s1770_s12 }
 0x44b   : > { %470 = vadd.xlane.f32.xlu0 %v469_v19 }
 0x4a3   : > { %v609_v20 = vpop.permute.xlu1 %608 }
 0x4a4   : > { %v611_v22 = vsub.f32 %v596_v54, %v609_v20  ;;  %v615_v54 = vld [vmem:[#allocation3 + $0x8] sm:$0xff] }
 0x4a6   : > { %v612_v24 = vmul.f32 1.442695, %v611_v22 }
 0x4a7   : > { %v631_v26 = vpop.permute.xlu1 %630 }
 0x4a8   : > { %1493 = vpow2.f32 %v612_v24  ;;  %v636_v29 = vsel %vm491_vm6, %v631_v26, 0 }
 0x4a9   : > { %1335 = vmatpush3.bf16.msra.mxu0 %v636_v29 }
 0x4aa   : > { %1346 = vmatprep.subr.bf16.mxu0 %v1760_v0 }
 0x4ab   : > { %v757_v30 = vpop.permute.xlu0 %756 }
 0x4ac   : > { %v759_v31 = vsub.f32 %v744_v61, %v757_v30 }
 0x4ae   : > { %v760_v21 = vmul.f32 1.442695, %v759_v31 }
 0x4b0   : > { %1495 = vpow2.f32 %v760_v21 }
 0x4b2   : > { %v1494_v32 = vpop.eup %1493 }
 0x4b3   : > { %v905_v23 = vpop.permute.xlu1 %904  ;;  %v617_v33 = vsel %vm403_vm1, %v1494_v32, 0.0  ;;  %v629_v34 = vpack.c.bf16 %v1494_v32, %v1494_v32 }
 0x4b4   : > { %v907_v35 = vsub.f32 %v892_v4, %v905_v23  ;;  %618 = vadd.xlane.f32.xlu1 %v617_v33  ;;  %v1489_v23 = vld [vmem:[#allocation11] sm:$0xff]   ;;  %v1490_v33 = vld [vmem:[#allocation11 + $0x8] sm:$0xff]  }
 0x4b5   : > { %1337 = vmatmul.mubr.msk.bf16.vlgmr.msra.gmra.mrb[4].mxu0 %vm403_vm1, %v629_v34  ;;  %1365 = vmatpush3.bf16.msra.mxu1 %v1489_v23 }
 0x4b6   : > { %v908_v37 = vmul.f32 1.442695, %v907_v35  ;;  %1348 = vmatprep.mubr.msk.bf16.mxu0 %vm1761_vm0, %v1760_v0  ;;  %1366 = vmatprep.subr.bf16.mxu1 %v1760_v0 }
 0x4b7   : > { %v779_v38 = vpop.permute.xlu1 %778 }
 0x4b8   : > { %1497 = vpow2.f32 %v908_v37  ;;  %v784_v39 = vsel %vm491_vm6, %v779_v38, 0 }
 0x4b9   : > { %1347 = vmatpush3.bf16.msra.mxu0 %v784_v39  ;;  %1499 = vpow2.f32 %v457_v36  ;;  %1367 = vmatpush3.bf16.msra.mxu1 %v1490_v33 }
 0x4ba   : > { %v1496_v40 = vpop.eup %1495  ;;  %1358 = vmatprep.subr.bf16.mxu0 %v1760_v0  ;;  %1501 = vpow2.f32 %v604_v47 }
 0x4bb   : > { %v765_v41 = vsel %vm403_vm1, %v1496_v40, 0.0  ;;  %v777_v42 = vpack.c.bf16 %v1496_v40, %v1496_v40  ;;  %v927_v43 = vpop.permute.xlu1 %926  ;;  %1503 = vpow2.f32 %v752_v53 }
 0x4bc   : > { %766 = vadd.xlane.f32.xlu0 %v765_v41  ;;  %v932_v25 = vsel %vm491_vm6, %v927_v43, 0  ;;  %1505 = vpow2.f32 %v900_v55 }
 0x4bd   : > { %1349 = vmatmul.mubr.msk.bf16.vlgmr.msra.gmra.mrb[8].mxu0 %vm403_vm1, %v777_v42 }
 0x4be   : > { %1359 = vmatpush3.bf16.msra.mxu0 %v932_v25  ;;  %1360 = vmatprep.mubr.msk.bf16.mxu0 %vm1761_vm0, %v1760_v0 }
 0x4c2   : > { %v1498_v27 = vpop.eup %1497 }
 0x4c3   : > { %v913_v28 = vsel %vm403_vm1, %v1498_v27, 0.0  ;;  %v925_v44 = vpack.c.bf16 %v1498_v27, %v1498_v27  ;;  %v1500_v46 = vpop.eup %1499 }
 0x4c4   : > { %914 = vadd.xlane.f32.xlu0 %v913_v28  ;;  %v468_v49 = vmul.f32 %v1500_v46, %v467_v48  ;;  %v1502_v51 = vpop.eup %1501 }
 0x4c5   : > { %1361 = vmatmul.mubr.msk.bf16.vlgmr.msra.gmra.mrb[12].mxu0 %vm403_vm1, %v925_v44  ;;  %478 = vperm.xlu1 %1482, %v1500_v46   ;;  %v616_v56 = vmul.f32 %v1502_v51, %v615_v54  ;;  %v1504_v60 = vpop.eup %1503 }
 0x4c6   : > { %v764_v2 = vmul.f32 %v1504_v60, %v763_v62  ;;  %v1506_v5 = vpop.eup %1505 }
 0x4c7   : > { %v912_v7 = vmul.f32 %v1506_v5, %v911_v6 }
 0x4d8   : > { %v471_v50 = vpop.xlane.xlu0 %470 }
 0x4d9   : > { %v472_v52 = vadd.f32 %v471_v50, %v468_v49 }
 0x4da   : > { %625 = vperm.xlu0 %1481, %v1502_v51  }
 0x4db   : > { %474 = vst.msk [vmem:[#allocation3] sm:$0xff] %vm370_vm2, %v472_v52 }
 0x4e2   : > { %v985_v12 = vld [vmem:[#allocation3] sm:$0xff] }
 0x4e3   : > { %1507 = vrcp.f32 %v985_v12 }
 0x4ed   : > { %v1508_v22 = vpop.eup %1507 }
 0x541   : > { %v619_v57 = vpop.xlane.xlu1 %618 }
 0x542   : > { %v620_v58 = vadd.f32 %v619_v57, %v616_v56 }
 0x544   : > { %621 = vst.msk [vmem:[#allocation3 + $0x8] sm:$0xff] %vm370_vm2, %v620_v58 }
 0x545   : > { %v479_v61 = vpop.permute.xlu1 %478 }
 0x546   : > { %v481_v63 = vmul.f32 %v479_v61, %v475_v59 }
 0x548   : > { %v535_v1 = vadd.f32 %v2158_v45, %v481_v63 }
 0x549   : > { %v767_v3 = vpop.xlane.xlu0 %766 }
 0x54a   : > { %536 = vst.msk [vmem:[#allocation4] sm:$0xff] %vm403_vm1, %v535_v1  ;;  %v768_v4 = vadd.f32 %v767_v3, %v764_v2 }
 0x54b   : > { %v995_v15 = vld [vmem:[#allocation3 + $0x8] sm:$0xff] }
 0x54c   : > { %769 = vst.msk [vmem:[#allocation3 + $0x10] sm:$0xff] %vm370_vm2, %v768_v4 }
 0x551   : > { %v915_v9 = vpop.xlane.xlu0 %914  ;;  %v622_v35 = vld [vmem:[#allocation4] sm:$0xff] }
 0x552   : > { %v916_v11 = vadd.f32 %v915_v9, %v912_v7 }
 0x553   : > { %v1005_v14 = vld [vmem:[#allocation3 + $0x10] sm:$0xff] }
 0x554   : > { %917 = vst.msk [vmem:[#allocation3 + $0x18] sm:$0xff] %vm370_vm2, %v916_v11  ;;  %1509 = vrcp.f32 %v1005_v14 }
 0x555   : > { %1511 = vrcp.f32 %v995_v15 }
 0x559   : > { %v626_v34 = vpop.permute.xlu0 %625 }
 0x55a   : > { %v628_v36 = vmul.f32 %v626_v34, %v622_v35 }
 0x55b   : > { %v1015_v20 = vld [vmem:[#allocation3 + $0x18] sm:$0xff] }
 0x55c   : > { %1513 = vrcp.f32 %v1015_v20 }
 0x55e   : > { %v1510_v24 = vpop.eup %1509 }
 0x55f   : > { %v1512_v21 = vpop.eup %1511 }
 0x566   : > { %v1514_v32 = vpop.eup %1513 }
 0x588   : > { %v672_v8 = vpop.f32.mrb[4].mxu0 }
 0x589   : > { %v1338_v10 = vpop.f32.mrb[5].mxu0  ;;  %679 = vrot.lane.b32.xlu1 %v672_v8, %s1771_s11 }
 0x58a   : > { %v675_v45 = vpop.f32.mrb[6].mxu0 }
 0x58b   : > { %v1339_v13 = vpop.f32.mrb[7].mxu0 }
 0x58d   : > { %773 = vperm.xlu1 %1482, %v1504_v60   ;;  %v1289_v60 = vld [vmem:[#allocation13] ss:$0 sm:$0xff] }
 0x590   : > { %v820_v16 = vpop.f32.mrb[8].mxu0 }
 0x591   : > { %v1350_v17 = vpop.f32.mrb[9].mxu0  ;;  %827 = vrot.lane.b32.xlu0 %v820_v16, %s1772_s25  ;;  %921 = vperm.xlu1 %1482, %v1506_v5  }
 0x592   : > { %v823_v18 = vpop.f32.mrb[10].mxu0 }
 0x593   : > { %v1351_v19 = vpop.f32.mrb[11].mxu0 }
 0x595   : > { %990 = vperm.xlu1 %1482, %v1508_v22  }
 0x598   : > { %v968_v26 = vpop.f32.mrb[12].mxu0 }
 0x599   : > { %v1362_v29 = vpop.f32.mrb[13].mxu0  ;;  %975 = vrot.lane.b32.xlu0 %v968_v26, %s1773_s1  ;;  %1010 = vperm.xlu1 %1482, %v1510_v24  }
 0x59a   : > { %v971_v30 = vpop.f32.mrb[14].mxu0 }
 0x59b   : > { %v1363_v31 = vpop.f32.mrb[15].mxu0 }
 0x59d   : > { %1000 = vperm.xlu0 %1481, %v1512_v21  }
 0x5a1   : > { %1020 = vperm.xlu0 %1481, %v1514_v32  }
 0x5fb   : > { %v680_v37 = vpop.permute.xlu1 %679 }
 0x5fc   : > { %v682_v38 = vadd.f32 %v680_v37, %v628_v36 }
 0x5fe   : > { %684 = vst.msk [vmem:[#allocation4] sm:$0xff] %vm683_vm8, %v682_v38 }
 0x603   : > { %v828_v42 = vpop.permute.xlu0 %827 }
 0x605   : > { %v770_v39 = vld [vmem:[#allocation4] sm:$0xff] }
 0x60b   : > { %v976_v28 = vpop.permute.xlu0 %975 }
 0x60c   : > { %v774_v40 = vpop.permute.xlu1 %773 }
 0x60d   : > { %v776_v41 = vmul.f32 %v774_v40, %v770_v39 }
 0x60f   : > { %v830_v43 = vadd.f32 %v828_v42, %v776_v41 }
 0x610   : > { %v922_v27 = vpop.permute.xlu1 %921 }
 0x611   : > { %832 = vst.msk [vmem:[#allocation4] sm:$0xff] %vm831_vm9, %v830_v43 }
 0x614   : > { %v991_v47 = vpop.permute.xlu1 %990 }
 0x618   : > { %v918_v25 = vld [vmem:[#allocation4] sm:$0xff]  ;;  %v1011_v52 = vpop.permute.xlu1 %1010 }
 0x619   : > { %v924_v0 = vmul.f32 %v922_v27, %v918_v25 }
 0x61b   : > { %v978_v44 = vadd.f32 %v976_v28, %v924_v0 }
 0x61c   : > { %v1001_v49 = vpop.permute.xlu0 %1000 }
 0x61d   : > { %980 = vst.msk [vmem:[#allocation4] sm:$0xff] %vm979_vm10, %v978_v44 }
 0x620   : > { %v1021_v55 = vpop.permute.xlu0 %1020 }
 0x624   : > { %v987_v46 = vld [vmem:[#allocation4] sm:$0xff] }
 0x625   : > { %v993_v48 = vmul.f32 %v991_v47, %v987_v46 }
 0x627   : > { %994 = vst.msk [vmem:[#allocation4] sm:$0xff] %vm403_vm1, %v993_v48 }
 0x62e   : > { %v997_v50 = vld [vmem:[#allocation4] sm:$0xff] }
 0x62f   : > { %v1003_v51 = vmul.f32 %v1001_v49, %v997_v50 }
 0x631   : > { %1004 = vst.msk [vmem:[#allocation4] sm:$0xff] %vm683_vm8, %v1003_v51 }
 0x638   : > { %v1007_v53 = vld [vmem:[#allocation4] sm:$0xff] }
 0x639   : > { %v1013_v54 = vmul.f32 %v1011_v52, %v1007_v53 }
 0x63b   : > { %1014 = vst.msk [vmem:[#allocation4] sm:$0xff] %vm831_vm9, %v1013_v54 }
 0x642   : > { %v1017_v56 = vld [vmem:[#allocation4] sm:$0xff] }
 0x643   : > { %v1023_v57 = vmul.f32 %v1021_v55, %v1017_v56 }
 0x645   : > { %1024 = vst.msk [vmem:[#allocation4] sm:$0xff] %vm979_vm10, %v1023_v57 }
 0x64c   : > { %v1025_v58 = vld [vmem:[#allocation4] sm:$0xff] }
 0x64d   : > { %v1026_v59 = vpack.c.bf16 %v1025_v58, %v1025_v58 }
 0x64f   : > { %1369 = vmatmul.mubr.msk.bf16.vlgmr.msra.gmra.mrb[16].mxu1 %vm379_vm7, %v1026_v59 }
 0x722   : > { %v1088_v61 = vpop.f32.mrb[16].mxu1 }
 0x723   : > { %v1089_v62 = vadd.f32 %v1289_v60, %v1088_v61  ;;  %v1370_v63 = vpop.f32.mrb[17].mxu1 }
 0x724   : > { %v1091_v1 = vpop.f32.mrb[18].mxu1 }
 0x725   : > { %v1094_v2 = vpack.c.bf16 %v1089_v62, %v1089_v62  ;;  %v1371_v3 = vpop.f32.mrb[19].mxu1 }
 0x727   : > { %1096 = vst.msk [vmem:[%s364_s6] sm:$0xf] %vm1095_vm11, %v1094_v2 }
 0x728   : > { %1674 = shalt.err (!%p1671_p8)
}
 0x729   : > { %s1675_s16 = scalar_lea.hbm %s2256_s14, 64  ;;  %s1679_s29 = scalar_lea.hbm %s2310_s5, 128 }
 0x72a   : > { %p1676_p0 = scmp.ne.s32.totalorder %s2256_s14, %s1675_s16  ;;  %p1680_p7 = scmp.lt.u32.totalorder %s2256_s14, %s2310_s5 }
 0x72b   : > { %p1681_p13 = scmp.lt.u32.totalorder %s1679_s29, %s1675_s16  ;;  %p1683_p2 = scmp.lt.u32.totalorder %s1675_s16, %s2256_s14 }
 0x72c   : > { %p1677_p5 = pnand %p1676_p0, %p2353_p4 }
 0x72d   : > { %p1682_p9 = por %p1681_p13, %p1680_p7 }
 0x72e   : > { %p1678_p12 = pneg %p1677_p5 }
 0x72f   : > { %p1684_p1 = por %p1683_p2, %p1682_p9 }
 0x731   : > { %p1685_p3 = pnand %p1684_p1, %p1678_p12 }
 0x733   : > { %1688 = shalt.err (!%p1685_p3)
}
 0x734   : > { %1386 = dma.vmem_to_hbm [thread:$0]  (%p2353_p4), %s2258_s3, 64, %s2256_s14, %s1098_s21  }
 0x735 PF: > { %s1124_s11 = sand.u32 1, %s1731_s18   ;;  %p2354_p11 = scmp.ne.s32.totalorder %s2328_s27, 0 }
 0x736   : > { %p2355_p10 = scmp.ge.s32.totalorder %s1751_s23, 2  ;;  %s1125_s25 = scalar_lea.sflag [#allocation7], %s1124_s11 }
 0x738   : > { %p1406_p6 = pnand %p2355_p10, %p2354_p11 }
 0x73a   : > { %1726 = dma.done.wait (!%p1406_p6), %s1125_s25, 64  }
 0x73b   : > { %1728 = vsyncadd (!%p1406_p6), %s1125_s25, 4294967232  ;;  %s25_s23 = sadd.s32 1, %s1751_s23   ;;  %s2356_s9 = sld [smem:[#allocation20_spill]] }
 0x73c   : > { %p22_p8 = scmp.ge.s32.totalorder %s25_s23, 4   ;;  %s2357_s1 = sld [smem:[#allocation19_spill]] }
 0x73d   : > { %s2358_s18 = smov %s1735_s19  ;;  %s2359_s19 = smov %s1739_s20 }
 0x73e   : > { %s2361_s21 = smov %s1747_s22  ;;  %24 = sbr.rel (!%p22_p8) target bundleno = 12 (0xc), region = 131 }
 0x741   : > { %s2360_s20 = smov %s2356_s9 }
 0x742   : > { %s2362_s22 = smov %s2357_s1 }
 0x745   :  { %1130 = vsyncpa [#allocation6], 1 }
 0x746   :  { %1132 = vsyncpa [#allocation6 + $0x1], 1 }
 0x747   :  { %1133 = vsyncpa [#allocation9], 1 }
 0x748   :  { %1135 = vsyncpa [#allocation9 + $0x1], 1 }
 0x749   :  { %1136 = vsyncpa [#allocation12], 1 }
 0x74a   :  { %1137 = vsyncpa [#allocation7], 1 }
 0x74b   :  { %1139 = vsyncpa [#allocation7 + $0x1], 1 }

</bundles_post_ra>
